<compile_context>
chip_gen: v6e
topology: v6e:2x2x1
jax: 0.10.0
libtpu: 0.0.40
codegen_flags: <defaults>
</compile_context>

<pallas_src>
import functools
import numpy as np
import jax
import jax.numpy as jnp
from jax import lax
from jax.experimental import pallas as pl
from jax.experimental.pallas import tpu as pltpu

VOCAB = 50
VOCAB_PAD = 128        # pad embedding rows to one full lane group
EMBED = 16
HIDDEN = 32
NUM_LAYERS = 2
BATCH = 2
SEQ = 8
OUT_DIM = 2            # ag=False
SUBLANE = 8


# ---------------------------------------------------------------------------
# Fused Pallas kernel: (embedding-folded) one-hot -> 2 bi-LSTM layers -> linear
# ---------------------------------------------------------------------------
def _fused_lstm_kernel(ids_ref, tidx_ref, len_ref,
                       wih0f_ref, wih0b_ref, whh0_ref, b0_ref,
                       wih1f_ref, wih1b_ref, whh1_ref, b1_ref,
                       linw_ref, linb_ref,
                       out_ref,
                       xgf_s, xgb_s, y_s, mask_s,
                       *, seq, batch, hidden, vocab_pad):
    T, Bp, H = seq, batch, hidden
    H2 = 2 * H            # [fwd | bwd] concatenated state width
    G = 8 * H             # gate cols: [i_f i_b | f_f f_b | g_f g_b | o_f o_b]
    TB = T * Bp

    # ---- one-hot ids; embedding already folded into layer-0 weights at prep ----
    ids = ids_ref[...]                                                    # (TB, 1)
    onehot = (ids == lax.broadcasted_iota(jnp.int32, (TB, vocab_pad), 1)
              ).astype(jnp.float32)                                       # (TB, Vp)
    # TODO(synk): for real vocab sizes drop the one-hot matmul and DMA-gather rows
    # from an HBM-resident table (memory_space=pl.ANY + make_async_copy).

    # ---- packed-sequence validity mask, hoisted out of the recurrence ----------
    # fwd lanes valid while t < len[b]; bwd lanes valid while (T-1-t) < len[b].
    lane = lax.broadcasted_iota(jnp.int32, (TB, H2), 1)
    t_idx = tidx_ref[...]                                                 # (TB, 1)
    t_eff = jnp.where(lane < H, t_idx, (T - 1) - t_idx)
    mask_s[...] = (t_eff < len_ref[...]).astype(jnp.float32)             # (TB, 2H)

    def run_layer(x_flat, wihf, wihb, whh, bias, write_y):
        # Hoisted input projections for all timesteps & both directions (off the
        # serial recurrence path); bias folded in once on the fwd-indexed half.
        # TODO(synk): at production T*B*H tile these projections over time chunks
        # (emit_pipeline over T) and re-derive against 64 MiB VMEM on v7x.
        xgf_s[...] = jnp.dot(x_flat, wihf, preferred_element_type=jnp.float32) + bias
        xgb_s[...] = jnp.dot(x_flat, wihb, preferred_element_type=jnp.float32)

        def step(s, carry):
            h, c = carry                                                  # (Bp, 2H)
            tb = T - 1 - s
            rf = pl.multiple_of(s * Bp, Bp)
            rb = pl.multiple_of(tb * Bp, Bp)
            # TODO(synk): keep whh staged in the MXU across the time loop via
            # pltpu.matmul_push_rhs / matmul_acc_lhs / matmul_pop to avoid
            # re-staging the (2H,8H) RHS every serial step.
            gates = (xgf_s[pl.ds(rf, Bp), :] + xgb_s[pl.ds(rb, Bp), :]
                     + jnp.dot(h, whh, preferred_element_type=jnp.float32))   # (Bp, 8H)
            i_g = jax.nn.sigmoid(gates[:, 0 * H2:1 * H2])
            f_g = jax.nn.sigmoid(gates[:, 1 * H2:2 * H2])
            g_g = jnp.tanh(gates[:, 2 * H2:3 * H2])
            o_g = jax.nn.sigmoid(gates[:, 3 * H2:4 * H2])
            c_new = f_g * c + i_g * g_g
            h_new = o_g * jnp.tanh(c_new)
            m = mask_s[pl.ds(rf, Bp), :]                                  # (Bp, 2H)
            keep = m > 0.0
            h = jnp.where(keep, h_new, h)
            c = jnp.where(keep, c_new, c)
            if write_y:
                y_val = h_new * m
                y_s[pl.ds(rf, Bp), pl.ds(0, H)] = y_val[:, :H]            # fwd out @ t=s
                y_s[pl.ds(rb, Bp), pl.ds(H, H)] = y_val[:, H:]            # bwd out @ t=tb
            return (h, c)

        init = (jnp.zeros((Bp, H2), jnp.float32),
                jnp.zeros((Bp, H2), jnp.float32))
        h_fin, _ = lax.fori_loop(0, T, step, init, unroll=True)
        return h_fin

    # TODO(synk): on v7x use both TensorCores (grid over a larger padded batch with
    # dimension_semantics=("parallel",), or pl.core_map fwd/bwd split).

    # ---- layer 0: one-hot input (embedding folded into weights), keep sequence ----
    run_layer(onehot, wih0f_ref[...], wih0b_ref[...], whh0_ref[...], b0_ref[...], True)

    # ---- layer 1: consumes merged y_s slab directly (no concatenate/relayout) ----
    h1 = run_layer(y_s[...], wih1f_ref[...], wih1b_ref[...], whh1_ref[...], b1_ref[...],
                   False)

    # ---- final linear; lin_w rows pre-permuted so h1=[fwd|bwd] matches torch's
    #      cat(hn[-1], hn[-2]) = [bwd | fwd] ordering.
    out_ref[...] = (jnp.dot(h1, linw_ref[...], preferred_element_type=jnp.float32)
                    + linb_ref[...])


# ---------------------------------------------------------------------------
# One-time parameter preprocessing (layouts + embedding folding)
# ---------------------------------------------------------------------------
def prepare_params(params):
    H = HIDDEN
    hp = jax.lax.Precision.HIGHEST

    def expand_ih(w, backward):           # (D, 4H) -> (D, 8H), own-direction cols
        d = w.shape[0]
        wr = jnp.asarray(w, jnp.float32).reshape(d, 4, H)
        out = jnp.zeros((d, 4, 2 * H), jnp.float32)
        out = out.at[:, :, H:].set(wr) if backward else out.at[:, :, :H].set(wr)
        return out.reshape(d, 8 * H)

    def expand_b(b, backward):            # (1, 4H) -> (1, 8H)
        br = jnp.asarray(b, jnp.float32).reshape(4, H)
        out = jnp.zeros((4, 2 * H), jnp.float32)
        out = out.at[:, H:].set(br) if backward else out.at[:, :H].set(br)
        return out.reshape(1, 8 * H)

    def combine_hh(wf, wb):               # block-diagonal (2H, 8H)
        out = jnp.zeros((2 * H, 4, 2 * H), jnp.float32)
        out = out.at[:H, :, :H].set(jnp.asarray(wf, jnp.float32).reshape(H, 4, H))
        out = out.at[H:, :, H:].set(jnp.asarray(wb, jnp.float32).reshape(H, 4, H))
        return out.reshape(2 * H, 8 * H)

    emb_pad = jnp.zeros((VOCAB_PAD, EMBED), jnp.float32).at[:VOCAB].set(
        jnp.asarray(params["embedding"], jnp.float32))

    layers = []
    for li, p in enumerate(params["lstm"]):
        wih_f = expand_ih(p["w_ih_f"], False)
        wih_b = expand_ih(p["w_ih_b"], True)
        if li == 0:
            # Fold embedding into layer-0 input projection: (Vp,E)@(E,8H) -> (Vp,8H)
            wih_f = jnp.dot(emb_pad, wih_f, precision=hp)
            wih_b = jnp.dot(emb_pad, wih_b, precision=hp)
        layers.append(dict(
            wih_f=wih_f, wih_b=wih_b,
            whh=combine_hh(p["w_hh_f"], p["w_hh_b"]),
            b=expand_b(p["b_f"], False) + expand_b(p["b_b"], True)))

    lw = jnp.asarray(params["lin_w"], jnp.float32)
    return dict(lstm=layers,
                lin_w=jnp.concatenate([lw[H:], lw[:H]], axis=0),   # expects [fwd|bwd]
                lin_b=jnp.asarray(params["lin_b"], jnp.float32))


# ---------------------------------------------------------------------------
# Model forward: a single pallas_call (batch padded to a full sublane group)
# ---------------------------------------------------------------------------
@jax.jit
def lstm_model_forward(prep, padded_texts, lengths):
    B, T = padded_texts.shape
    Bp = ((B + SUBLANE - 1) // SUBLANE) * SUBLANE
    TB = T * Bp
    H = HIDDEN
    G = 8 * H
    out_dim = prep["lin_w"].shape[1]

    # pad batch rows; padded rows get length=0 (never update state) and are sliced off
    ids_pad = jnp.zeros((Bp, T), jnp.int32).at[:B].set(padded_texts.astype(jnp.int32))
    len_pad = jnp.zeros((Bp,), jnp.int32).at[:B].set(lengths.astype(jnp.int32))

    ids_tm = jnp.transpose(ids_pad).reshape(TB, 1)                          # time-major
    t_idx = jnp.repeat(jnp.arange(T, dtype=jnp.int32), Bp).reshape(TB, 1)   # step per row
    len_tm = jnp.tile(len_pad, T).reshape(TB, 1)                            # length per row

    l0, l1 = prep["lstm"]
    kern = functools.partial(_fused_lstm_kernel, seq=T, batch=Bp,
                             hidden=H, vocab_pad=VOCAB_PAD)
    out = pl.pallas_call(
        kern,
        out_shape=jax.ShapeDtypeStruct((Bp, out_dim), jnp.float32),
        scratch_shapes=[pltpu.VMEM((TB, G), jnp.float32),        # fwd-indexed input proj
                        pltpu.VMEM((TB, G), jnp.float32),        # bwd-indexed input proj
                        pltpu.VMEM((TB, 2 * H), jnp.float32),    # layer-0 outputs [fwd|bwd]
                        pltpu.VMEM((TB, 2 * H), jnp.float32)],   # hoisted validity mask
    )(ids_tm, t_idx, len_tm,
      l0["wih_f"], l0["wih_b"], l0["whh"], l0["b"],
      l1["wih_f"], l1["wih_b"], l1["whh"], l1["b"],
      prep["lin_w"], prep["lin_b"])
    return out[:B]


# ---------------------------------------------------------------------------
# Deterministic parameter init (shapes from the PyTorch module)
# ---------------------------------------------------------------------------
def init_params(key, vocab, E, H, L, out_dim):
    params = {}
    key, sub = jax.random.split(key)
    params["embedding"] = jax.random.normal(sub, (vocab, E), jnp.float32)

    bound = 1.0 / np.sqrt(H)
    lstm_layers = []
    for l in range(L):
        d_in = E if l == 0 else 2 * H
        layer = {}
        for d in ("f", "b"):
            key, k1, k2, k3, k4 = jax.random.split(key, 5)
            layer[f"w_ih_{d}"] = jax.random.uniform(k1, (d_in, 4 * H), jnp.float32, -bound, bound)
            layer[f"w_hh_{d}"] = jax.random.uniform(k2, (H, 4 * H), jnp.float32, -bound, bound)
            b_ih = jax.random.uniform(k3, (4 * H,), jnp.float32, -bound, bound)
            b_hh = jax.random.uniform(k4, (4 * H,), jnp.float32, -bound, bound)
            layer[f"b_{d}"] = (b_ih + b_hh).reshape(1, 4 * H)
        lstm_layers.append(layer)
    params["lstm"] = lstm_layers

    key, k1, k2 = jax.random.split(key, 3)
    lb = 1.0 / np.sqrt(2 * H)
    params["lin_w"] = jax.random.uniform(k1, (2 * H, out_dim), jnp.float32, -lb, lb)
    params["lin_b"] = jax.random.uniform(k2, (1, out_dim), jnp.float32, -lb, lb)
    return params


# ---------------------------------------------------------------------------
# Pure numpy reference (true per-sequence packed semantics) for validation
# ---------------------------------------------------------------------------
def ref_forward(params, padded_texts, lengths):
    emb = np.asarray(params["embedding"])
    texts = np.asarray(padded_texts)
    lens = np.asarray(lengths)
    B = texts.shape[0]
    H = HIDDEN

    def run_dir(xs, w_ih, w_hh, b):
        h = np.zeros(H, np.float32)
        c = np.zeros(H, np.float32)
        outs = []
        for t in range(xs.shape[0]):
            g = xs[t] @ w_ih + h @ w_hh + b[0]
            i = 1.0 / (1.0 + np.exp(-g[0:H]))
            f = 1.0 / (1.0 + np.exp(-g[H:2 * H]))
            gg = np.tanh(g[2 * H:3 * H])
            o = 1.0 / (1.0 + np.exp(-g[3 * H:4 * H]))
            c = f * c + i * gg
            h = o * np.tanh(c)
            outs.append(h.copy())
        return np.stack(outs), h

    rows = []
    for b in range(B):
        L = int(lens[b])
        layer_in = emb[texts[b, :L]].astype(np.float32)
        hf = hb = None
        for l in range(NUM_LAYERS):
            p = params["lstm"][l]
            yf, hf = run_dir(layer_in, np.asarray(p["w_ih_f"]),
                             np.asarray(p["w_hh_f"]), np.asarray(p["b_f"]))
            yb_rev, hb = run_dir(layer_in[::-1], np.asarray(p["w_ih_b"]),
                                 np.asarray(p["w_hh_b"]), np.asarray(p["b_b"]))
            layer_in = np.concatenate([yf, yb_rev[::-1]], axis=-1)
        rows.append(np.concatenate([hb, hf]) @ np.asarray(params["lin_w"])
                    + np.asarray(params["lin_b"])[0])
    return np.stack(rows)


if __name__ == "__main__":
    key = jax.random.PRNGKey(0)
    key, pkey, tkey = jax.random.split(key, 3)
    params = init_params(pkey, VOCAB, EMBED, HIDDEN, NUM_LAYERS, OUT_DIM)
    prep = prepare_params(params)

    padded_texts = jax.random.randint(tkey, (BATCH, SEQ), 0, VOCAB, dtype=jnp.int32)
    lengths = jnp.array([SEQ, 5], dtype=jnp.int32)   # variable lengths (unsorted OK)

    out = lstm_model_forward(prep, padded_texts, lengths)
    out = jax.block_until_ready(out)
    assert out.shape == (BATCH, OUT_DIM)

    ref = ref_forward(params, padded_texts, lengths)
    np.testing.assert_allclose(np.asarray(out), ref, rtol=5e-3, atol=5e-3)
    print("KERNEL_OK")
</pallas_src>

<mosaic_0001>
module attributes {stable_mosaic.version = 11 : i64} {
  func.func @_fused_lstm_kernel(%arg0: memref<64x1xi32, #tpu.memory_space<vmem>>, %arg1: memref<64x1xi32, #tpu.memory_space<vmem>>, %arg2: memref<64x1xi32, #tpu.memory_space<vmem>>, %arg3: memref<128x256xf32, #tpu.memory_space<vmem>>, %arg4: memref<128x256xf32, #tpu.memory_space<vmem>>, %arg5: memref<64x256xf32, #tpu.memory_space<vmem>>, %arg6: memref<1x256xf32, #tpu.memory_space<vmem>>, %arg7: memref<64x256xf32, #tpu.memory_space<vmem>>, %arg8: memref<64x256xf32, #tpu.memory_space<vmem>>, %arg9: memref<64x256xf32, #tpu.memory_space<vmem>>, %arg10: memref<1x256xf32, #tpu.memory_space<vmem>>, %arg11: memref<64x2xf32, #tpu.memory_space<vmem>>, %arg12: memref<1x2xf32, #tpu.memory_space<vmem>>, %arg13: memref<8x2xf32, #tpu.memory_space<vmem>>, %arg14: memref<64x256xf32, #tpu.memory_space<vmem>>, %arg15: memref<64x256xf32, #tpu.memory_space<vmem>>, %arg16: memref<64x64xf32, #tpu.memory_space<vmem>>, %arg17: memref<64x64xf32, #tpu.memory_space<vmem>>) attributes {dimension_semantics = [], scalar_prefetch = 0 : i64, scratch_operands = 4 : i64, tpu.core_type = #tpu.core_type<tc>} {
    %c0 = arith.constant 0 : index
    %c0_0 = arith.constant 0 : index
    %0 = vector.load %arg0[%c0, %c0_0] : memref<64x1xi32, #tpu.memory_space<vmem>>, vector<64x1xi32>
    %1 = tpu.iota {dimensions = array<i32: 1>} : vector<64x128xi32>
    %2 = vector.broadcast %0 : vector<64x1xi32> to vector<64x128xi32>
    %3 = arith.cmpi eq, %2, %1 : vector<64x128xi32>
    %4 = arith.extui %3 : vector<64x128xi1> to vector<64x128xi32>
    %5 = arith.sitofp %4 : vector<64x128xi32> to vector<64x128xf32>
    %6 = tpu.iota {dimensions = array<i32: 1>} : vector<64x64xi32>
    %c0_1 = arith.constant 0 : index
    %c0_2 = arith.constant 0 : index
    %7 = vector.load %arg1[%c0_1, %c0_2] : memref<64x1xi32, #tpu.memory_space<vmem>>, vector<64x1xi32>
    %c32_i32 = arith.constant 32 : i32
    %8 = vector.broadcast %c32_i32 : i32 to vector<64x64xi32>
    %9 = arith.cmpi slt, %6, %8 : vector<64x64xi32>
    %c7_i32 = arith.constant 7 : i32
    %10 = vector.broadcast %c7_i32 : i32 to vector<64x1xi32>
    %11 = arith.subi %10, %7 : vector<64x1xi32>
    %12 = vector.shape_cast %7 : vector<64x1xi32> to vector<64x1xi32>
    %13 = vector.broadcast %12 : vector<64x1xi32> to vector<64x64xi32>
    %14 = vector.shape_cast %11 : vector<64x1xi32> to vector<64x1xi32>
    %15 = vector.broadcast %14 : vector<64x1xi32> to vector<64x64xi32>
    %16 = arith.select %9, %13, %15 : vector<64x64xi1>, vector<64x64xi32>
    %c0_3 = arith.constant 0 : index
    %c0_4 = arith.constant 0 : index
    %17 = vector.load %arg2[%c0_3, %c0_4] : memref<64x1xi32, #tpu.memory_space<vmem>>, vector<64x1xi32>
    %18 = vector.broadcast %17 : vector<64x1xi32> to vector<64x64xi32>
    %19 = arith.cmpi slt, %16, %18 : vector<64x64xi32>
    %20 = arith.extui %19 : vector<64x64xi1> to vector<64x64xi32>
    %21 = arith.sitofp %20 : vector<64x64xi32> to vector<64x64xf32>
    %c0_5 = arith.constant 0 : index
    %c0_6 = arith.constant 0 : index
    %22 = vector.load %arg17[%c0_5, %c0_6] : memref<64x64xf32, #tpu.memory_space<vmem>>, vector<64x64xf32>
    tpu.vector_store %arg17[%c0_5, %c0_6], %21 {strides = array<i32>} : memref<64x64xf32, #tpu.memory_space<vmem>>, vector<64x64xf32>,
    %c0_7 = arith.constant 0 : index
    %c0_8 = arith.constant 0 : index
    %23 = vector.load %arg3[%c0_7, %c0_8] : memref<128x256xf32, #tpu.memory_space<vmem>>, vector<128x256xf32>
    %c0_9 = arith.constant 0 : index
    %c0_10 = arith.constant 0 : index
    %24 = vector.load %arg4[%c0_9, %c0_10] : memref<128x256xf32, #tpu.memory_space<vmem>>, vector<128x256xf32>
    %c0_11 = arith.constant 0 : index
    %c0_12 = arith.constant 0 : index
    %25 = vector.load %arg5[%c0_11, %c0_12] : memref<64x256xf32, #tpu.memory_space<vmem>>, vector<64x256xf32>
    %c0_13 = arith.constant 0 : index
    %c0_14 = arith.constant 0 : index
    %26 = vector.load %arg6[%c0_13, %c0_14] : memref<1x256xf32, #tpu.memory_space<vmem>>, vector<1x256xf32>
    %cst = arith.constant dense<0.000000e+00> : vector<64x256xf32>
    %27 = tpu.matmul %5, %23, %cst {dimension_numbers = #tpu.dot_dimension_numbers<[1], [0], [0], [1], [0, 0, 1, 1], [], []>} : vector<64x128xf32>, vector<128x256xf32>, vector<64x256xf32> -> vector<64x256xf32>
    %28 = vector.broadcast %26 : vector<1x256xf32> to vector<64x256xf32>
    %29 = arith.addf %27, %28 : vector<64x256xf32>
    %c0_15 = arith.constant 0 : index
    %c0_16 = arith.constant 0 : index
    %30 = vector.load %arg14[%c0_15, %c0_16] : memref<64x256xf32, #tpu.memory_space<vmem>>, vector<64x256xf32>
    tpu.vector_store %arg14[%c0_15, %c0_16], %29 {strides = array<i32>} : memref<64x256xf32, #tpu.memory_space<vmem>>, vector<64x256xf32>,
    %cst_17 = arith.constant dense<0.000000e+00> : vector<64x256xf32>
    %31 = tpu.matmul %5, %24, %cst_17 {dimension_numbers = #tpu.dot_dimension_numbers<[1], [0], [0], [1], [0, 0, 1, 1], [], []>} : vector<64x128xf32>, vector<128x256xf32>, vector<64x256xf32> -> vector<64x256xf32>
    %c0_18 = arith.constant 0 : index
    %c0_19 = arith.constant 0 : index
    %32 = vector.load %arg15[%c0_18, %c0_19] : memref<64x256xf32, #tpu.memory_space<vmem>>, vector<64x256xf32>
    tpu.vector_store %arg15[%c0_18, %c0_19], %31 {strides = array<i32>} : memref<64x256xf32, #tpu.memory_space<vmem>>, vector<64x256xf32>,
    %cst_20 = arith.constant 0.000000e+00 : f32
    %33 = vector.broadcast %cst_20 : f32 to vector<8x64xf32>
    %cst_21 = arith.constant 0.000000e+00 : f32
    %34 = vector.broadcast %cst_21 : f32 to vector<8x64xf32>
    %c0_i32 = arith.constant 0 : i32
    %c7_i32_22 = arith.constant 7 : i32
    %35 = arith.subi %c7_i32_22, %c0_i32 : i32
    %c8_i32 = arith.constant 8 : i32
    %36 = arith.muli %c0_i32, %c8_i32 : i32
    %37 = tpu.assume_multiple %36, 8 : i32
    %c8_i32_23 = arith.constant 8 : i32
    %38 = arith.muli %35, %c8_i32_23 : i32
    %39 = tpu.assume_multiple %38, 8 : i32
    %40 = arith.index_cast %37 : i32 to index
    %c0_24 = arith.constant 0 : index
    %41 = vector.load %arg14[%40, %c0_24] : memref<64x256xf32, #tpu.memory_space<vmem>>, vector<8x256xf32>
    %42 = arith.index_cast %39 : i32 to index
    %c0_25 = arith.constant 0 : index
    %43 = vector.load %arg15[%42, %c0_25] : memref<64x256xf32, #tpu.memory_space<vmem>>, vector<8x256xf32>
    %44 = arith.addf %41, %43 : vector<8x256xf32>
    %cst_26 = arith.constant dense<0.000000e+00> : vector<8x256xf32>
    %45 = tpu.matmul %33, %25, %cst_26 {dimension_numbers = #tpu.dot_dimension_numbers<[1], [0], [0], [1], [0, 0, 1, 1], [], []>} : vector<8x64xf32>, vector<64x256xf32>, vector<8x256xf32> -> vector<8x256xf32>
    %46 = arith.addf %44, %45 : vector<8x256xf32>
    %47 = vector.extract_strided_slice %46 {offsets = [0, 0], sizes = [8, 64], strides = [1, 1]} : vector<8x256xf32> to vector<8x64xf32>
    %48 = arith.negf %47 : vector<8x64xf32>
    %49 = math.exp %48 : vector<8x64xf32>
    %cst_27 = arith.constant 1.000000e+00 : f32
    %50 = vector.broadcast %cst_27 : f32 to vector<8x64xf32>
    %51 = arith.addf %50, %49 : vector<8x64xf32>
    %52 = arith.divf %50, %51 : vector<8x64xf32>
    %53 = vector.extract_strided_slice %46 {offsets = [0, 64], sizes = [8, 64], strides = [1, 1]} : vector<8x256xf32> to vector<8x64xf32>
    %54 = arith.negf %53 : vector<8x64xf32>
    %55 = math.exp %54 : vector<8x64xf32>
    %cst_28 = arith.constant 1.000000e+00 : f32
    %56 = vector.broadcast %cst_28 : f32 to vector<8x64xf32>
    %57 = arith.addf %56, %55 : vector<8x64xf32>
    %58 = arith.divf %56, %57 : vector<8x64xf32>
    %59 = vector.extract_strided_slice %46 {offsets = [0, 128], sizes = [8, 64], strides = [1, 1]} : vector<8x256xf32> to vector<8x64xf32>
    %60 = math.tanh %59 : vector<8x64xf32>
    %61 = vector.extract_strided_slice %46 {offsets = [0, 192], sizes = [8, 64], strides = [1, 1]} : vector<8x256xf32> to vector<8x64xf32>
    %62 = arith.negf %61 : vector<8x64xf32>
    %63 = math.exp %62 : vector<8x64xf32>
    %cst_29 = arith.constant 1.000000e+00 : f32
    %64 = vector.broadcast %cst_29 : f32 to vector<8x64xf32>
    %65 = arith.addf %64, %63 : vector<8x64xf32>
    %66 = arith.divf %64, %65 : vector<8x64xf32>
    %67 = arith.mulf %58, %34 : vector<8x64xf32>
    %68 = arith.mulf %52, %60 : vector<8x64xf32>
    %69 = arith.addf %67, %68 : vector<8x64xf32>
    %70 = math.tanh %69 : vector<8x64xf32>
    %71 = arith.mulf %66, %70 : vector<8x64xf32>
    %72 = arith.index_cast %37 : i32 to index
    %c0_30 = arith.constant 0 : index
    %73 = vector.load %arg17[%72, %c0_30] : memref<64x64xf32, #tpu.memory_space<vmem>>, vector<8x64xf32>
    %cst_31 = arith.constant 0.000000e+00 : f32
    %74 = vector.broadcast %cst_31 : f32 to vector<8x64xf32>
    %75 = arith.cmpf ogt, %73, %74 : vector<8x64xf32>
    %76 = arith.select %75, %71, %33 : vector<8x64xi1>, vector<8x64xf32>
    %77 = arith.select %75, %69, %34 : vector<8x64xi1>, vector<8x64xf32>
    %78 = arith.mulf %71, %73 : vector<8x64xf32>
    %79 = vector.extract_strided_slice %78 {offsets = [0, 0], sizes = [8, 32], strides = [1, 1]} : vector<8x64xf32> to vector<8x32xf32>
    %80 = arith.index_cast %37 : i32 to index
    %c0_32 = arith.constant 0 : index
    %81 = vector.load %arg16[%80, %c0_32] : memref<64x64xf32, #tpu.memory_space<vmem>>, vector<8x32xf32>
    tpu.vector_store %arg16[%80, %c0_32], %79 {strides = array<i32>} : memref<64x64xf32, #tpu.memory_space<vmem>>, vector<8x32xf32>,
    %82 = vector.extract_strided_slice %78 {offsets = [0, 32], sizes = [8, 32], strides = [1, 1]} : vector<8x64xf32> to vector<8x32xf32>
    %83 = arith.index_cast %39 : i32 to index
    %c32 = arith.constant 32 : index
    %84 = vector.load %arg16[%83, %c32] : memref<64x64xf32, #tpu.memory_space<vmem>>, vector<8x32xf32>
    tpu.vector_store %arg16[%83, %c32], %82 {strides = array<i32>} : memref<64x64xf32, #tpu.memory_space<vmem>>, vector<8x32xf32>,
    %c1_i32 = arith.constant 1 : i32
    %c7_i32_33 = arith.constant 7 : i32
    %85 = arith.subi %c7_i32_33, %c1_i32 : i32
    %c8_i32_34 = arith.constant 8 : i32
    %86 = arith.muli %c1_i32, %c8_i32_34 : i32
    %87 = tpu.assume_multiple %86, 8 : i32
    %c8_i32_35 = arith.constant 8 : i32
    %88 = arith.muli %85, %c8_i32_35 : i32
    %89 = tpu.assume_multiple %88, 8 : i32
    %90 = arith.index_cast %87 : i32 to index
    %c0_36 = arith.constant 0 : index
    %91 = vector.load %arg14[%90, %c0_36] : memref<64x256xf32, #tpu.memory_space<vmem>>, vector<8x256xf32>
    %92 = arith.index_cast %89 : i32 to index
    %c0_37 = arith.constant 0 : index
    %93 = vector.load %arg15[%92, %c0_37] : memref<64x256xf32, #tpu.memory_space<vmem>>, vector<8x256xf32>
    %94 = arith.addf %91, %93 : vector<8x256xf32>
    %cst_38 = arith.constant dense<0.000000e+00> : vector<8x256xf32>
    %95 = tpu.matmul %76, %25, %cst_38 {dimension_numbers = #tpu.dot_dimension_numbers<[1], [0], [0], [1], [0, 0, 1, 1], [], []>} : vector<8x64xf32>, vector<64x256xf32>, vector<8x256xf32> -> vector<8x256xf32>
    %96 = arith.addf %94, %95 : vector<8x256xf32>
    %97 = vector.extract_strided_slice %96 {offsets = [0, 0], sizes = [8, 64], strides = [1, 1]} : vector<8x256xf32> to vector<8x64xf32>
    %98 = arith.negf %97 : vector<8x64xf32>
    %99 = math.exp %98 : vector<8x64xf32>
    %cst_39 = arith.constant 1.000000e+00 : f32
    %100 = vector.broadcast %cst_39 : f32 to vector<8x64xf32>
    %101 = arith.addf %100, %99 : vector<8x64xf32>
    %102 = arith.divf %100, %101 : vector<8x64xf32>
    %103 = vector.extract_strided_slice %96 {offsets = [0, 64], sizes = [8, 64], strides = [1, 1]} : vector<8x256xf32> to vector<8x64xf32>
    %104 = arith.negf %103 : vector<8x64xf32>
    %105 = math.exp %104 : vector<8x64xf32>
    %cst_40 = arith.constant 1.000000e+00 : f32
    %106 = vector.broadcast %cst_40 : f32 to vector<8x64xf32>
    %107 = arith.addf %106, %105 : vector<8x64xf32>
    %108 = arith.divf %106, %107 : vector<8x64xf32>
    %109 = vector.extract_strided_slice %96 {offsets = [0, 128], sizes = [8, 64], strides = [1, 1]} : vector<8x256xf32> to vector<8x64xf32>
    %110 = math.tanh %109 : vector<8x64xf32>
    %111 = vector.extract_strided_slice %96 {offsets = [0, 192], sizes = [8, 64], strides = [1, 1]} : vector<8x256xf32> to vector<8x64xf32>
    %112 = arith.negf %111 : vector<8x64xf32>
    %113 = math.exp %112 : vector<8x64xf32>
    %cst_41 = arith.constant 1.000000e+00 : f32
    %114 = vector.broadcast %cst_41 : f32 to vector<8x64xf32>
    %115 = arith.addf %114, %113 : vector<8x64xf32>
    %116 = arith.divf %114, %115 : vector<8x64xf32>
    %117 = arith.mulf %108, %77 : vector<8x64xf32>
    %118 = arith.mulf %102, %110 : vector<8x64xf32>
    %119 = arith.addf %117, %118 : vector<8x64xf32>
    %120 = math.tanh %119 : vector<8x64xf32>
    %121 = arith.mulf %116, %120 : vector<8x64xf32>
    %122 = arith.index_cast %87 : i32 to index
    %c0_42 = arith.constant 0 : index
    %123 = vector.load %arg17[%122, %c0_42] : memref<64x64xf32, #tpu.memory_space<vmem>>, vector<8x64xf32>
    %cst_43 = arith.constant 0.000000e+00 : f32
    %124 = vector.broadcast %cst_43 : f32 to vector<8x64xf32>
    %125 = arith.cmpf ogt, %123, %124 : vector<8x64xf32>
    %126 = arith.select %125, %121, %76 : vector<8x64xi1>, vector<8x64xf32>
    %127 = arith.select %125, %119, %77 : vector<8x64xi1>, vector<8x64xf32>
    %128 = arith.mulf %121, %123 : vector<8x64xf32>
    %129 = vector.extract_strided_slice %128 {offsets = [0, 0], sizes = [8, 32], strides = [1, 1]} : vector<8x64xf32> to vector<8x32xf32>
    %130 = arith.index_cast %87 : i32 to index
    %c0_44 = arith.constant 0 : index
    %131 = vector.load %arg16[%130, %c0_44] : memref<64x64xf32, #tpu.memory_space<vmem>>, vector<8x32xf32>
    tpu.vector_store %arg16[%130, %c0_44], %129 {strides = array<i32>} : memref<64x64xf32, #tpu.memory_space<vmem>>, vector<8x32xf32>,
    %132 = vector.extract_strided_slice %128 {offsets = [0, 32], sizes = [8, 32], strides = [1, 1]} : vector<8x64xf32> to vector<8x32xf32>
    %133 = arith.index_cast %89 : i32 to index
    %c32_45 = arith.constant 32 : index
    %134 = vector.load %arg16[%133, %c32_45] : memref<64x64xf32, #tpu.memory_space<vmem>>, vector<8x32xf32>
    tpu.vector_store %arg16[%133, %c32_45], %132 {strides = array<i32>} : memref<64x64xf32, #tpu.memory_space<vmem>>, vector<8x32xf32>,
    %c2_i32 = arith.constant 2 : i32
    %c7_i32_46 = arith.constant 7 : i32
    %135 = arith.subi %c7_i32_46, %c2_i32 : i32
    %c8_i32_47 = arith.constant 8 : i32
    %136 = arith.muli %c2_i32, %c8_i32_47 : i32
    %137 = tpu.assume_multiple %136, 8 : i32
    %c8_i32_48 = arith.constant 8 : i32
    %138 = arith.muli %135, %c8_i32_48 : i32
    %139 = tpu.assume_multiple %138, 8 : i32
    %140 = arith.index_cast %137 : i32 to index
    %c0_49 = arith.constant 0 : index
    %141 = vector.load %arg14[%140, %c0_49] : memref<64x256xf32, #tpu.memory_space<vmem>>, vector<8x256xf32>
    %142 = arith.index_cast %139 : i32 to index
    %c0_50 = arith.constant 0 : index
    %143 = vector.load %arg15[%142, %c0_50] : memref<64x256xf32, #tpu.memory_space<vmem>>, vector<8x256xf32>
    %144 = arith.addf %141, %143 : vector<8x256xf32>
    %cst_51 = arith.constant dense<0.000000e+00> : vector<8x256xf32>
    %145 = tpu.matmul %126, %25, %cst_51 {dimension_numbers = #tpu.dot_dimension_numbers<[1], [0], [0], [1], [0, 0, 1, 1], [], []>} : vector<8x64xf32>, vector<64x256xf32>, vector<8x256xf32> -> vector<8x256xf32>
    %146 = arith.addf %144, %145 : vector<8x256xf32>
    %147 = vector.extract_strided_slice %146 {offsets = [0, 0], sizes = [8, 64], strides = [1, 1]} : vector<8x256xf32> to vector<8x64xf32>
    %148 = arith.negf %147 : vector<8x64xf32>
    %149 = math.exp %148 : vector<8x64xf32>
    %cst_52 = arith.constant 1.000000e+00 : f32
    %150 = vector.broadcast %cst_52 : f32 to vector<8x64xf32>
    %151 = arith.addf %150, %149 : vector<8x64xf32>
    %152 = arith.divf %150, %151 : vector<8x64xf32>
    %153 = vector.extract_strided_slice %146 {offsets = [0, 64], sizes = [8, 64], strides = [1, 1]} : vector<8x256xf32> to vector<8x64xf32>
    %154 = arith.negf %153 : vector<8x64xf32>
    %155 = math.exp %154 : vector<8x64xf32>
    %cst_53 = arith.constant 1.000000e+00 : f32
    %156 = vector.broadcast %cst_53 : f32 to vector<8x64xf32>
    %157 = arith.addf %156, %155 : vector<8x64xf32>
    %158 = arith.divf %156, %157 : vector<8x64xf32>
    %159 = vector.extract_strided_slice %146 {offsets = [0, 128], sizes = [8, 64], strides = [1, 1]} : vector<8x256xf32> to vector<8x64xf32>
    %160 = math.tanh %159 : vector<8x64xf32>
    %161 = vector.extract_strided_slice %146 {offsets = [0, 192], sizes = [8, 64], strides = [1, 1]} : vector<8x256xf32> to vector<8x64xf32>
    %162 = arith.negf %161 : vector<8x64xf32>
    %163 = math.exp %162 : vector<8x64xf32>
    %cst_54 = arith.constant 1.000000e+00 : f32
    %164 = vector.broadcast %cst_54 : f32 to vector<8x64xf32>
    %165 = arith.addf %164, %163 : vector<8x64xf32>
    %166 = arith.divf %164, %165 : vector<8x64xf32>
    %167 = arith.mulf %158, %127 : vector<8x64xf32>
    %168 = arith.mulf %152, %160 : vector<8x64xf32>
    %169 = arith.addf %167, %168 : vector<8x64xf32>
    %170 = math.tanh %169 : vector<8x64xf32>
    %171 = arith.mulf %166, %170 : vector<8x64xf32>
    %172 = arith.index_cast %137 : i32 to index
    %c0_55 = arith.constant 0 : index
    %173 = vector.load %arg17[%172, %c0_55] : memref<64x64xf32, #tpu.memory_space<vmem>>, vector<8x64xf32>
    %cst_56 = arith.constant 0.000000e+00 : f32
    %174 = vector.broadcast %cst_56 : f32 to vector<8x64xf32>
    %175 = arith.cmpf ogt, %173, %174 : vector<8x64xf32>
    %176 = arith.select %175, %171, %126 : vector<8x64xi1>, vector<8x64xf32>
    %177 = arith.select %175, %169, %127 : vector<8x64xi1>, vector<8x64xf32>
    %178 = arith.mulf %171, %173 : vector<8x64xf32>
    %179 = vector.extract_strided_slice %178 {offsets = [0, 0], sizes = [8, 32], strides = [1, 1]} : vector<8x64xf32> to vector<8x32xf32>
    %180 = arith.index_cast %137 : i32 to index
    %c0_57 = arith.constant 0 : index
    %181 = vector.load %arg16[%180, %c0_57] : memref<64x64xf32, #tpu.memory_space<vmem>>, vector<8x32xf32>
    tpu.vector_store %arg16[%180, %c0_57], %179 {strides = array<i32>} : memref<64x64xf32, #tpu.memory_space<vmem>>, vector<8x32xf32>,
    %182 = vector.extract_strided_slice %178 {offsets = [0, 32], sizes = [8, 32], strides = [1, 1]} : vector<8x64xf32> to vector<8x32xf32>
    %183 = arith.index_cast %139 : i32 to index
    %c32_58 = arith.constant 32 : index
    %184 = vector.load %arg16[%183, %c32_58] : memref<64x64xf32, #tpu.memory_space<vmem>>, vector<8x32xf32>
    tpu.vector_store %arg16[%183, %c32_58], %182 {strides = array<i32>} : memref<64x64xf32, #tpu.memory_space<vmem>>, vector<8x32xf32>,
    %c3_i32 = arith.constant 3 : i32
    %c7_i32_59 = arith.constant 7 : i32
    %185 = arith.subi %c7_i32_59, %c3_i32 : i32
    %c8_i32_60 = arith.constant 8 : i32
    %186 = arith.muli %c3_i32, %c8_i32_60 : i32
    %187 = tpu.assume_multiple %186, 8 : i32
    %c8_i32_61 = arith.constant 8 : i32
    %188 = arith.muli %185, %c8_i32_61 : i32
    %189 = tpu.assume_multiple %188, 8 : i32
    %190 = arith.index_cast %187 : i32 to index
    %c0_62 = arith.constant 0 : index
    %191 = vector.load %arg14[%190, %c0_62] : memref<64x256xf32, #tpu.memory_space<vmem>>, vector<8x256xf32>
    %192 = arith.index_cast %189 : i32 to index
    %c0_63 = arith.constant 0 : index
    %193 = vector.load %arg15[%192, %c0_63] : memref<64x256xf32, #tpu.memory_space<vmem>>, vector<8x256xf32>
    %194 = arith.addf %191, %193 : vector<8x256xf32>
    %cst_64 = arith.constant dense<0.000000e+00> : vector<8x256xf32>
    %195 = tpu.matmul %176, %25, %cst_64 {dimension_numbers = #tpu.dot_dimension_numbers<[1], [0], [0], [1], [0, 0, 1, 1], [], []>} : vector<8x64xf32>, vector<64x256xf32>, vector<8x256xf32> -> vector<8x256xf32>
    %196 = arith.addf %194, %195 : vector<8x256xf32>
    %197 = vector.extract_strided_slice %196 {offsets = [0, 0], sizes = [8, 64], strides = [1, 1]} : vector<8x256xf32> to vector<8x64xf32>
    %198 = arith.negf %197 : vector<8x64xf32>
    %199 = math.exp %198 : vector<8x64xf32>
    %cst_65 = arith.constant 1.000000e+00 : f32
    %200 = vector.broadcast %cst_65 : f32 to vector<8x64xf32>
    %201 = arith.addf %200, %199 : vector<8x64xf32>
    %202 = arith.divf %200, %201 : vector<8x64xf32>
    %203 = vector.extract_strided_slice %196 {offsets = [0, 64], sizes = [8, 64], strides = [1, 1]} : vector<8x256xf32> to vector<8x64xf32>
    %204 = arith.negf %203 : vector<8x64xf32>
    %205 = math.exp %204 : vector<8x64xf32>
    %cst_66 = arith.constant 1.000000e+00 : f32
    %206 = vector.broadcast %cst_66 : f32 to vector<8x64xf32>
    %207 = arith.addf %206, %205 : vector<8x64xf32>
    %208 = arith.divf %206, %207 : vector<8x64xf32>
    %209 = vector.extract_strided_slice %196 {offsets = [0, 128], sizes = [8, 64], strides = [1, 1]} : vector<8x256xf32> to vector<8x64xf32>
    %210 = math.tanh %209 : vector<8x64xf32>
    %211 = vector.extract_strided_slice %196 {offsets = [0, 192], sizes = [8, 64], strides = [1, 1]} : vector<8x256xf32> to vector<8x64xf32>
    %212 = arith.negf %211 : vector<8x64xf32>
    %213 = math.exp %212 : vector<8x64xf32>
    %cst_67 = arith.constant 1.000000e+00 : f32
    %214 = vector.broadcast %cst_67 : f32 to vector<8x64xf32>
    %215 = arith.addf %214, %213 : vector<8x64xf32>
    %216 = arith.divf %214, %215 : vector<8x64xf32>
    %217 = arith.mulf %208, %177 : vector<8x64xf32>
    %218 = arith.mulf %202, %210 : vector<8x64xf32>
    %219 = arith.addf %217, %218 : vector<8x64xf32>
    %220 = math.tanh %219 : vector<8x64xf32>
    %221 = arith.mulf %216, %220 : vector<8x64xf32>
    %222 = arith.index_cast %187 : i32 to index
    %c0_68 = arith.constant 0 : index
    %223 = vector.load %arg17[%222, %c0_68] : memref<64x64xf32, #tpu.memory_space<vmem>>, vector<8x64xf32>
    %cst_69 = arith.constant 0.000000e+00 : f32
    %224 = vector.broadcast %cst_69 : f32 to vector<8x64xf32>
    %225 = arith.cmpf ogt, %223, %224 : vector<8x64xf32>
    %226 = arith.select %225, %221, %176 : vector<8x64xi1>, vector<8x64xf32>
    %227 = arith.select %225, %219, %177 : vector<8x64xi1>, vector<8x64xf32>
    %228 = arith.mulf %221, %223 : vector<8x64xf32>
    %229 = vector.extract_strided_slice %228 {offsets = [0, 0], sizes = [8, 32], strides = [1, 1]} : vector<8x64xf32> to vector<8x32xf32>
    %230 = arith.index_cast %187 : i32 to index
    %c0_70 = arith.constant 0 : index
    %231 = vector.load %arg16[%230, %c0_70] : memref<64x64xf32, #tpu.memory_space<vmem>>, vector<8x32xf32>
    tpu.vector_store %arg16[%230, %c0_70], %229 {strides = array<i32>} : memref<64x64xf32, #tpu.memory_space<vmem>>, vector<8x32xf32>,
    %232 = vector.extract_strided_slice %228 {offsets = [0, 32], sizes = [8, 32], strides = [1, 1]} : vector<8x64xf32> to vector<8x32xf32>
    %233 = arith.index_cast %189 : i32 to index
    %c32_71 = arith.constant 32 : index
    %234 = vector.load %arg16[%233, %c32_71] : memref<64x64xf32, #tpu.memory_space<vmem>>, vector<8x32xf32>
    tpu.vector_store %arg16[%233, %c32_71], %232 {strides = array<i32>} : memref<64x64xf32, #tpu.memory_space<vmem>>, vector<8x32xf32>,
    %c4_i32 = arith.constant 4 : i32
    %c7_i32_72 = arith.constant 7 : i32
    %235 = arith.subi %c7_i32_72, %c4_i32 : i32
    %c8_i32_73 = arith.constant 8 : i32
    %236 = arith.muli %c4_i32, %c8_i32_73 : i32
    %237 = tpu.assume_multiple %236, 8 : i32
    %c8_i32_74 = arith.constant 8 : i32
    %238 = arith.muli %235, %c8_i32_74 : i32
    %239 = tpu.assume_multiple %238, 8 : i32
    %240 = arith.index_cast %237 : i32 to index
    %c0_75 = arith.constant 0 : index
    %241 = vector.load %arg14[%240, %c0_75] : memref<64x256xf32, #tpu.memory_space<vmem>>, vector<8x256xf32>
    %242 = arith.index_cast %239 : i32 to index
    %c0_76 = arith.constant 0 : index
    %243 = vector.load %arg15[%242, %c0_76] : memref<64x256xf32, #tpu.memory_space<vmem>>, vector<8x256xf32>
    %244 = arith.addf %241, %243 : vector<8x256xf32>
    %cst_77 = arith.constant dense<0.000000e+00> : vector<8x256xf32>
    %245 = tpu.matmul %226, %25, %cst_77 {dimension_numbers = #tpu.dot_dimension_numbers<[1], [0], [0], [1], [0, 0, 1, 1], [], []>} : vector<8x64xf32>, vector<64x256xf32>, vector<8x256xf32> -> vector<8x256xf32>
    %246 = arith.addf %244, %245 : vector<8x256xf32>
    %247 = vector.extract_strided_slice %246 {offsets = [0, 0], sizes = [8, 64], strides = [1, 1]} : vector<8x256xf32> to vector<8x64xf32>
    %248 = arith.negf %247 : vector<8x64xf32>
    %249 = math.exp %248 : vector<8x64xf32>
    %cst_78 = arith.constant 1.000000e+00 : f32
    %250 = vector.broadcast %cst_78 : f32 to vector<8x64xf32>
    %251 = arith.addf %250, %249 : vector<8x64xf32>
    %252 = arith.divf %250, %251 : vector<8x64xf32>
    %253 = vector.extract_strided_slice %246 {offsets = [0, 64], sizes = [8, 64], strides = [1, 1]} : vector<8x256xf32> to vector<8x64xf32>
    %254 = arith.negf %253 : vector<8x64xf32>
    %255 = math.exp %254 : vector<8x64xf32>
    %cst_79 = arith.constant 1.000000e+00 : f32
    %256 = vector.broadcast %cst_79 : f32 to vector<8x64xf32>
    %257 = arith.addf %256, %255 : vector<8x64xf32>
    %258 = arith.divf %256, %257 : vector<8x64xf32>
    %259 = vector.extract_strided_slice %246 {offsets = [0, 128], sizes = [8, 64], strides = [1, 1]} : vector<8x256xf32> to vector<8x64xf32>
    %260 = math.tanh %259 : vector<8x64xf32>
    %261 = vector.extract_strided_slice %246 {offsets = [0, 192], sizes = [8, 64], strides = [1, 1]} : vector<8x256xf32> to vector<8x64xf32>
    %262 = arith.negf %261 : vector<8x64xf32>
    %263 = math.exp %262 : vector<8x64xf32>
    %cst_80 = arith.constant 1.000000e+00 : f32
    %264 = vector.broadcast %cst_80 : f32 to vector<8x64xf32>
    %265 = arith.addf %264, %263 : vector<8x64xf32>
    %266 = arith.divf %264, %265 : vector<8x64xf32>
    %267 = arith.mulf %258, %227 : vector<8x64xf32>
    %268 = arith.mulf %252, %260 : vector<8x64xf32>
    %269 = arith.addf %267, %268 : vector<8x64xf32>
    %270 = math.tanh %269 : vector<8x64xf32>
    %271 = arith.mulf %266, %270 : vector<8x64xf32>
    %272 = arith.index_cast %237 : i32 to index
    %c0_81 = arith.constant 0 : index
    %273 = vector.load %arg17[%272, %c0_81] : memref<64x64xf32, #tpu.memory_space<vmem>>, vector<8x64xf32>
    %cst_82 = arith.constant 0.000000e+00 : f32
    %274 = vector.broadcast %cst_82 : f32 to vector<8x64xf32>
    %275 = arith.cmpf ogt, %273, %274 : vector<8x64xf32>
    %276 = arith.select %275, %271, %226 : vector<8x64xi1>, vector<8x64xf32>
    %277 = arith.select %275, %269, %227 : vector<8x64xi1>, vector<8x64xf32>
    %278 = arith.mulf %271, %273 : vector<8x64xf32>
    %279 = vector.extract_strided_slice %278 {offsets = [0, 0], sizes = [8, 32], strides = [1, 1]} : vector<8x64xf32> to vector<8x32xf32>
    %280 = arith.index_cast %237 : i32 to index
    %c0_83 = arith.constant 0 : index
    %281 = vector.load %arg16[%280, %c0_83] : memref<64x64xf32, #tpu.memory_space<vmem>>, vector<8x32xf32>
    tpu.vector_store %arg16[%280, %c0_83], %279 {strides = array<i32>} : memref<64x64xf32, #tpu.memory_space<vmem>>, vector<8x32xf32>,
    %282 = vector.extract_strided_slice %278 {offsets = [0, 32], sizes = [8, 32], strides = [1, 1]} : vector<8x64xf32> to vector<8x32xf32>
    %283 = arith.index_cast %239 : i32 to index
    %c32_84 = arith.constant 32 : index
    %284 = vector.load %arg16[%283, %c32_84] : memref<64x64xf32, #tpu.memory_space<vmem>>, vector<8x32xf32>
    tpu.vector_store %arg16[%283, %c32_84], %282 {strides = array<i32>} : memref<64x64xf32, #tpu.memory_space<vmem>>, vector<8x32xf32>,
    %c5_i32 = arith.constant 5 : i32
    %c7_i32_85 = arith.constant 7 : i32
    %285 = arith.subi %c7_i32_85, %c5_i32 : i32
    %c8_i32_86 = arith.constant 8 : i32
    %286 = arith.muli %c5_i32, %c8_i32_86 : i32
    %287 = tpu.assume_multiple %286, 8 : i32
    %c8_i32_87 = arith.constant 8 : i32
    %288 = arith.muli %285, %c8_i32_87 : i32
    %289 = tpu.assume_multiple %288, 8 : i32
    %290 = arith.index_cast %287 : i32 to index
    %c0_88 = arith.constant 0 : index
    %291 = vector.load %arg14[%290, %c0_88] : memref<64x256xf32, #tpu.memory_space<vmem>>, vector<8x256xf32>
    %292 = arith.index_cast %289 : i32 to index
    %c0_89 = arith.constant 0 : index
    %293 = vector.load %arg15[%292, %c0_89] : memref<64x256xf32, #tpu.memory_space<vmem>>, vector<8x256xf32>
    %294 = arith.addf %291, %293 : vector<8x256xf32>
    %cst_90 = arith.constant dense<0.000000e+00> : vector<8x256xf32>
    %295 = tpu.matmul %276, %25, %cst_90 {dimension_numbers = #tpu.dot_dimension_numbers<[1], [0], [0], [1], [0, 0, 1, 1], [], []>} : vector<8x64xf32>, vector<64x256xf32>, vector<8x256xf32> -> vector<8x256xf32>
    %296 = arith.addf %294, %295 : vector<8x256xf32>
    %297 = vector.extract_strided_slice %296 {offsets = [0, 0], sizes = [8, 64], strides = [1, 1]} : vector<8x256xf32> to vector<8x64xf32>
    %298 = arith.negf %297 : vector<8x64xf32>
    %299 = math.exp %298 : vector<8x64xf32>
    %cst_91 = arith.constant 1.000000e+00 : f32
    %300 = vector.broadcast %cst_91 : f32 to vector<8x64xf32>
    %301 = arith.addf %300, %299 : vector<8x64xf32>
    %302 = arith.divf %300, %301 : vector<8x64xf32>
    %303 = vector.extract_strided_slice %296 {offsets = [0, 64], sizes = [8, 64], strides = [1, 1]} : vector<8x256xf32> to vector<8x64xf32>
    %304 = arith.negf %303 : vector<8x64xf32>
    %305 = math.exp %304 : vector<8x64xf32>
    %cst_92 = arith.constant 1.000000e+00 : f32
    %306 = vector.broadcast %cst_92 : f32 to vector<8x64xf32>
    %307 = arith.addf %306, %305 : vector<8x64xf32>
    %308 = arith.divf %306, %307 : vector<8x64xf32>
    %309 = vector.extract_strided_slice %296 {offsets = [0, 128], sizes = [8, 64], strides = [1, 1]} : vector<8x256xf32> to vector<8x64xf32>
    %310 = math.tanh %309 : vector<8x64xf32>
    %311 = vector.extract_strided_slice %296 {offsets = [0, 192], sizes = [8, 64], strides = [1, 1]} : vector<8x256xf32> to vector<8x64xf32>
    %312 = arith.negf %311 : vector<8x64xf32>
    %313 = math.exp %312 : vector<8x64xf32>
    %cst_93 = arith.constant 1.000000e+00 : f32
    %314 = vector.broadcast %cst_93 : f32 to vector<8x64xf32>
    %315 = arith.addf %314, %313 : vector<8x64xf32>
    %316 = arith.divf %314, %315 : vector<8x64xf32>
    %317 = arith.mulf %308, %277 : vector<8x64xf32>
    %318 = arith.mulf %302, %310 : vector<8x64xf32>
    %319 = arith.addf %317, %318 : vector<8x64xf32>
    %320 = math.tanh %319 : vector<8x64xf32>
    %321 = arith.mulf %316, %320 : vector<8x64xf32>
    %322 = arith.index_cast %287 : i32 to index
    %c0_94 = arith.constant 0 : index
    %323 = vector.load %arg17[%322, %c0_94] : memref<64x64xf32, #tpu.memory_space<vmem>>, vector<8x64xf32>
    %cst_95 = arith.constant 0.000000e+00 : f32
    %324 = vector.broadcast %cst_95 : f32 to vector<8x64xf32>
    %325 = arith.cmpf ogt, %323, %324 : vector<8x64xf32>
    %326 = arith.select %325, %321, %276 : vector<8x64xi1>, vector<8x64xf32>
    %327 = arith.select %325, %319, %277 : vector<8x64xi1>, vector<8x64xf32>
    %328 = arith.mulf %321, %323 : vector<8x64xf32>
    %329 = vector.extract_strided_slice %328 {offsets = [0, 0], sizes = [8, 32], strides = [1, 1]} : vector<8x64xf32> to vector<8x32xf32>
    %330 = arith.index_cast %287 : i32 to index
    %c0_96 = arith.constant 0 : index
    %331 = vector.load %arg16[%330, %c0_96] : memref<64x64xf32, #tpu.memory_space<vmem>>, vector<8x32xf32>
    tpu.vector_store %arg16[%330, %c0_96], %329 {strides = array<i32>} : memref<64x64xf32, #tpu.memory_space<vmem>>, vector<8x32xf32>,
    %332 = vector.extract_strided_slice %328 {offsets = [0, 32], sizes = [8, 32], strides = [1, 1]} : vector<8x64xf32> to vector<8x32xf32>
    %333 = arith.index_cast %289 : i32 to index
    %c32_97 = arith.constant 32 : index
    %334 = vector.load %arg16[%333, %c32_97] : memref<64x64xf32, #tpu.memory_space<vmem>>, vector<8x32xf32>
    tpu.vector_store %arg16[%333, %c32_97], %332 {strides = array<i32>} : memref<64x64xf32, #tpu.memory_space<vmem>>, vector<8x32xf32>,
    %c6_i32 = arith.constant 6 : i32
    %c7_i32_98 = arith.constant 7 : i32
    %335 = arith.subi %c7_i32_98, %c6_i32 : i32
    %c8_i32_99 = arith.constant 8 : i32
    %336 = arith.muli %c6_i32, %c8_i32_99 : i32
    %337 = tpu.assume_multiple %336, 8 : i32
    %c8_i32_100 = arith.constant 8 : i32
    %338 = arith.muli %335, %c8_i32_100 : i32
    %339 = tpu.assume_multiple %338, 8 : i32
    %340 = arith.index_cast %337 : i32 to index
    %c0_101 = arith.constant 0 : index
    %341 = vector.load %arg14[%340, %c0_101] : memref<64x256xf32, #tpu.memory_space<vmem>>, vector<8x256xf32>
    %342 = arith.index_cast %339 : i32 to index
    %c0_102 = arith.constant 0 : index
    %343 = vector.load %arg15[%342, %c0_102] : memref<64x256xf32, #tpu.memory_space<vmem>>, vector<8x256xf32>
    %344 = arith.addf %341, %343 : vector<8x256xf32>
    %cst_103 = arith.constant dense<0.000000e+00> : vector<8x256xf32>
    %345 = tpu.matmul %326, %25, %cst_103 {dimension_numbers = #tpu.dot_dimension_numbers<[1], [0], [0], [1], [0, 0, 1, 1], [], []>} : vector<8x64xf32>, vector<64x256xf32>, vector<8x256xf32> -> vector<8x256xf32>
    %346 = arith.addf %344, %345 : vector<8x256xf32>
    %347 = vector.extract_strided_slice %346 {offsets = [0, 0], sizes = [8, 64], strides = [1, 1]} : vector<8x256xf32> to vector<8x64xf32>
    %348 = arith.negf %347 : vector<8x64xf32>
    %349 = math.exp %348 : vector<8x64xf32>
    %cst_104 = arith.constant 1.000000e+00 : f32
    %350 = vector.broadcast %cst_104 : f32 to vector<8x64xf32>
    %351 = arith.addf %350, %349 : vector<8x64xf32>
    %352 = arith.divf %350, %351 : vector<8x64xf32>
    %353 = vector.extract_strided_slice %346 {offsets = [0, 64], sizes = [8, 64], strides = [1, 1]} : vector<8x256xf32> to vector<8x64xf32>
    %354 = arith.negf %353 : vector<8x64xf32>
    %355 = math.exp %354 : vector<8x64xf32>
    %cst_105 = arith.constant 1.000000e+00 : f32
    %356 = vector.broadcast %cst_105 : f32 to vector<8x64xf32>
    %357 = arith.addf %356, %355 : vector<8x64xf32>
    %358 = arith.divf %356, %357 : vector<8x64xf32>
    %359 = vector.extract_strided_slice %346 {offsets = [0, 128], sizes = [8, 64], strides = [1, 1]} : vector<8x256xf32> to vector<8x64xf32>
    %360 = math.tanh %359 : vector<8x64xf32>
    %361 = vector.extract_strided_slice %346 {offsets = [0, 192], sizes = [8, 64], strides = [1, 1]} : vector<8x256xf32> to vector<8x64xf32>
    %362 = arith.negf %361 : vector<8x64xf32>
    %363 = math.exp %362 : vector<8x64xf32>
    %cst_106 = arith.constant 1.000000e+00 : f32
    %364 = vector.broadcast %cst_106 : f32 to vector<8x64xf32>
    %365 = arith.addf %364, %363 : vector<8x64xf32>
    %366 = arith.divf %364, %365 : vector<8x64xf32>
    %367 = arith.mulf %358, %327 : vector<8x64xf32>
    %368 = arith.mulf %352, %360 : vector<8x64xf32>
    %369 = arith.addf %367, %368 : vector<8x64xf32>
    %370 = math.tanh %369 : vector<8x64xf32>
    %371 = arith.mulf %366, %370 : vector<8x64xf32>
    %372 = arith.index_cast %337 : i32 to index
    %c0_107 = arith.constant 0 : index
    %373 = vector.load %arg17[%372, %c0_107] : memref<64x64xf32, #tpu.memory_space<vmem>>, vector<8x64xf32>
    %cst_108 = arith.constant 0.000000e+00 : f32
    %374 = vector.broadcast %cst_108 : f32 to vector<8x64xf32>
    %375 = arith.cmpf ogt, %373, %374 : vector<8x64xf32>
    %376 = arith.select %375, %371, %326 : vector<8x64xi1>, vector<8x64xf32>
    %377 = arith.select %375, %369, %327 : vector<8x64xi1>, vector<8x64xf32>
    %378 = arith.mulf %371, %373 : vector<8x64xf32>
    %379 = vector.extract_strided_slice %378 {offsets = [0, 0], sizes = [8, 32], strides = [1, 1]} : vector<8x64xf32> to vector<8x32xf32>
    %380 = arith.index_cast %337 : i32 to index
    %c0_109 = arith.constant 0 : index
    %381 = vector.load %arg16[%380, %c0_109] : memref<64x64xf32, #tpu.memory_space<vmem>>, vector<8x32xf32>
    tpu.vector_store %arg16[%380, %c0_109], %379 {strides = array<i32>} : memref<64x64xf32, #tpu.memory_space<vmem>>, vector<8x32xf32>,
    %382 = vector.extract_strided_slice %378 {offsets = [0, 32], sizes = [8, 32], strides = [1, 1]} : vector<8x64xf32> to vector<8x32xf32>
    %383 = arith.index_cast %339 : i32 to index
    %c32_110 = arith.constant 32 : index
    %384 = vector.load %arg16[%383, %c32_110] : memref<64x64xf32, #tpu.memory_space<vmem>>, vector<8x32xf32>
    tpu.vector_store %arg16[%383, %c32_110], %382 {strides = array<i32>} : memref<64x64xf32, #tpu.memory_space<vmem>>, vector<8x32xf32>,
    %c7_i32_111 = arith.constant 7 : i32
    %c7_i32_112 = arith.constant 7 : i32
    %385 = arith.subi %c7_i32_112, %c7_i32_111 : i32
    %c8_i32_113 = arith.constant 8 : i32
    %386 = arith.muli %c7_i32_111, %c8_i32_113 : i32
    %387 = tpu.assume_multiple %386, 8 : i32
    %c8_i32_114 = arith.constant 8 : i32
    %388 = arith.muli %385, %c8_i32_114 : i32
    %389 = tpu.assume_multiple %388, 8 : i32
    %390 = arith.index_cast %387 : i32 to index
    %c0_115 = arith.constant 0 : index
    %391 = vector.load %arg14[%390, %c0_115] : memref<64x256xf32, #tpu.memory_space<vmem>>, vector<8x256xf32>
    %392 = arith.index_cast %389 : i32 to index
    %c0_116 = arith.constant 0 : index
    %393 = vector.load %arg15[%392, %c0_116] : memref<64x256xf32, #tpu.memory_space<vmem>>, vector<8x256xf32>
    %394 = arith.addf %391, %393 : vector<8x256xf32>
    %cst_117 = arith.constant dense<0.000000e+00> : vector<8x256xf32>
    %395 = tpu.matmul %376, %25, %cst_117 {dimension_numbers = #tpu.dot_dimension_numbers<[1], [0], [0], [1], [0, 0, 1, 1], [], []>} : vector<8x64xf32>, vector<64x256xf32>, vector<8x256xf32> -> vector<8x256xf32>
    %396 = arith.addf %394, %395 : vector<8x256xf32>
    %397 = vector.extract_strided_slice %396 {offsets = [0, 0], sizes = [8, 64], strides = [1, 1]} : vector<8x256xf32> to vector<8x64xf32>
    %398 = arith.negf %397 : vector<8x64xf32>
    %399 = math.exp %398 : vector<8x64xf32>
    %cst_118 = arith.constant 1.000000e+00 : f32
    %400 = vector.broadcast %cst_118 : f32 to vector<8x64xf32>
    %401 = arith.addf %400, %399 : vector<8x64xf32>
    %402 = arith.divf %400, %401 : vector<8x64xf32>
    %403 = vector.extract_strided_slice %396 {offsets = [0, 64], sizes = [8, 64], strides = [1, 1]} : vector<8x256xf32> to vector<8x64xf32>
    %404 = arith.negf %403 : vector<8x64xf32>
    %405 = math.exp %404 : vector<8x64xf32>
    %cst_119 = arith.constant 1.000000e+00 : f32
    %406 = vector.broadcast %cst_119 : f32 to vector<8x64xf32>
    %407 = arith.addf %406, %405 : vector<8x64xf32>
    %408 = arith.divf %406, %407 : vector<8x64xf32>
    %409 = vector.extract_strided_slice %396 {offsets = [0, 128], sizes = [8, 64], strides = [1, 1]} : vector<8x256xf32> to vector<8x64xf32>
    %410 = math.tanh %409 : vector<8x64xf32>
    %411 = vector.extract_strided_slice %396 {offsets = [0, 192], sizes = [8, 64], strides = [1, 1]} : vector<8x256xf32> to vector<8x64xf32>
    %412 = arith.negf %411 : vector<8x64xf32>
    %413 = math.exp %412 : vector<8x64xf32>
    %cst_120 = arith.constant 1.000000e+00 : f32
    %414 = vector.broadcast %cst_120 : f32 to vector<8x64xf32>
    %415 = arith.addf %414, %413 : vector<8x64xf32>
    %416 = arith.divf %414, %415 : vector<8x64xf32>
    %417 = arith.mulf %408, %377 : vector<8x64xf32>
    %418 = arith.mulf %402, %410 : vector<8x64xf32>
    %419 = arith.addf %417, %418 : vector<8x64xf32>
    %420 = math.tanh %419 : vector<8x64xf32>
    %421 = arith.mulf %416, %420 : vector<8x64xf32>
    %422 = arith.index_cast %387 : i32 to index
    %c0_121 = arith.constant 0 : index
    %423 = vector.load %arg17[%422, %c0_121] : memref<64x64xf32, #tpu.memory_space<vmem>>, vector<8x64xf32>
    %cst_122 = arith.constant 0.000000e+00 : f32
    %424 = vector.broadcast %cst_122 : f32 to vector<8x64xf32>
    %425 = arith.cmpf ogt, %423, %424 : vector<8x64xf32>
    %426 = arith.select %425, %421, %376 : vector<8x64xi1>, vector<8x64xf32>
    %427 = arith.select %425, %419, %377 : vector<8x64xi1>, vector<8x64xf32>
    %428 = arith.mulf %421, %423 : vector<8x64xf32>
    %429 = vector.extract_strided_slice %428 {offsets = [0, 0], sizes = [8, 32], strides = [1, 1]} : vector<8x64xf32> to vector<8x32xf32>
    %430 = arith.index_cast %387 : i32 to index
    %c0_123 = arith.constant 0 : index
    %431 = vector.load %arg16[%430, %c0_123] : memref<64x64xf32, #tpu.memory_space<vmem>>, vector<8x32xf32>
    tpu.vector_store %arg16[%430, %c0_123], %429 {strides = array<i32>} : memref<64x64xf32, #tpu.memory_space<vmem>>, vector<8x32xf32>,
    %432 = vector.extract_strided_slice %428 {offsets = [0, 32], sizes = [8, 32], strides = [1, 1]} : vector<8x64xf32> to vector<8x32xf32>
    %433 = arith.index_cast %389 : i32 to index
    %c32_124 = arith.constant 32 : index
    %434 = vector.load %arg16[%433, %c32_124] : memref<64x64xf32, #tpu.memory_space<vmem>>, vector<8x32xf32>
    tpu.vector_store %arg16[%433, %c32_124], %432 {strides = array<i32>} : memref<64x64xf32, #tpu.memory_space<vmem>>, vector<8x32xf32>,
    %c8_i32_125 = arith.constant 8 : i32
    %c0_126 = arith.constant 0 : index
    %c0_127 = arith.constant 0 : index
    %435 = vector.load %arg16[%c0_126, %c0_127] : memref<64x64xf32, #tpu.memory_space<vmem>>, vector<64x64xf32>
    %c0_128 = arith.constant 0 : index
    %c0_129 = arith.constant 0 : index
    %436 = vector.load %arg7[%c0_128, %c0_129] : memref<64x256xf32, #tpu.memory_space<vmem>>, vector<64x256xf32>
    %c0_130 = arith.constant 0 : index
    %c0_131 = arith.constant 0 : index
    %437 = vector.load %arg8[%c0_130, %c0_131] : memref<64x256xf32, #tpu.memory_space<vmem>>, vector<64x256xf32>
    %c0_132 = arith.constant 0 : index
    %c0_133 = arith.constant 0 : index
    %438 = vector.load %arg9[%c0_132, %c0_133] : memref<64x256xf32, #tpu.memory_space<vmem>>, vector<64x256xf32>
    %c0_134 = arith.constant 0 : index
    %c0_135 = arith.constant 0 : index
    %439 = vector.load %arg10[%c0_134, %c0_135] : memref<1x256xf32, #tpu.memory_space<vmem>>, vector<1x256xf32>
    %cst_136 = arith.constant dense<0.000000e+00> : vector<64x256xf32>
    %440 = tpu.matmul %435, %436, %cst_136 {dimension_numbers = #tpu.dot_dimension_numbers<[1], [0], [0], [1], [0, 0, 1, 1], [], []>} : vector<64x64xf32>, vector<64x256xf32>, vector<64x256xf32> -> vector<64x256xf32>
    %441 = vector.broadcast %439 : vector<1x256xf32> to vector<64x256xf32>
    %442 = arith.addf %440, %441 : vector<64x256xf32>
    %c0_137 = arith.constant 0 : index
    %c0_138 = arith.constant 0 : index
    %443 = vector.load %arg14[%c0_137, %c0_138] : memref<64x256xf32, #tpu.memory_space<vmem>>, vector<64x256xf32>
    tpu.vector_store %arg14[%c0_137, %c0_138], %442 {strides = array<i32>} : memref<64x256xf32, #tpu.memory_space<vmem>>, vector<64x256xf32>,
    %cst_139 = arith.constant dense<0.000000e+00> : vector<64x256xf32>
    %444 = tpu.matmul %435, %437, %cst_139 {dimension_numbers = #tpu.dot_dimension_numbers<[1], [0], [0], [1], [0, 0, 1, 1], [], []>} : vector<64x64xf32>, vector<64x256xf32>, vector<64x256xf32> -> vector<64x256xf32>
    %c0_140 = arith.constant 0 : index
    %c0_141 = arith.constant 0 : index
    %445 = vector.load %arg15[%c0_140, %c0_141] : memref<64x256xf32, #tpu.memory_space<vmem>>, vector<64x256xf32>
    tpu.vector_store %arg15[%c0_140, %c0_141], %444 {strides = array<i32>} : memref<64x256xf32, #tpu.memory_space<vmem>>, vector<64x256xf32>,
    %cst_142 = arith.constant 0.000000e+00 : f32
    %446 = vector.broadcast %cst_142 : f32 to vector<8x64xf32>
    %cst_143 = arith.constant 0.000000e+00 : f32
    %447 = vector.broadcast %cst_143 : f32 to vector<8x64xf32>
    %c0_i32_144 = arith.constant 0 : i32
    %c7_i32_145 = arith.constant 7 : i32
    %448 = arith.subi %c7_i32_145, %c0_i32_144 : i32
    %c8_i32_146 = arith.constant 8 : i32
    %449 = arith.muli %c0_i32_144, %c8_i32_146 : i32
    %450 = tpu.assume_multiple %449, 8 : i32
    %c8_i32_147 = arith.constant 8 : i32
    %451 = arith.muli %448, %c8_i32_147 : i32
    %452 = tpu.assume_multiple %451, 8 : i32
    %453 = arith.index_cast %450 : i32 to index
    %c0_148 = arith.constant 0 : index
    %454 = vector.load %arg14[%453, %c0_148] : memref<64x256xf32, #tpu.memory_space<vmem>>, vector<8x256xf32>
    %455 = arith.index_cast %452 : i32 to index
    %c0_149 = arith.constant 0 : index
    %456 = vector.load %arg15[%455, %c0_149] : memref<64x256xf32, #tpu.memory_space<vmem>>, vector<8x256xf32>
    %457 = arith.addf %454, %456 : vector<8x256xf32>
    %cst_150 = arith.constant dense<0.000000e+00> : vector<8x256xf32>
    %458 = tpu.matmul %446, %438, %cst_150 {dimension_numbers = #tpu.dot_dimension_numbers<[1], [0], [0], [1], [0, 0, 1, 1], [], []>} : vector<8x64xf32>, vector<64x256xf32>, vector<8x256xf32> -> vector<8x256xf32>
    %459 = arith.addf %457, %458 : vector<8x256xf32>
    %460 = vector.extract_strided_slice %459 {offsets = [0, 0], sizes = [8, 64], strides = [1, 1]} : vector<8x256xf32> to vector<8x64xf32>
    %461 = arith.negf %460 : vector<8x64xf32>
    %462 = math.exp %461 : vector<8x64xf32>
    %cst_151 = arith.constant 1.000000e+00 : f32
    %463 = vector.broadcast %cst_151 : f32 to vector<8x64xf32>
    %464 = arith.addf %463, %462 : vector<8x64xf32>
    %465 = arith.divf %463, %464 : vector<8x64xf32>
    %466 = vector.extract_strided_slice %459 {offsets = [0, 64], sizes = [8, 64], strides = [1, 1]} : vector<8x256xf32> to vector<8x64xf32>
    %467 = arith.negf %466 : vector<8x64xf32>
    %468 = math.exp %467 : vector<8x64xf32>
    %cst_152 = arith.constant 1.000000e+00 : f32
    %469 = vector.broadcast %cst_152 : f32 to vector<8x64xf32>
    %470 = arith.addf %469, %468 : vector<8x64xf32>
    %471 = arith.divf %469, %470 : vector<8x64xf32>
    %472 = vector.extract_strided_slice %459 {offsets = [0, 128], sizes = [8, 64], strides = [1, 1]} : vector<8x256xf32> to vector<8x64xf32>
    %473 = math.tanh %472 : vector<8x64xf32>
    %474 = vector.extract_strided_slice %459 {offsets = [0, 192], sizes = [8, 64], strides = [1, 1]} : vector<8x256xf32> to vector<8x64xf32>
    %475 = arith.negf %474 : vector<8x64xf32>
    %476 = math.exp %475 : vector<8x64xf32>
    %cst_153 = arith.constant 1.000000e+00 : f32
    %477 = vector.broadcast %cst_153 : f32 to vector<8x64xf32>
    %478 = arith.addf %477, %476 : vector<8x64xf32>
    %479 = arith.divf %477, %478 : vector<8x64xf32>
    %480 = arith.mulf %471, %447 : vector<8x64xf32>
    %481 = arith.mulf %465, %473 : vector<8x64xf32>
    %482 = arith.addf %480, %481 : vector<8x64xf32>
    %483 = math.tanh %482 : vector<8x64xf32>
    %484 = arith.mulf %479, %483 : vector<8x64xf32>
    %485 = arith.index_cast %450 : i32 to index
    %c0_154 = arith.constant 0 : index
    %486 = vector.load %arg17[%485, %c0_154] : memref<64x64xf32, #tpu.memory_space<vmem>>, vector<8x64xf32>
    %cst_155 = arith.constant 0.000000e+00 : f32
    %487 = vector.broadcast %cst_155 : f32 to vector<8x64xf32>
    %488 = arith.cmpf ogt, %486, %487 : vector<8x64xf32>
    %489 = arith.select %488, %484, %446 : vector<8x64xi1>, vector<8x64xf32>
    %490 = arith.select %488, %482, %447 : vector<8x64xi1>, vector<8x64xf32>
    %c1_i32_156 = arith.constant 1 : i32
    %c7_i32_157 = arith.constant 7 : i32
    %491 = arith.subi %c7_i32_157, %c1_i32_156 : i32
    %c8_i32_158 = arith.constant 8 : i32
    %492 = arith.muli %c1_i32_156, %c8_i32_158 : i32
    %493 = tpu.assume_multiple %492, 8 : i32
    %c8_i32_159 = arith.constant 8 : i32
    %494 = arith.muli %491, %c8_i32_159 : i32
    %495 = tpu.assume_multiple %494, 8 : i32
    %496 = arith.index_cast %493 : i32 to index
    %c0_160 = arith.constant 0 : index
    %497 = vector.load %arg14[%496, %c0_160] : memref<64x256xf32, #tpu.memory_space<vmem>>, vector<8x256xf32>
    %498 = arith.index_cast %495 : i32 to index
    %c0_161 = arith.constant 0 : index
    %499 = vector.load %arg15[%498, %c0_161] : memref<64x256xf32, #tpu.memory_space<vmem>>, vector<8x256xf32>
    %500 = arith.addf %497, %499 : vector<8x256xf32>
    %cst_162 = arith.constant dense<0.000000e+00> : vector<8x256xf32>
    %501 = tpu.matmul %489, %438, %cst_162 {dimension_numbers = #tpu.dot_dimension_numbers<[1], [0], [0], [1], [0, 0, 1, 1], [], []>} : vector<8x64xf32>, vector<64x256xf32>, vector<8x256xf32> -> vector<8x256xf32>
    %502 = arith.addf %500, %501 : vector<8x256xf32>
    %503 = vector.extract_strided_slice %502 {offsets = [0, 0], sizes = [8, 64], strides = [1, 1]} : vector<8x256xf32> to vector<8x64xf32>
    %504 = arith.negf %503 : vector<8x64xf32>
    %505 = math.exp %504 : vector<8x64xf32>
    %cst_163 = arith.constant 1.000000e+00 : f32
    %506 = vector.broadcast %cst_163 : f32 to vector<8x64xf32>
    %507 = arith.addf %506, %505 : vector<8x64xf32>
    %508 = arith.divf %506, %507 : vector<8x64xf32>
    %509 = vector.extract_strided_slice %502 {offsets = [0, 64], sizes = [8, 64], strides = [1, 1]} : vector<8x256xf32> to vector<8x64xf32>
    %510 = arith.negf %509 : vector<8x64xf32>
    %511 = math.exp %510 : vector<8x64xf32>
    %cst_164 = arith.constant 1.000000e+00 : f32
    %512 = vector.broadcast %cst_164 : f32 to vector<8x64xf32>
    %513 = arith.addf %512, %511 : vector<8x64xf32>
    %514 = arith.divf %512, %513 : vector<8x64xf32>
    %515 = vector.extract_strided_slice %502 {offsets = [0, 128], sizes = [8, 64], strides = [1, 1]} : vector<8x256xf32> to vector<8x64xf32>
    %516 = math.tanh %515 : vector<8x64xf32>
    %517 = vector.extract_strided_slice %502 {offsets = [0, 192], sizes = [8, 64], strides = [1, 1]} : vector<8x256xf32> to vector<8x64xf32>
    %518 = arith.negf %517 : vector<8x64xf32>
    %519 = math.exp %518 : vector<8x64xf32>
    %cst_165 = arith.constant 1.000000e+00 : f32
    %520 = vector.broadcast %cst_165 : f32 to vector<8x64xf32>
    %521 = arith.addf %520, %519 : vector<8x64xf32>
    %522 = arith.divf %520, %521 : vector<8x64xf32>
    %523 = arith.mulf %514, %490 : vector<8x64xf32>
    %524 = arith.mulf %508, %516 : vector<8x64xf32>
    %525 = arith.addf %523, %524 : vector<8x64xf32>
    %526 = math.tanh %525 : vector<8x64xf32>
    %527 = arith.mulf %522, %526 : vector<8x64xf32>
    %528 = arith.index_cast %493 : i32 to index
    %c0_166 = arith.constant 0 : index
    %529 = vector.load %arg17[%528, %c0_166] : memref<64x64xf32, #tpu.memory_space<vmem>>, vector<8x64xf32>
    %cst_167 = arith.constant 0.000000e+00 : f32
    %530 = vector.broadcast %cst_167 : f32 to vector<8x64xf32>
    %531 = arith.cmpf ogt, %529, %530 : vector<8x64xf32>
    %532 = arith.select %531, %527, %489 : vector<8x64xi1>, vector<8x64xf32>
    %533 = arith.select %531, %525, %490 : vector<8x64xi1>, vector<8x64xf32>
    %c2_i32_168 = arith.constant 2 : i32
    %c7_i32_169 = arith.constant 7 : i32
    %534 = arith.subi %c7_i32_169, %c2_i32_168 : i32
    %c8_i32_170 = arith.constant 8 : i32
    %535 = arith.muli %c2_i32_168, %c8_i32_170 : i32
    %536 = tpu.assume_multiple %535, 8 : i32
    %c8_i32_171 = arith.constant 8 : i32
    %537 = arith.muli %534, %c8_i32_171 : i32
    %538 = tpu.assume_multiple %537, 8 : i32
    %539 = arith.index_cast %536 : i32 to index
    %c0_172 = arith.constant 0 : index
    %540 = vector.load %arg14[%539, %c0_172] : memref<64x256xf32, #tpu.memory_space<vmem>>, vector<8x256xf32>
    %541 = arith.index_cast %538 : i32 to index
    %c0_173 = arith.constant 0 : index
    %542 = vector.load %arg15[%541, %c0_173] : memref<64x256xf32, #tpu.memory_space<vmem>>, vector<8x256xf32>
    %543 = arith.addf %540, %542 : vector<8x256xf32>
    %cst_174 = arith.constant dense<0.000000e+00> : vector<8x256xf32>
    %544 = tpu.matmul %532, %438, %cst_174 {dimension_numbers = #tpu.dot_dimension_numbers<[1], [0], [0], [1], [0, 0, 1, 1], [], []>} : vector<8x64xf32>, vector<64x256xf32>, vector<8x256xf32> -> vector<8x256xf32>
    %545 = arith.addf %543, %544 : vector<8x256xf32>
    %546 = vector.extract_strided_slice %545 {offsets = [0, 0], sizes = [8, 64], strides = [1, 1]} : vector<8x256xf32> to vector<8x64xf32>
    %547 = arith.negf %546 : vector<8x64xf32>
    %548 = math.exp %547 : vector<8x64xf32>
    %cst_175 = arith.constant 1.000000e+00 : f32
    %549 = vector.broadcast %cst_175 : f32 to vector<8x64xf32>
    %550 = arith.addf %549, %548 : vector<8x64xf32>
    %551 = arith.divf %549, %550 : vector<8x64xf32>
    %552 = vector.extract_strided_slice %545 {offsets = [0, 64], sizes = [8, 64], strides = [1, 1]} : vector<8x256xf32> to vector<8x64xf32>
    %553 = arith.negf %552 : vector<8x64xf32>
    %554 = math.exp %553 : vector<8x64xf32>
    %cst_176 = arith.constant 1.000000e+00 : f32
    %555 = vector.broadcast %cst_176 : f32 to vector<8x64xf32>
    %556 = arith.addf %555, %554 : vector<8x64xf32>
    %557 = arith.divf %555, %556 : vector<8x64xf32>
    %558 = vector.extract_strided_slice %545 {offsets = [0, 128], sizes = [8, 64], strides = [1, 1]} : vector<8x256xf32> to vector<8x64xf32>
    %559 = math.tanh %558 : vector<8x64xf32>
    %560 = vector.extract_strided_slice %545 {offsets = [0, 192], sizes = [8, 64], strides = [1, 1]} : vector<8x256xf32> to vector<8x64xf32>
    %561 = arith.negf %560 : vector<8x64xf32>
    %562 = math.exp %561 : vector<8x64xf32>
    %cst_177 = arith.constant 1.000000e+00 : f32
    %563 = vector.broadcast %cst_177 : f32 to vector<8x64xf32>
    %564 = arith.addf %563, %562 : vector<8x64xf32>
    %565 = arith.divf %563, %564 : vector<8x64xf32>
    %566 = arith.mulf %557, %533 : vector<8x64xf32>
    %567 = arith.mulf %551, %559 : vector<8x64xf32>
    %568 = arith.addf %566, %567 : vector<8x64xf32>
    %569 = math.tanh %568 : vector<8x64xf32>
    %570 = arith.mulf %565, %569 : vector<8x64xf32>
    %571 = arith.index_cast %536 : i32 to index
    %c0_178 = arith.constant 0 : index
    %572 = vector.load %arg17[%571, %c0_178] : memref<64x64xf32, #tpu.memory_space<vmem>>, vector<8x64xf32>
    %cst_179 = arith.constant 0.000000e+00 : f32
    %573 = vector.broadcast %cst_179 : f32 to vector<8x64xf32>
    %574 = arith.cmpf ogt, %572, %573 : vector<8x64xf32>
    %575 = arith.select %574, %570, %532 : vector<8x64xi1>, vector<8x64xf32>
    %576 = arith.select %574, %568, %533 : vector<8x64xi1>, vector<8x64xf32>
    %c3_i32_180 = arith.constant 3 : i32
    %c7_i32_181 = arith.constant 7 : i32
    %577 = arith.subi %c7_i32_181, %c3_i32_180 : i32
    %c8_i32_182 = arith.constant 8 : i32
    %578 = arith.muli %c3_i32_180, %c8_i32_182 : i32
    %579 = tpu.assume_multiple %578, 8 : i32
    %c8_i32_183 = arith.constant 8 : i32
    %580 = arith.muli %577, %c8_i32_183 : i32
    %581 = tpu.assume_multiple %580, 8 : i32
    %582 = arith.index_cast %579 : i32 to index
    %c0_184 = arith.constant 0 : index
    %583 = vector.load %arg14[%582, %c0_184] : memref<64x256xf32, #tpu.memory_space<vmem>>, vector<8x256xf32>
    %584 = arith.index_cast %581 : i32 to index
    %c0_185 = arith.constant 0 : index
    %585 = vector.load %arg15[%584, %c0_185] : memref<64x256xf32, #tpu.memory_space<vmem>>, vector<8x256xf32>
    %586 = arith.addf %583, %585 : vector<8x256xf32>
    %cst_186 = arith.constant dense<0.000000e+00> : vector<8x256xf32>
    %587 = tpu.matmul %575, %438, %cst_186 {dimension_numbers = #tpu.dot_dimension_numbers<[1], [0], [0], [1], [0, 0, 1, 1], [], []>} : vector<8x64xf32>, vector<64x256xf32>, vector<8x256xf32> -> vector<8x256xf32>
    %588 = arith.addf %586, %587 : vector<8x256xf32>
    %589 = vector.extract_strided_slice %588 {offsets = [0, 0], sizes = [8, 64], strides = [1, 1]} : vector<8x256xf32> to vector<8x64xf32>
    %590 = arith.negf %589 : vector<8x64xf32>
    %591 = math.exp %590 : vector<8x64xf32>
    %cst_187 = arith.constant 1.000000e+00 : f32
    %592 = vector.broadcast %cst_187 : f32 to vector<8x64xf32>
    %593 = arith.addf %592, %591 : vector<8x64xf32>
    %594 = arith.divf %592, %593 : vector<8x64xf32>
    %595 = vector.extract_strided_slice %588 {offsets = [0, 64], sizes = [8, 64], strides = [1, 1]} : vector<8x256xf32> to vector<8x64xf32>
    %596 = arith.negf %595 : vector<8x64xf32>
    %597 = math.exp %596 : vector<8x64xf32>
    %cst_188 = arith.constant 1.000000e+00 : f32
    %598 = vector.broadcast %cst_188 : f32 to vector<8x64xf32>
    %599 = arith.addf %598, %597 : vector<8x64xf32>
    %600 = arith.divf %598, %599 : vector<8x64xf32>
    %601 = vector.extract_strided_slice %588 {offsets = [0, 128], sizes = [8, 64], strides = [1, 1]} : vector<8x256xf32> to vector<8x64xf32>
    %602 = math.tanh %601 : vector<8x64xf32>
    %603 = vector.extract_strided_slice %588 {offsets = [0, 192], sizes = [8, 64], strides = [1, 1]} : vector<8x256xf32> to vector<8x64xf32>
    %604 = arith.negf %603 : vector<8x64xf32>
    %605 = math.exp %604 : vector<8x64xf32>
    %cst_189 = arith.constant 1.000000e+00 : f32
    %606 = vector.broadcast %cst_189 : f32 to vector<8x64xf32>
    %607 = arith.addf %606, %605 : vector<8x64xf32>
    %608 = arith.divf %606, %607 : vector<8x64xf32>
    %609 = arith.mulf %600, %576 : vector<8x64xf32>
    %610 = arith.mulf %594, %602 : vector<8x64xf32>
    %611 = arith.addf %609, %610 : vector<8x64xf32>
    %612 = math.tanh %611 : vector<8x64xf32>
    %613 = arith.mulf %608, %612 : vector<8x64xf32>
    %614 = arith.index_cast %579 : i32 to index
    %c0_190 = arith.constant 0 : index
    %615 = vector.load %arg17[%614, %c0_190] : memref<64x64xf32, #tpu.memory_space<vmem>>, vector<8x64xf32>
    %cst_191 = arith.constant 0.000000e+00 : f32
    %616 = vector.broadcast %cst_191 : f32 to vector<8x64xf32>
    %617 = arith.cmpf ogt, %615, %616 : vector<8x64xf32>
    %618 = arith.select %617, %613, %575 : vector<8x64xi1>, vector<8x64xf32>
    %619 = arith.select %617, %611, %576 : vector<8x64xi1>, vector<8x64xf32>
    %c4_i32_192 = arith.constant 4 : i32
    %c7_i32_193 = arith.constant 7 : i32
    %620 = arith.subi %c7_i32_193, %c4_i32_192 : i32
    %c8_i32_194 = arith.constant 8 : i32
    %621 = arith.muli %c4_i32_192, %c8_i32_194 : i32
    %622 = tpu.assume_multiple %621, 8 : i32
    %c8_i32_195 = arith.constant 8 : i32
    %623 = arith.muli %620, %c8_i32_195 : i32
    %624 = tpu.assume_multiple %623, 8 : i32
    %625 = arith.index_cast %622 : i32 to index
    %c0_196 = arith.constant 0 : index
    %626 = vector.load %arg14[%625, %c0_196] : memref<64x256xf32, #tpu.memory_space<vmem>>, vector<8x256xf32>
    %627 = arith.index_cast %624 : i32 to index
    %c0_197 = arith.constant 0 : index
    %628 = vector.load %arg15[%627, %c0_197] : memref<64x256xf32, #tpu.memory_space<vmem>>, vector<8x256xf32>
    %629 = arith.addf %626, %628 : vector<8x256xf32>
    %cst_198 = arith.constant dense<0.000000e+00> : vector<8x256xf32>
    %630 = tpu.matmul %618, %438, %cst_198 {dimension_numbers = #tpu.dot_dimension_numbers<[1], [0], [0], [1], [0, 0, 1, 1], [], []>} : vector<8x64xf32>, vector<64x256xf32>, vector<8x256xf32> -> vector<8x256xf32>
    %631 = arith.addf %629, %630 : vector<8x256xf32>
    %632 = vector.extract_strided_slice %631 {offsets = [0, 0], sizes = [8, 64], strides = [1, 1]} : vector<8x256xf32> to vector<8x64xf32>
    %633 = arith.negf %632 : vector<8x64xf32>
    %634 = math.exp %633 : vector<8x64xf32>
    %cst_199 = arith.constant 1.000000e+00 : f32
    %635 = vector.broadcast %cst_199 : f32 to vector<8x64xf32>
    %636 = arith.addf %635, %634 : vector<8x64xf32>
    %637 = arith.divf %635, %636 : vector<8x64xf32>
    %638 = vector.extract_strided_slice %631 {offsets = [0, 64], sizes = [8, 64], strides = [1, 1]} : vector<8x256xf32> to vector<8x64xf32>
    %639 = arith.negf %638 : vector<8x64xf32>
    %640 = math.exp %639 : vector<8x64xf32>
    %cst_200 = arith.constant 1.000000e+00 : f32
    %641 = vector.broadcast %cst_200 : f32 to vector<8x64xf32>
    %642 = arith.addf %641, %640 : vector<8x64xf32>
    %643 = arith.divf %641, %642 : vector<8x64xf32>
    %644 = vector.extract_strided_slice %631 {offsets = [0, 128], sizes = [8, 64], strides = [1, 1]} : vector<8x256xf32> to vector<8x64xf32>
    %645 = math.tanh %644 : vector<8x64xf32>
    %646 = vector.extract_strided_slice %631 {offsets = [0, 192], sizes = [8, 64], strides = [1, 1]} : vector<8x256xf32> to vector<8x64xf32>
    %647 = arith.negf %646 : vector<8x64xf32>
    %648 = math.exp %647 : vector<8x64xf32>
    %cst_201 = arith.constant 1.000000e+00 : f32
    %649 = vector.broadcast %cst_201 : f32 to vector<8x64xf32>
    %650 = arith.addf %649, %648 : vector<8x64xf32>
    %651 = arith.divf %649, %650 : vector<8x64xf32>
    %652 = arith.mulf %643, %619 : vector<8x64xf32>
    %653 = arith.mulf %637, %645 : vector<8x64xf32>
    %654 = arith.addf %652, %653 : vector<8x64xf32>
    %655 = math.tanh %654 : vector<8x64xf32>
    %656 = arith.mulf %651, %655 : vector<8x64xf32>
    %657 = arith.index_cast %622 : i32 to index
    %c0_202 = arith.constant 0 : index
    %658 = vector.load %arg17[%657, %c0_202] : memref<64x64xf32, #tpu.memory_space<vmem>>, vector<8x64xf32>
    %cst_203 = arith.constant 0.000000e+00 : f32
    %659 = vector.broadcast %cst_203 : f32 to vector<8x64xf32>
    %660 = arith.cmpf ogt, %658, %659 : vector<8x64xf32>
    %661 = arith.select %660, %656, %618 : vector<8x64xi1>, vector<8x64xf32>
    %662 = arith.select %660, %654, %619 : vector<8x64xi1>, vector<8x64xf32>
    %c5_i32_204 = arith.constant 5 : i32
    %c7_i32_205 = arith.constant 7 : i32
    %663 = arith.subi %c7_i32_205, %c5_i32_204 : i32
    %c8_i32_206 = arith.constant 8 : i32
    %664 = arith.muli %c5_i32_204, %c8_i32_206 : i32
    %665 = tpu.assume_multiple %664, 8 : i32
    %c8_i32_207 = arith.constant 8 : i32
    %666 = arith.muli %663, %c8_i32_207 : i32
    %667 = tpu.assume_multiple %666, 8 : i32
    %668 = arith.index_cast %665 : i32 to index
    %c0_208 = arith.constant 0 : index
    %669 = vector.load %arg14[%668, %c0_208] : memref<64x256xf32, #tpu.memory_space<vmem>>, vector<8x256xf32>
    %670 = arith.index_cast %667 : i32 to index
    %c0_209 = arith.constant 0 : index
    %671 = vector.load %arg15[%670, %c0_209] : memref<64x256xf32, #tpu.memory_space<vmem>>, vector<8x256xf32>
    %672 = arith.addf %669, %671 : vector<8x256xf32>
    %cst_210 = arith.constant dense<0.000000e+00> : vector<8x256xf32>
    %673 = tpu.matmul %661, %438, %cst_210 {dimension_numbers = #tpu.dot_dimension_numbers<[1], [0], [0], [1], [0, 0, 1, 1], [], []>} : vector<8x64xf32>, vector<64x256xf32>, vector<8x256xf32> -> vector<8x256xf32>
    %674 = arith.addf %672, %673 : vector<8x256xf32>
    %675 = vector.extract_strided_slice %674 {offsets = [0, 0], sizes = [8, 64], strides = [1, 1]} : vector<8x256xf32> to vector<8x64xf32>
    %676 = arith.negf %675 : vector<8x64xf32>
    %677 = math.exp %676 : vector<8x64xf32>
    %cst_211 = arith.constant 1.000000e+00 : f32
    %678 = vector.broadcast %cst_211 : f32 to vector<8x64xf32>
    %679 = arith.addf %678, %677 : vector<8x64xf32>
    %680 = arith.divf %678, %679 : vector<8x64xf32>
    %681 = vector.extract_strided_slice %674 {offsets = [0, 64], sizes = [8, 64], strides = [1, 1]} : vector<8x256xf32> to vector<8x64xf32>
    %682 = arith.negf %681 : vector<8x64xf32>
    %683 = math.exp %682 : vector<8x64xf32>
    %cst_212 = arith.constant 1.000000e+00 : f32
    %684 = vector.broadcast %cst_212 : f32 to vector<8x64xf32>
    %685 = arith.addf %684, %683 : vector<8x64xf32>
    %686 = arith.divf %684, %685 : vector<8x64xf32>
    %687 = vector.extract_strided_slice %674 {offsets = [0, 128], sizes = [8, 64], strides = [1, 1]} : vector<8x256xf32> to vector<8x64xf32>
    %688 = math.tanh %687 : vector<8x64xf32>
    %689 = vector.extract_strided_slice %674 {offsets = [0, 192], sizes = [8, 64], strides = [1, 1]} : vector<8x256xf32> to vector<8x64xf32>
    %690 = arith.negf %689 : vector<8x64xf32>
    %691 = math.exp %690 : vector<8x64xf32>
    %cst_213 = arith.constant 1.000000e+00 : f32
    %692 = vector.broadcast %cst_213 : f32 to vector<8x64xf32>
    %693 = arith.addf %692, %691 : vector<8x64xf32>
    %694 = arith.divf %692, %693 : vector<8x64xf32>
    %695 = arith.mulf %686, %662 : vector<8x64xf32>
    %696 = arith.mulf %680, %688 : vector<8x64xf32>
    %697 = arith.addf %695, %696 : vector<8x64xf32>
    %698 = math.tanh %697 : vector<8x64xf32>
    %699 = arith.mulf %694, %698 : vector<8x64xf32>
    %700 = arith.index_cast %665 : i32 to index
    %c0_214 = arith.constant 0 : index
    %701 = vector.load %arg17[%700, %c0_214] : memref<64x64xf32, #tpu.memory_space<vmem>>, vector<8x64xf32>
    %cst_215 = arith.constant 0.000000e+00 : f32
    %702 = vector.broadcast %cst_215 : f32 to vector<8x64xf32>
    %703 = arith.cmpf ogt, %701, %702 : vector<8x64xf32>
    %704 = arith.select %703, %699, %661 : vector<8x64xi1>, vector<8x64xf32>
    %705 = arith.select %703, %697, %662 : vector<8x64xi1>, vector<8x64xf32>
    %c6_i32_216 = arith.constant 6 : i32
    %c7_i32_217 = arith.constant 7 : i32
    %706 = arith.subi %c7_i32_217, %c6_i32_216 : i32
    %c8_i32_218 = arith.constant 8 : i32
    %707 = arith.muli %c6_i32_216, %c8_i32_218 : i32
    %708 = tpu.assume_multiple %707, 8 : i32
    %c8_i32_219 = arith.constant 8 : i32
    %709 = arith.muli %706, %c8_i32_219 : i32
    %710 = tpu.assume_multiple %709, 8 : i32
    %711 = arith.index_cast %708 : i32 to index
    %c0_220 = arith.constant 0 : index
    %712 = vector.load %arg14[%711, %c0_220] : memref<64x256xf32, #tpu.memory_space<vmem>>, vector<8x256xf32>
    %713 = arith.index_cast %710 : i32 to index
    %c0_221 = arith.constant 0 : index
    %714 = vector.load %arg15[%713, %c0_221] : memref<64x256xf32, #tpu.memory_space<vmem>>, vector<8x256xf32>
    %715 = arith.addf %712, %714 : vector<8x256xf32>
    %cst_222 = arith.constant dense<0.000000e+00> : vector<8x256xf32>
    %716 = tpu.matmul %704, %438, %cst_222 {dimension_numbers = #tpu.dot_dimension_numbers<[1], [0], [0], [1], [0, 0, 1, 1], [], []>} : vector<8x64xf32>, vector<64x256xf32>, vector<8x256xf32> -> vector<8x256xf32>
    %717 = arith.addf %715, %716 : vector<8x256xf32>
    %718 = vector.extract_strided_slice %717 {offsets = [0, 0], sizes = [8, 64], strides = [1, 1]} : vector<8x256xf32> to vector<8x64xf32>
    %719 = arith.negf %718 : vector<8x64xf32>
    %720 = math.exp %719 : vector<8x64xf32>
    %cst_223 = arith.constant 1.000000e+00 : f32
    %721 = vector.broadcast %cst_223 : f32 to vector<8x64xf32>
    %722 = arith.addf %721, %720 : vector<8x64xf32>
    %723 = arith.divf %721, %722 : vector<8x64xf32>
    %724 = vector.extract_strided_slice %717 {offsets = [0, 64], sizes = [8, 64], strides = [1, 1]} : vector<8x256xf32> to vector<8x64xf32>
    %725 = arith.negf %724 : vector<8x64xf32>
    %726 = math.exp %725 : vector<8x64xf32>
    %cst_224 = arith.constant 1.000000e+00 : f32
    %727 = vector.broadcast %cst_224 : f32 to vector<8x64xf32>
    %728 = arith.addf %727, %726 : vector<8x64xf32>
    %729 = arith.divf %727, %728 : vector<8x64xf32>
    %730 = vector.extract_strided_slice %717 {offsets = [0, 128], sizes = [8, 64], strides = [1, 1]} : vector<8x256xf32> to vector<8x64xf32>
    %731 = math.tanh %730 : vector<8x64xf32>
    %732 = vector.extract_strided_slice %717 {offsets = [0, 192], sizes = [8, 64], strides = [1, 1]} : vector<8x256xf32> to vector<8x64xf32>
    %733 = arith.negf %732 : vector<8x64xf32>
    %734 = math.exp %733 : vector<8x64xf32>
    %cst_225 = arith.constant 1.000000e+00 : f32
    %735 = vector.broadcast %cst_225 : f32 to vector<8x64xf32>
    %736 = arith.addf %735, %734 : vector<8x64xf32>
    %737 = arith.divf %735, %736 : vector<8x64xf32>
    %738 = arith.mulf %729, %705 : vector<8x64xf32>
    %739 = arith.mulf %723, %731 : vector<8x64xf32>
    %740 = arith.addf %738, %739 : vector<8x64xf32>
    %741 = math.tanh %740 : vector<8x64xf32>
    %742 = arith.mulf %737, %741 : vector<8x64xf32>
    %743 = arith.index_cast %708 : i32 to index
    %c0_226 = arith.constant 0 : index
    %744 = vector.load %arg17[%743, %c0_226] : memref<64x64xf32, #tpu.memory_space<vmem>>, vector<8x64xf32>
    %cst_227 = arith.constant 0.000000e+00 : f32
    %745 = vector.broadcast %cst_227 : f32 to vector<8x64xf32>
    %746 = arith.cmpf ogt, %744, %745 : vector<8x64xf32>
    %747 = arith.select %746, %742, %704 : vector<8x64xi1>, vector<8x64xf32>
    %748 = arith.select %746, %740, %705 : vector<8x64xi1>, vector<8x64xf32>
    %c7_i32_228 = arith.constant 7 : i32
    %c7_i32_229 = arith.constant 7 : i32
    %749 = arith.subi %c7_i32_229, %c7_i32_228 : i32
    %c8_i32_230 = arith.constant 8 : i32
    %750 = arith.muli %c7_i32_228, %c8_i32_230 : i32
    %751 = tpu.assume_multiple %750, 8 : i32
    %c8_i32_231 = arith.constant 8 : i32
    %752 = arith.muli %749, %c8_i32_231 : i32
    %753 = tpu.assume_multiple %752, 8 : i32
    %754 = arith.index_cast %751 : i32 to index
    %c0_232 = arith.constant 0 : index
    %755 = vector.load %arg14[%754, %c0_232] : memref<64x256xf32, #tpu.memory_space<vmem>>, vector<8x256xf32>
    %756 = arith.index_cast %753 : i32 to index
    %c0_233 = arith.constant 0 : index
    %757 = vector.load %arg15[%756, %c0_233] : memref<64x256xf32, #tpu.memory_space<vmem>>, vector<8x256xf32>
    %758 = arith.addf %755, %757 : vector<8x256xf32>
    %cst_234 = arith.constant dense<0.000000e+00> : vector<8x256xf32>
    %759 = tpu.matmul %747, %438, %cst_234 {dimension_numbers = #tpu.dot_dimension_numbers<[1], [0], [0], [1], [0, 0, 1, 1], [], []>} : vector<8x64xf32>, vector<64x256xf32>, vector<8x256xf32> -> vector<8x256xf32>
    %760 = arith.addf %758, %759 : vector<8x256xf32>
    %761 = vector.extract_strided_slice %760 {offsets = [0, 0], sizes = [8, 64], strides = [1, 1]} : vector<8x256xf32> to vector<8x64xf32>
    %762 = arith.negf %761 : vector<8x64xf32>
    %763 = math.exp %762 : vector<8x64xf32>
    %cst_235 = arith.constant 1.000000e+00 : f32
    %764 = vector.broadcast %cst_235 : f32 to vector<8x64xf32>
    %765 = arith.addf %764, %763 : vector<8x64xf32>
    %766 = arith.divf %764, %765 : vector<8x64xf32>
    %767 = vector.extract_strided_slice %760 {offsets = [0, 64], sizes = [8, 64], strides = [1, 1]} : vector<8x256xf32> to vector<8x64xf32>
    %768 = arith.negf %767 : vector<8x64xf32>
    %769 = math.exp %768 : vector<8x64xf32>
    %cst_236 = arith.constant 1.000000e+00 : f32
    %770 = vector.broadcast %cst_236 : f32 to vector<8x64xf32>
    %771 = arith.addf %770, %769 : vector<8x64xf32>
    %772 = arith.divf %770, %771 : vector<8x64xf32>
    %773 = vector.extract_strided_slice %760 {offsets = [0, 128], sizes = [8, 64], strides = [1, 1]} : vector<8x256xf32> to vector<8x64xf32>
    %774 = math.tanh %773 : vector<8x64xf32>
    %775 = vector.extract_strided_slice %760 {offsets = [0, 192], sizes = [8, 64], strides = [1, 1]} : vector<8x256xf32> to vector<8x64xf32>
    %776 = arith.negf %775 : vector<8x64xf32>
    %777 = math.exp %776 : vector<8x64xf32>
    %cst_237 = arith.constant 1.000000e+00 : f32
    %778 = vector.broadcast %cst_237 : f32 to vector<8x64xf32>
    %779 = arith.addf %778, %777 : vector<8x64xf32>
    %780 = arith.divf %778, %779 : vector<8x64xf32>
    %781 = arith.mulf %772, %748 : vector<8x64xf32>
    %782 = arith.mulf %766, %774 : vector<8x64xf32>
    %783 = arith.addf %781, %782 : vector<8x64xf32>
    %784 = math.tanh %783 : vector<8x64xf32>
    %785 = arith.mulf %780, %784 : vector<8x64xf32>
    %786 = arith.index_cast %751 : i32 to index
    %c0_238 = arith.constant 0 : index
    %787 = vector.load %arg17[%786, %c0_238] : memref<64x64xf32, #tpu.memory_space<vmem>>, vector<8x64xf32>
    %cst_239 = arith.constant 0.000000e+00 : f32
    %788 = vector.broadcast %cst_239 : f32 to vector<8x64xf32>
    %789 = arith.cmpf ogt, %787, %788 : vector<8x64xf32>
    %790 = arith.select %789, %785, %747 : vector<8x64xi1>, vector<8x64xf32>
    %791 = arith.select %789, %783, %748 : vector<8x64xi1>, vector<8x64xf32>
    %c8_i32_240 = arith.constant 8 : i32
    %c0_241 = arith.constant 0 : index
    %c0_242 = arith.constant 0 : index
    %792 = vector.load %arg11[%c0_241, %c0_242] : memref<64x2xf32, #tpu.memory_space<vmem>>, vector<64x2xf32>
    %cst_243 = arith.constant dense<0.000000e+00> : vector<8x2xf32>
    %793 = tpu.matmul %790, %792, %cst_243 {dimension_numbers = #tpu.dot_dimension_numbers<[1], [0], [0], [1], [0, 0, 1, 1], [], []>} : vector<8x64xf32>, vector<64x2xf32>, vector<8x2xf32> -> vector<8x2xf32>
    %c0_244 = arith.constant 0 : index
    %c0_245 = arith.constant 0 : index
    %794 = vector.load %arg12[%c0_244, %c0_245] : memref<1x2xf32, #tpu.memory_space<vmem>>, vector<1x2xf32>
    %795 = vector.broadcast %794 : vector<1x2xf32> to vector<8x2xf32>
    %796 = arith.addf %793, %795 : vector<8x2xf32>
    %c0_246 = arith.constant 0 : index
    %c0_247 = arith.constant 0 : index
    %797 = vector.load %arg13[%c0_246, %c0_247] : memref<8x2xf32, #tpu.memory_space<vmem>>, vector<8x2xf32>
    tpu.vector_store %arg13[%c0_246, %c0_247], %796 {strides = array<i32>} : memref<8x2xf32, #tpu.memory_space<vmem>>, vector<8x2xf32>,
    return
  }
}

</mosaic_0001>

<bundles_post_ra>
// kernel: tile.8
= control target key start
LH: loop header
LB: loop body
LE: loop exit
PB: predicated region body
PF: predicated region fallthrough
CT: control target
= control target key end

     0   :  { %s22_s0 = inlined_call_operand.vmem [shape: s32[8], index: 0, kind: input, shape index: {}]   ;;  %s23_s1 = inlined_call_operand.vmem [shape: s32[8,8], index: 1, kind: output, shape index: {}]  }
   0x1   :  { %v4_v0 = vld [vmem:[%s22_s0] ss:$0 sm:$0xff] }
   0x2   :  { %5 = vst [vmem:[%s23_s1] sm:$0xff] %v4_v0 }

// kernel: lstm_model_forward.1
= control target key start
LH: loop header
LB: loop body
LE: loop exit
PB: predicated region body
PF: predicated region fallthrough
CT: control target
= control target key end

     0   :  { %18 = vsyncpa [#allocation7], 0  ;;  %s4671_s0 = inlined_call_operand.vmem [shape: s32[64,1], index: 0, kind: input, shape index: {}]   ;;  %s4672_s1 = inlined_call_operand.vmem [shape: s32[64,1], index: 1, kind: input, shape index: {}]   ;;  %s4673_s2 = inlined_call_operand.vmem [shape: s32[64,1], index: 2, kind: input, shape index: {}]   ;;  %s4674_s3 = inlined_call_operand.vmem [shape: f32[128,256], index: 3, kind: input, shape index: {}]   ;;  %s4675_s4 = inlined_call_operand.hbm [shape: f32[128,256], index: 4, kind: input, shape index: {}]   ;;  %s4676_s5 = inlined_call_operand.hbm [shape: f32[64,256], index: 5, kind: input, shape index: {}]   ;;  %s4677_s6 = inlined_call_operand.vmem [shape: f32[1,256], index: 6, kind: input, shape index: {}]   ;;  %s4678_s7 = inlined_call_operand.hbm [shape: f32[64,256], index: 7, kind: input, shape index: {}]   ;;  %s4679_s8 = inlined_call_operand.hbm [shape: f32[64,256], index: 8, kind: input, shape index: {}]   ;;  %s4680_s9 = inlined_call_operand.hbm [shape: f32[64,256], index: 9, kind: input, shape index: {}]   ;;  %s4681_s10 = inlined_call_operand.vmem [shape: f32[1,256], index: 10, kind: input, shape index: {}]   ;;  %s4682_s11 = inlined_call_operand.vmem [shape: f32[64,2], index: 11, kind: input, shape index: {}]   ;;  %s4683_s12 = inlined_call_operand.vmem [shape: f32[1,2], index: 12, kind: input, shape index: {}]   ;;  %s4684_s13 = inlined_call_operand.vmem [shape: f32[8,2], index: 13, kind: output, shape index: {}]  }
   0x1   :  { %19 = vsyncpa [#allocation9], 0 }
   0x2   :  { %20 = vsyncpa [#allocation12], 0  ;;  %s3592_s25 = smov [#allocation8]   ;;  %s3593_s27 = smov [#allocation11]  }
   0x3   :  { %s46_s26 = sshll.u32 %s3592_s25, 4  ;;  %s72_s28 = sshll.u32 %s3593_s27, 4  ;;  %s47_s26 = int_to_ptr.vmem [resolvable:$true] %s46_s26  ;;  %s73_s28 = int_to_ptr.vmem [resolvable:$true] %s72_s28 }
   0x4   :  { %s3494_s29 = scalar_lea.vmem %s47_s26, 2048  ;;  %p3499_p1 = scmp.lt.s32.totalorder %s47_s26, %s47_s26 }
   0x5   :  { %p3495_p0 = scmp.ne.s32.totalorder %s47_s26, %s3494_s29  ;;  %p3500_p2 = scmp.lt.s32.totalorder %s3494_s29, %s3494_s29 }
   0x7   :  { %p3501_p3 = por %p3500_p2, %p3499_p1 }
   0x9   :  { %p3502_p4 = pnand %p3501_p3, %p3495_p0 }
   0xb   :  { %3505 = shalt.err (!%p3502_p4)
}
   0xc   :  { %s3594_s30 = smov 256   ;;  %s3595_s14 = smov 16  }
   0xd   :  { %52 = dma.hbm_to_vmem [thread:$0]  %s4676_s5, 2048, %s47_s26, [#allocation9], %s3594_s30, %s3594_s30, %s3595_s14  }
   0xe   :  { %s3514_s17 = scalar_lea.vmem %s73_s28, 2048  ;;  %p3519_p6 = scmp.lt.s32.totalorder %s73_s28, %s73_s28 }
   0xf   :  { %p3515_p5 = scmp.ne.s32.totalorder %s73_s28, %s3514_s17  ;;  %p3520_p7 = scmp.lt.s32.totalorder %s3514_s17, %s3514_s17 }
  0x11   :  { %p3521_p8 = por %p3520_p7, %p3519_p6 }
  0x13   :  { %p3522_p9 = pnand %p3521_p8, %p3515_p5 }
  0x15   :  { %3525 = shalt.err (!%p3522_p9)
}
  0x16   :  { %78 = dma.hbm_to_vmem [thread:$0]  %s4679_s8, 2048, %s73_s28, [#allocation12], %s3594_s30, %s3594_s30, %s3595_s14  }
  0x17   :  { %s3596_s20 = smov [#allocation6]   ;;  %s3597_s22 = smov [#allocation10]  }
  0x18   :  { %s34_s21 = sshll.u32 %s3596_s20, 4  ;;  %s60_s23 = sshll.u32 %s3597_s22, 4  ;;  %s35_s21 = int_to_ptr.vmem [resolvable:$true] %s34_s21  ;;  %s61_s23 = int_to_ptr.vmem [resolvable:$true] %s60_s23 }
  0x19   :  { %s3534_s5 = scalar_lea.vmem %s35_s21, 4096  ;;  %p3539_p11 = scmp.lt.s32.totalorder %s35_s21, %s35_s21 }
  0x1a   :  { %p3535_p10 = scmp.ne.s32.totalorder %s35_s21, %s3534_s5  ;;  %p3540_p12 = scmp.lt.s32.totalorder %s3534_s5, %s3534_s5 }
  0x1c   :  { %p3541_p13 = por %p3540_p12, %p3539_p11 }
  0x1e   :  { %p3542_p0 = pnand %p3541_p13, %p3535_p10 }
  0x20   :  { %3545 = shalt.err (!%p3542_p0)
}
  0x21   :  { %40 = dma.hbm_to_vmem [thread:$0]  %s4675_s4, 4096, %s35_s21, [#allocation7], %s3594_s30, %s3594_s30, %s3595_s14  }
  0x22   :  { %s3554_s8 = scalar_lea.vmem %s61_s23, 2048  ;;  %p3559_p2 = scmp.lt.s32.totalorder %s61_s23, %s61_s23 }
  0x23   :  { %p3555_p1 = scmp.ne.s32.totalorder %s61_s23, %s3554_s8  ;;  %p3560_p3 = scmp.lt.s32.totalorder %s3554_s8, %s3554_s8 }
  0x25   :  { %p3561_p4 = por %p3560_p3, %p3559_p2 }
  0x27   :  { %p3562_p5 = pnand %p3561_p4, %p3555_p1 }
  0x29   :  { %3565 = shalt.err (!%p3562_p5)
}
  0x2a   :  { %66 = dma.hbm_to_vmem [thread:$0]  %s4678_s7, 2048, %s61_s23, [#allocation9], %s3594_s30, %s3594_s30, %s3595_s14  }
  0x2b   :  { %s3598_s28 = smov [#allocation13]  }
  0x2c   :  { %s84_s29 = sshll.u32 %s3598_s28, 4  ;;  %s85_s29 = int_to_ptr.vmem [resolvable:$true] %s84_s29 }
  0x2d   :  { %s3574_s15 = scalar_lea.vmem %s85_s29, 2048  ;;  %p3579_p7 = scmp.lt.s32.totalorder %s85_s29, %s85_s29 }
  0x2e   :  { %p3575_p6 = scmp.ne.s32.totalorder %s85_s29, %s3574_s15  ;;  %p3580_p8 = scmp.lt.s32.totalorder %s3574_s15, %s3574_s15 }
  0x30   :  { %p3581_p9 = por %p3580_p8, %p3579_p7 }
  0x32   :  { %p3582_p10 = pnand %p3581_p9, %p3575_p6 }
  0x34   :  { %3585 = shalt.err (!%p3582_p10)
}
  0x35   :  { %90 = dma.hbm_to_vmem [thread:$0]  %s4680_s9, 2048, %s85_s29, [#allocation12], %s3594_s30, %s3594_s30, %s3595_s14  }
  0x36   :  { %3586 = dma.done.wait [#allocation7], 4096  }
  0x37   :  { %3587 = vsyncadd [#allocation7], 4294963200 }
  0x38   :  { %3588 = dma.done.wait [#allocation9], 4096  }
  0x39   :  { %3589 = vsyncadd [#allocation9], 4294963200 }
  0x3a   :  { %3590 = dma.done.wait [#allocation12], 4096  }
  0x3b   :  { %3591 = vsyncadd [#allocation12], 4294963200  ;;  %v3599_v0 = vmov 0   ;;  %v3600_v1 = vmov 0.0   ;;  %v114_v2 = vld [vmem:[%s4671_s0 + $0x10] sm:$0xff]  ;;  %v112_v3 = vld [vmem:[%s4671_s0] sm:$0xff] }
  0x3c   :  { %3293 = vset.pattern.permute.xlu1 %v3599_v0  ;;  %3292 = vset.pattern.permute.xlu0 %v3599_v0  ;;  %v115_v4 = vld [vmem:[%s4671_s0 + $0x18] sm:$0xff]  ;;  %v113_v5 = vld [vmem:[%s4671_s0 + $0x8] sm:$0xff]  ;;  %v338_v7 = vld [vmem:[%s4674_s3 + $0xf0] sm:$0xff]  ;;  %vm299_vm9 = vcmask 523264  }
  0x3d   :  { %464 = vmatprep.mubr.f32.mxu0 %v3600_v1  ;;  %593 = vmatprep.mubr.f32.mxu1 %v3600_v1  ;;  %v339_v6 = vld [vmem:[%s4674_s3 + $0xf8] sm:$0xff]  ;;  %v337_v9 = vld [vmem:[%s4674_s3 + $0xe8] sm:$0xff]  ;;  %v370_v10 = vld [vmem:[#allocation6 + $0xf0] sm:$0xff] }
  0x3e   :  { %129 = vperm.xlu1 %3293, %v114_v2   ;;  %123 = vperm.xlu0 %3292, %v112_v3   ;;  %v371_v8 = vld [vmem:[#allocation6 + $0xf8] sm:$0xff]  ;;  %v336_v11 = vld [vmem:[%s4674_s3 + $0xe0] sm:$0xff]  ;;  %v369_v12 = vld [vmem:[#allocation6 + $0xe8] sm:$0xff] }
  0x3f   :  { %400 = vmatprep.subr.mxu0 %v339_v6  ;;  %v117_v13 = vld [vmem:[%s4671_s0 + $0x28] sm:$0xff]  ;;  %v116_v14 = vld [vmem:[%s4671_s0 + $0x20] sm:$0xff]  ;;  %529 = vmatprep.subr.mxu1 %v371_v8  ;;  %v335_v15 = vld [vmem:[%s4674_s3 + $0xd8] sm:$0xff] }
  0x40   :  { %401 = vmatpush1.msra.mxu0 %v338_v7  ;;  %530 = vmatpush1.msra.mxu1 %v370_v10  ;;  %v368_v16 = vld [vmem:[#allocation6 + $0xe0] sm:$0xff]  ;;  %v334_v17 = vld [vmem:[%s4674_s3 + $0xd0] sm:$0xff]  ;;  %v367_v18 = vld [vmem:[#allocation6 + $0xd8] sm:$0xff] }
  0x41   :  { %402 = vmatprep.subr.mxu0 %v337_v9  ;;  %531 = vmatprep.subr.mxu1 %v369_v12  ;;  %v333_v19 = vld [vmem:[%s4674_s3 + $0xc8] sm:$0xff]  ;;  %v366_v20 = vld [vmem:[#allocation6 + $0xd0] sm:$0xff]  ;;  %v119_v21 = vld [vmem:[%s4671_s0 + $0x38] sm:$0xff] }
  0x42   :  { %132 = vperm.xlu1 %3293, %v115_v4   ;;  %126 = vperm.xlu0 %3292, %v113_v5   ;;  %v118_v22 = vld [vmem:[%s4671_s0 + $0x30] sm:$0xff]  ;;  %v332_v23 = vld [vmem:[%s4674_s3 + $0xc0] sm:$0xff]  ;;  %v365_v24 = vld [vmem:[#allocation6 + $0xc8] sm:$0xff] }
  0x43   :  { %403 = vmatpush1.msra.mxu0 %v336_v11  ;;  %532 = vmatpush1.msra.mxu1 %v368_v16  ;;  %v331_v25 = vld [vmem:[%s4674_s3 + $0xb8] sm:$0xff]  ;;  %v364_v26 = vld [vmem:[#allocation6 + $0xc0] sm:$0xff]  ;;  %v330_v27 = vld [vmem:[%s4674_s3 + $0xb0] sm:$0xff] }
  0x44   :  { %404 = vmatprep.subr.mxu0 %v335_v15  ;;  %533 = vmatprep.subr.mxu1 %v367_v18  ;;  %v363_v28 = vld [vmem:[#allocation6 + $0xb8] sm:$0xff]  ;;  %v3763_v29 = vld [vmem:[%s4672_s1] sm:$0xff]  ;;  %v329_v30 = vld [vmem:[%s4674_s3 + $0xa8] sm:$0xff] }
  0x45   :  { %405 = vmatpush1.msra.mxu0 %v334_v17  ;;  %534 = vmatpush1.msra.mxu1 %v366_v20  ;;  %v362_v31 = vld [vmem:[#allocation6 + $0xb0] sm:$0xff]  ;;  %v328_v32 = vld [vmem:[%s4674_s3 + $0xa0] sm:$0xff]  ;;  %v361_v33 = vld [vmem:[#allocation6 + $0xa8] sm:$0xff] }
  0x46   :  { %138 = vperm.xlu1 %3293, %v117_v13   ;;  %135 = vperm.xlu0 %3292, %v116_v14   ;;  %v327_v34 = vld [vmem:[%s4674_s3 + $0x98] sm:$0xff]  ;;  %v360_v35 = vld [vmem:[#allocation6 + $0xa0] sm:$0xff]  ;;  %v326_v36 = vld [vmem:[%s4674_s3 + $0x90] sm:$0xff]  ;;  %v120_v14 = vlaneseq }
  0x47   :  { %406 = vmatprep.subr.mxu0 %v333_v19  ;;  %535 = vmatprep.subr.mxu1 %v365_v24  ;;  %v243_v37 = vld [vmem:[%s4673_s2] sm:$0xff]  ;;  %v359_v38 = vld [vmem:[#allocation6 + $0x98] sm:$0xff]  ;;  %v325_v39 = vld [vmem:[%s4674_s3 + $0x88] sm:$0xff]  ;;  %v3601_v19 = vmov 1.0  }
  0x48   :  { %407 = vmatpush1.msra.mxu0 %v332_v23  ;;  %536 = vmatpush1.msra.mxu1 %v364_v26  ;;  %v358_v40 = vld [vmem:[#allocation6 + $0x90] sm:$0xff]  ;;  %v324_v41 = vld [vmem:[%s4674_s3 + $0x80] sm:$0xff]  ;;  %v357_v42 = vld [vmem:[#allocation6 + $0x88] sm:$0xff]  ;;  %v3840_v15 = vand.u32 127, %v120_v14 }
  0x49   :  { %408 = vmatprep.subr.mxu0 %v331_v25  ;;  %537 = vmatprep.subr.mxu1 %v363_v28  ;;  %v323_v43 = vld [vmem:[%s4674_s3 + $0x78] sm:$0xff]  ;;  %v356_v44 = vld [vmem:[#allocation6 + $0x80] sm:$0xff]  ;;  %v322_v45 = vld [vmem:[%s4674_s3 + $0x70] sm:$0xff] }
  0x4a   :  { %144 = vperm.xlu1 %3293, %v119_v21   ;;  %141 = vperm.xlu0 %3292, %v118_v22   ;;  %v355_v46 = vld [vmem:[#allocation6 + $0x78] sm:$0xff]  ;;  %v321_v47 = vld [vmem:[%s4674_s3 + $0x68] sm:$0xff]  ;;  %v354_v48 = vld [vmem:[#allocation6 + $0x70] sm:$0xff]  ;;  %vm178_vm8 = vcmp.lt.s32.totalorder %v3840_v15, 32 }
  0x4b   :  { %409 = vmatpush1.msra.mxu0 %v330_v27  ;;  %538 = vmatpush1.msra.mxu1 %v362_v31  ;;  %v320_v49 = vld [vmem:[%s4674_s3 + $0x60] sm:$0xff]  ;;  %v353_v50 = vld [vmem:[#allocation6 + $0x68] sm:$0xff]  ;;  %v319_v51 = vld [vmem:[%s4674_s3 + $0x58] sm:$0xff] }
  0x4c   :  { %410 = vmatprep.subr.mxu0 %v329_v30  ;;  %539 = vmatprep.subr.mxu1 %v361_v33  ;;  %v352_v52 = vld [vmem:[#allocation6 + $0x60] sm:$0xff]  ;;  %v318_v53 = vld [vmem:[%s4674_s3 + $0x50] sm:$0xff]  ;;  %v351_v54 = vld [vmem:[#allocation6 + $0x58] sm:$0xff] }
  0x4d   :  { %411 = vmatpush1.msra.mxu0 %v328_v32  ;;  %540 = vmatpush1.msra.mxu1 %v360_v35  ;;  %v317_v55 = vld [vmem:[%s4674_s3 + $0x48] sm:$0xff]  ;;  %v350_v56 = vld [vmem:[#allocation6 + $0x50] sm:$0xff]  ;;  %v316_v57 = vld [vmem:[%s4674_s3 + $0x40] sm:$0xff] }
  0x4e   :  { %188 = vperm.xlu1 %3293, %v3763_v29   ;;  %412 = vmatprep.subr.mxu0 %v327_v34  ;;  %v349_v58 = vld [vmem:[#allocation6 + $0x48] sm:$0xff]  ;;  %v315_v59 = vld [vmem:[%s4674_s3 + $0x38] sm:$0xff]  ;;  %v348_v60 = vld [vmem:[#allocation6 + $0x40] sm:$0xff] }
  0x4f   :  { %413 = vmatpush1.msra.mxu0 %v326_v36  ;;  %541 = vmatprep.subr.mxu1 %v359_v38  ;;  %v314_v61 = vld [vmem:[%s4674_s3 + $0x30] sm:$0xff]  ;;  %v347_v62 = vld [vmem:[#allocation6 + $0x38] sm:$0xff]  ;;  %v313_v63 = vld [vmem:[%s4674_s3 + $0x28] sm:$0xff] }
  0x50   :  { %414 = vmatprep.subr.mxu0 %v325_v39  ;;  %542 = vmatpush1.msra.mxu1 %v358_v40  ;;  %v346_v0 = vld [vmem:[#allocation6 + $0x30] sm:$0xff]  ;;  %v312_v2 = vld [vmem:[%s4674_s3 + $0x20] sm:$0xff]  ;;  %v345_v3 = vld [vmem:[#allocation6 + $0x28] sm:$0xff] }
  0x51   :  { %415 = vmatpush1.msra.mxu0 %v324_v41  ;;  %543 = vmatprep.subr.mxu1 %v357_v42  ;;  %v311_v4 = vld [vmem:[%s4674_s3 + $0x18] sm:$0xff]  ;;  %v344_v5 = vld [vmem:[#allocation6 + $0x20] sm:$0xff]  ;;  %v310_v6 = vld [vmem:[%s4674_s3 + $0x10] sm:$0xff]  ;;  %v3963_v41 = vshrl.u32 %v120_v14, 7 }
  0x52   :  { %252 = vperm.xlu1 %3293, %v243_v37   ;;  %416 = vmatprep.subr.mxu0 %v323_v43  ;;  %v343_v7 = vld [vmem:[#allocation6 + $0x18] sm:$0xff]  ;;  %v309_v8 = vld [vmem:[%s4674_s3 + $0x8] sm:$0xff]  ;;  %v342_v9 = vld [vmem:[#allocation6 + $0x10] sm:$0xff] }
  0x53   :  { %544 = vmatpush1.msra.mxu1 %v356_v44  ;;  %417 = vmatpush1.msra.mxu0 %v322_v45  ;;  %v308_v10 = vld [vmem:[%s4674_s3] sm:$0xff]  ;;  %v341_v11 = vld [vmem:[#allocation6 + $0x8] sm:$0xff]  ;;  %v3835_v13 = vld [vmem:[#allocation8 + $0x78] sm:$0xff]  ;;  %v392_v42 = vsub.s32 0, %v3963_v41 }
  0x54   :  { %545 = vmatprep.subr.mxu1 %v355_v46  ;;  %418 = vmatprep.subr.mxu0 %v321_v47  ;;  %v340_v12 = vld [vmem:[#allocation6] sm:$0xff]  ;;  %v3842_v17 = vld [vmem:[#allocation8 + $0x70] sm:$0xff]  ;;  %v3845_v18 = vld [vmem:[#allocation8 + $0x68] sm:$0xff]  ;;  %v396_v46 = vsub.s32 1, %v3963_v41 }
  0x55   :  { %546 = vmatpush1.msra.mxu1 %v354_v48  ;;  %419 = vmatpush1.msra.mxu0 %v320_v49  ;;  %v3849_v20 = vld [vmem:[#allocation8 + $0x60] sm:$0xff]  ;;  %v3857_v22 = vld [vmem:[#allocation8 + $0x58] sm:$0xff]  ;;  %v3862_v24 = vld [vmem:[#allocation8 + $0x50] sm:$0xff] }
  0x56   :  { %547 = vmatprep.subr.mxu1 %v353_v50  ;;  %420 = vmatprep.subr.mxu0 %v319_v51  ;;  %v3870_v25 = vld [vmem:[#allocation8 + $0x48] sm:$0xff]  ;;  %v3875_v26 = vld [vmem:[#allocation8 + $0x40] sm:$0xff]  ;;  %v3883_v28 = vld [vmem:[#allocation8 + $0x38] sm:$0xff] }
  0x57   :  { %548 = vmatpush1.msra.mxu1 %v352_v52  ;;  %421 = vmatpush1.msra.mxu0 %v318_v53  ;;  %v3888_v31 = vld [vmem:[#allocation8 + $0x30] sm:$0xff]  ;;  %v3896_v32 = vld [vmem:[#allocation8 + $0x28] sm:$0xff]  ;;  %v3901_v34 = vld [vmem:[#allocation8 + $0x20] sm:$0xff] }
  0x58   :  { %549 = vmatprep.subr.mxu1 %v351_v54  ;;  %422 = vmatprep.subr.mxu0 %v317_v55  ;;  %v3909_v35 = vld [vmem:[#allocation8 + $0x18] sm:$0xff]  ;;  %v3914_v37 = vld [vmem:[#allocation8 + $0x10] sm:$0xff]  ;;  %v3922_v38 = vld [vmem:[#allocation8 + $0x8] sm:$0xff] }
  0x59   :  { %550 = vmatpush1.msra.mxu1 %v350_v56  ;;  %423 = vmatpush1.msra.mxu0 %v316_v57  ;;  %v3927_v40 = vld [vmem:[#allocation8] sm:$0xff] }
  0x5a   :  { %551 = vmatprep.subr.mxu1 %v349_v58  ;;  %424 = vmatprep.subr.mxu0 %v315_v59  ;;  %v388_v43 = vld [vmem:[%s4677_s6] sm:$0x3]  ;;  %s3602_s6 = smov 64  }
  0x5b   :  { %552 = vmatpush1.msra.mxu1 %v348_v60  ;;  %425 = vmatpush1.msra.mxu0 %v314_v61  ;;  %v393_v49 = vrot.slane %v388_v43, %v392_v42  ;;  %v397_v52 = vrot.slane %v388_v43, %v396_v46 }
  0x5c   :  { %553 = vmatprep.subr.mxu1 %v347_v62  ;;  %426 = vmatprep.subr.mxu0 %v313_v63 }
  0x5d   :  { %554 = vmatpush1.msra.mxu1 %v346_v0  ;;  %427 = vmatpush1.msra.mxu0 %v312_v2 }
  0x5e   :  { %555 = vmatprep.subr.mxu1 %v345_v3  ;;  %428 = vmatprep.subr.mxu0 %v311_v4 }
  0x5f   :  { %556 = vmatpush1.msra.mxu1 %v344_v5  ;;  %429 = vmatpush1.msra.mxu0 %v310_v6 }
  0x60   :  { %557 = vmatprep.subr.mxu1 %v343_v7  ;;  %430 = vmatprep.subr.mxu0 %v309_v8 }
  0x61   :  { %558 = vmatpush1.msra.mxu1 %v342_v9  ;;  %431 = vmatpush1.msra.mxu0 %v308_v10 }
  0x62   :  { %559 = vmatprep.subr.mxu1 %v341_v11  ;;  %689 = vmatprep.subr.mxu0 %v3835_v13 }
  0x63   :  { %560 = vmatpush1.msra.mxu1 %v340_v12 }
  0x64   :  { %825 = vmatprep.subr.mxu1 %v3835_v13 }
  0xb9   :  { %v124_v16 = vpop.permute.xlu0 %123  ;;  %v130_v23 = vpop.permute.xlu1 %129 }
  0xba   :  { %vm146_vm0 = vcmp.eq.s32.totalorder %v124_v16, %v3840_v15  ;;  %vm148_vm2 = vcmp.eq.s32.totalorder %v130_v23, %v3840_v15 }
  0xbb   :  { %3172 = vmatmul.mubr.msk.f32.vlgmr.msra.gmra.mxu0 %vm146_vm0, %v3601_v19  ;;  %3180 = vmatmul.mubr.msk.f32.vlgmr.msra.gmra.mxu1 %vm146_vm0, %v3601_v19 }
  0xbc   :  { %690 = vmatpush1.msra.mxu0 %v3842_v17  ;;  %470 = vmatprep.mubr.f32.mxu0 %v3600_v1 }
  0xbd   :  { %v127_v21 = vpop.permute.xlu0 %126  ;;  %599 = vmatprep.mubr.f32.mxu1 %v3600_v1  ;;  %691 = vmatprep.subr.mxu0 %v3845_v18  ;;  %v133_v27 = vpop.permute.xlu1 %132 }
  0xbe   :  { %vm147_vm1 = vcmp.eq.s32.totalorder %v127_v21, %v3840_v15  ;;  %692 = vmatpush1.msra.mxu0 %v3849_v20  ;;  %826 = vmatpush1.msra.mxu1 %v3842_v17  ;;  %vm149_vm3 = vcmp.eq.s32.totalorder %v133_v27, %v3840_v15 }
  0xbf   :  { %3173 = vmatmul.mubr.msk.f32.gmra.mxu0 %vm147_vm1, %v3601_v19  ;;  %3181 = vmatmul.mubr.msk.f32.gmra.mxu1 %vm147_vm1, %v3601_v19 }
  0xc0   :  { %476 = vmatprep.mubr.f32.mxu0 %v3600_v1  ;;  %605 = vmatprep.mubr.f32.mxu1 %v3600_v1 }
  0xc1   :  { %693 = vmatprep.subr.mxu0 %v3857_v22  ;;  %827 = vmatprep.subr.mxu1 %v3845_v18  ;;  %v136_v30 = vpop.permute.xlu0 %135  ;;  %v139_v33 = vpop.permute.xlu1 %138 }
  0xc2   :  { %694 = vmatpush1.msra.mxu0 %v3862_v24  ;;  %828 = vmatpush1.msra.mxu1 %v3849_v20  ;;  %vm150_vm4 = vcmp.eq.s32.totalorder %v136_v30, %v3840_v15  ;;  %vm151_vm5 = vcmp.eq.s32.totalorder %v139_v33, %v3840_v15 }
  0xc3   :  { %3174 = vmatmul.mubr.msk.f32.gmra.mxu0 %vm148_vm2, %v3601_v19  ;;  %3182 = vmatmul.mubr.msk.f32.gmra.mxu1 %vm148_vm2, %v3601_v19 }
  0xc4   :  { %482 = vmatprep.mubr.f32.mxu0 %v3600_v1  ;;  %611 = vmatprep.mubr.f32.mxu1 %v3600_v1 }
  0xc5   :  { %695 = vmatprep.subr.mxu0 %v3870_v25  ;;  %829 = vmatprep.subr.mxu1 %v3857_v22  ;;  %v142_v36 = vpop.permute.xlu0 %141  ;;  %v145_v39 = vpop.permute.xlu1 %144 }
  0xc6   :  { %696 = vmatpush1.msra.mxu0 %v3875_v26  ;;  %830 = vmatpush1.msra.mxu1 %v3862_v24  ;;  %vm152_vm6 = vcmp.eq.s32.totalorder %v142_v36, %v3840_v15  ;;  %vm153_vm7 = vcmp.eq.s32.totalorder %v145_v39, %v3840_v15 }
  0xc7   :  { %3175 = vmatmul.mubr.msk.f32.gmra.mxu0 %vm149_vm3, %v3601_v19  ;;  %3183 = vmatmul.mubr.msk.f32.gmra.mxu1 %vm149_vm3, %v3601_v19 }
  0xc8   :  { %488 = vmatprep.mubr.f32.mxu0 %v3600_v1  ;;  %617 = vmatprep.mubr.f32.mxu1 %v3600_v1 }
  0xc9   :  { %697 = vmatprep.subr.mxu0 %v3883_v28  ;;  %831 = vmatprep.subr.mxu1 %v3870_v25 }
  0xca   :  { %698 = vmatpush1.msra.mxu0 %v3888_v31  ;;  %832 = vmatpush1.msra.mxu1 %v3875_v26 }
  0xcb   :  { %3176 = vmatmul.mubr.msk.f32.gmra.mxu0 %vm150_vm4, %v3601_v19  ;;  %3184 = vmatmul.mubr.msk.f32.gmra.mxu1 %vm150_vm4, %v3601_v19 }
  0xcc   :  { %494 = vmatprep.mubr.f32.mxu0 %v3600_v1  ;;  %623 = vmatprep.mubr.f32.mxu1 %v3600_v1 }
  0xcd   :  { %699 = vmatprep.subr.mxu0 %v3896_v32  ;;  %833 = vmatprep.subr.mxu1 %v3883_v28 }
  0xce   :  { %700 = vmatpush1.msra.mxu0 %v3901_v34  ;;  %834 = vmatpush1.msra.mxu1 %v3888_v31 }
  0xcf   :  { %3177 = vmatmul.mubr.msk.f32.gmra.mxu0 %vm151_vm5, %v3601_v19  ;;  %3185 = vmatmul.mubr.msk.f32.gmra.mxu1 %vm151_vm5, %v3601_v19 }
  0xd0   :  { %500 = vmatprep.mubr.f32.mxu0 %v3600_v1  ;;  %629 = vmatprep.mubr.f32.mxu1 %v3600_v1 }
  0xd1   :  { %701 = vmatprep.subr.mxu0 %v3909_v35  ;;  %835 = vmatprep.subr.mxu1 %v3896_v32 }
  0xd2   :  { %702 = vmatpush1.msra.mxu0 %v3914_v37  ;;  %836 = vmatpush1.msra.mxu1 %v3901_v34 }
  0xd3   :  { %3178 = vmatmul.mubr.msk.f32.gmra.mxu0 %vm152_vm6, %v3601_v19  ;;  %3186 = vmatmul.mubr.msk.f32.gmra.mxu1 %vm152_vm6, %v3601_v19 }
  0xd4   :  { %506 = vmatprep.mubr.f32.mxu0 %v3600_v1  ;;  %635 = vmatprep.mubr.f32.mxu1 %v3600_v1 }
  0xd5   :  { %703 = vmatprep.subr.mxu0 %v3922_v38  ;;  %837 = vmatprep.subr.mxu1 %v3909_v35 }
  0xd6   :  { %704 = vmatpush1.msra.mxu0 %v3927_v40  ;;  %838 = vmatpush1.msra.mxu1 %v3914_v37 }
  0xd7   :  { %3179 = vmatmul.mubr.msk.f32.gmra.mxu0 %vm153_vm7, %v3601_v19  ;;  %3187 = vmatmul.mubr.msk.f32.gmra.mxu1 %vm153_vm7, %v3601_v19 }
  0xd8   :  { %737 = vmatprep.mubr.f32.mxu0 %v3600_v1  ;;  %839 = vmatprep.subr.mxu1 %v3922_v38 }
  0xd9   :  { %840 = vmatpush1.msra.mxu1 %v3927_v40  ;;  %873 = vmatprep.mubr.f32.mxu1 %v3600_v1 }
  0xda   :  { %965 = vmatprep.subr.mxu0 %v3835_v13  ;;  %1105 = vmatprep.subr.mxu1 %v3835_v13 }
  0xdb   :  { %738 = vmatmul.mubr.f32.vlgmr.msra.gmra.mxu0 %v3600_v1 }
  0xdc   :  { %966 = vmatpush1.msra.mxu0 %v3842_v17  ;;  %1013 = vmatprep.mubr.f32.mxu0 %v3600_v1 }
  0xdd   :  { %967 = vmatprep.subr.mxu0 %v3845_v18 }
  0xde   :  { %968 = vmatpush1.msra.mxu0 %v3849_v20 }
  0xdf   :  { %969 = vmatprep.subr.mxu0 %v3857_v22 }
  0xe0   :  { %970 = vmatpush1.msra.mxu0 %v3862_v24 }
  0xe1   :  { %971 = vmatprep.subr.mxu0 %v3870_v25 }
  0xe2   :  { %972 = vmatpush1.msra.mxu0 %v3875_v26 }
  0xe3   :  { %973 = vmatprep.subr.mxu0 %v3883_v28 }
  0xe4   :  { %974 = vmatpush1.msra.mxu0 %v3888_v31 }
  0xe5   :  { %975 = vmatprep.subr.mxu0 %v3896_v32 }
  0xe6   :  { %976 = vmatpush1.msra.mxu0 %v3901_v34 }
  0xe7   :  { %977 = vmatprep.subr.mxu0 %v3909_v35 }
  0xe8   :  { %978 = vmatpush1.msra.mxu0 %v3914_v37 }
  0xe9   :  { %979 = vmatprep.subr.mxu0 %v3922_v38 }
  0xea   :  { %980 = vmatpush1.msra.mxu0 %v3927_v40 }
  0xeb   :  { %1243 = vmatprep.subr.mxu0 %v3835_v13 }
 0x17b   :  { %v466_v44 = vpop.f32.mrf.mxu0  ;;  %v595_v45 = vpop.f32.mrf.mxu1 }
 0x17d   :  { %v3970_v47 = vpop.f32.mrf.mxu0  ;;  %v597_v48 = vpop.f32.mrf.mxu1 }
 0x17f   :  { %v472_v50 = vpop.f32.mrf.mxu0  ;;  %v601_v51 = vpop.f32.mrf.mxu1 }
 0x180   :  { %v473_v53 = vadd.f32 %v472_v50, %v393_v49 }
 0x181   :  { %v474_v54 = vpop.f32.mrf.mxu0  ;;  %v603_v55 = vpop.f32.mrf.mxu1 }
 0x182   :  { %v475_v56 = vadd.f32 %v474_v54, %v397_v52 }
 0x183   :  { %v478_v57 = vpop.f32.mrf.mxu0  ;;  %v607_v58 = vpop.f32.mrf.mxu1 }
 0x184   :  { %v479_v59 = vadd.f32 %v478_v57, %v393_v49 }
 0x185   :  { %v480_v60 = vpop.f32.mrf.mxu0  ;;  %v609_v61 = vpop.f32.mrf.mxu1 }
 0x186   :  { %v481_v62 = vadd.f32 %v480_v60, %v397_v52 }
 0x187   :  { %v484_v63 = vpop.f32.mrf.mxu0  ;;  %v613_v0 = vpop.f32.mrf.mxu1 }
 0x188   :  { %v485_v2 = vadd.f32 %v484_v63, %v393_v49 }
 0x189   :  { %v486_v3 = vpop.f32.mrf.mxu0  ;;  %v615_v4 = vpop.f32.mrf.mxu1 }
 0x18a   :  { %v487_v5 = vadd.f32 %v486_v3, %v397_v52 }
 0x18b   :  { %v490_v6 = vpop.f32.mrf.mxu0  ;;  %v619_v7 = vpop.f32.mrf.mxu1 }
 0x18c   :  { %v491_v8 = vadd.f32 %v490_v6, %v393_v49  ;;  %v3976_v9 = vadd.f32 %v619_v7, %v485_v2 }
 0x18d   :  { %v492_v10 = vpop.f32.mrf.mxu0  ;;  %v621_v11 = vpop.f32.mrf.mxu1 }
 0x18e   :  { %v493_v12 = vadd.f32 %v492_v10, %v397_v52  ;;  %v3978_v14 = vadd.f32 %v621_v11, %v487_v5  ;;  %v3980_v16 = vadd.f32 %v613_v0, %v491_v8 }
 0x18f   :  { %v496_v19 = vpop.f32.mrf.mxu0  ;;  %v625_v21 = vpop.f32.mrf.mxu1 }
 0x190   :  { %v497_v23 = vadd.f32 %v496_v19, %v393_v49  ;;  %v3982_v27 = vadd.f32 %v625_v21, %v479_v59  ;;  %v3984_v30 = vadd.f32 %v615_v4, %v493_v12 }
 0x191   :  { %v498_v33 = vpop.f32.mrf.mxu0  ;;  %v627_v36 = vpop.f32.mrf.mxu1 }
 0x192   :  { %v499_v39 = vadd.f32 %v498_v33, %v397_v52  ;;  %v3986_v43 = vadd.f32 %v627_v36, %v481_v62  ;;  %v3988_v50 = vadd.f32 %v607_v58, %v497_v23  ;;  %v467_v62 = vadd.f32 %v466_v44, %v393_v49 }
 0x193   :  { %v502_v54 = vpop.f32.mrf.mxu0  ;;  %v631_v57 = vpop.f32.mrf.mxu1 }
 0x194   :  { %v503_v60 = vadd.f32 %v502_v54, %v393_v49  ;;  %v3990_v63 = vadd.f32 %v631_v57, %v473_v53  ;;  %v3992_v0 = vadd.f32 %v609_v61, %v499_v39  ;;  %v179_v57 = vsub.s32 7, %v3763_v29 }
 0x195   :  { %v504_v2 = vpop.f32.mrf.mxu0  ;;  %v633_v3 = vpop.f32.mrf.mxu1 }
 0x196   :  { %v505_v59 = vadd.f32 %v504_v2, %v397_v52  ;;  %v3994_v5 = vadd.f32 %v633_v3, %v475_v56  ;;  %v3996_v4 = vadd.f32 %v601_v51, %v503_v60  ;;  %v469_v51 = vadd.f32 %v3970_v47, %v397_v52 }
 0x197   :  { %v508_v6 = vpop.f32.mrf.mxu0  ;;  %v637_v7 = vpop.f32.mrf.mxu1 }
 0x198   :  { %v509_v8 = vadd.f32 %v508_v6, %v393_v49  ;;  %v3998_v58 = vadd.f32 %v603_v55, %v505_v59  ;;  %v668_v11 = vadd.f32 %v637_v7, %v467_v62  ;;  %v189_v59 = vpop.permute.xlu1 %188 }
 0x199   :  { %v510_v10 = vpop.f32.mrf.mxu0  ;;  %v639_v56 = vpop.f32.mrf.mxu1 }
 0x19a   :  { %v511_v12 = vadd.f32 %v510_v10, %v397_v52  ;;  %v4000_v53 = vadd.f32 %v595_v45, %v509_v8  ;;  %v669_v36 = vadd.f32 %v639_v56, %v469_v51  ;;  %v244_v56 = vld [vmem:[%s4673_s2 + $0x8] sm:$0xff] }
 0x19b   :  { %v739_v61 = vpop.f32.mrf.mxu0 }
 0x19c   :  { %v744_v19 = vadd.f32 %v739_v61, %v668_v11  ;;  %v4002_v21 = vadd.f32 %v597_v48, %v511_v12  ;;  %v253_v29 = vpop.permute.xlu1 %252 }
 0x19d   :  { %v741_v33 = vpop.f32.mrf.mxu0 }
 0x19e   :  { %v3188_v23 = vmul.f32 -1.442695, %v744_v19  ;;  %v745_v44 = vadd.f32 %v741_v33, %v669_v36 }
 0x1a0   :  { %3294 = vpow2.f32 %v3188_v23  ;;  %v3189_v48 = vmul.f32 -1.442695, %v745_v44  ;;  %v171_v23 = vld [vmem:[%s4672_s1 + $0x8] sm:$0xff] }
 0x1a1   :  { %3296 = vtanh.f32 %v745_v44 }
 0x1ad   :  { %v3295_v49 = vpop.eup %3294 }
 0x1ae   :  { %v749_v55 = vadd.f32 1.0, %v3295_v49  ;;  %v3297_v39 = vpop.eup %3296 }
 0x1b0   :  { %3298 = vrcp.f32 %v749_v55 }
 0x1b1   :  { %3300 = vpow2.f32 %v3189_v48 }
 0x1bd   :  { %v3299_v54 = vpop.eup %3298 }
 0x1be   :  { %v760_v45 = vmul.f32 %v3299_v54, %v3297_v39  ;;  %v3301_v60 = vpop.eup %3300  ;;  %v759_v52 = vmul.f32 0.0, %v3299_v54 }
 0x1bf   :  { %v756_v47 = vadd.f32 1.0, %v3301_v60 }
 0x1c0   :  { %762 = vrot.lane.b32.xlu0 %v760_v45, %s3602_s6 }
 0x1c1   :  { %3302 = vrcp.f32 %v756_v47  ;;  %v180_v47 = vsub.s32 7, %v171_v23 }
 0x1c4   :  { %212 = vperm.xlu0 %3292, %v179_v57  }
 0x1ce   :  { %v3303_v62 = vpop.eup %3302 }
 0x232   :  { %v763_v2 = vpop.permute.xlu0 %762 }
 0x233   :  { %v765_v3 = vadd.f32 %v763_v2, %v759_v52 }
 0x235   :  { %3304 = vtanh.f32 %v765_v3  ;;  %776 = vrot.lane.b32.xlu1 %v765_v3, %s3602_s6 }
 0x23f   :  { %v213_v6 = vpop.permute.xlu0 %212 }
 0x240   :  { %v235_v7 = vsel %vm178_vm8, %v189_v59, %v213_v6 }
 0x241   :  { %vm275_vm10 = vcmp.lt.s32.totalorder %v235_v7, %v253_v29 }
 0x242   :  { %v3305_v8 = vpop.eup %3304  ;;  %v3164_v10 = vsel %vm275_vm10, 1.0, %v3600_v1 }
 0x243   :  { %300 = vst.msk [vmem:[#allocation5] sm:$0xff] %vm299_vm9, %v3164_v10  ;;  %v4013_v11 = vmul.f32 %v3305_v8, %v3303_v62 }
 0x245   :  { %771 = vrot.lane.b32.xlu0 %v4013_v11, %s3602_s6 }
 0x24a   :  { %v4017_v12 = vld [vmem:[#allocation5] sm:$0xff] }
 0x24b   :  { %vm769_vm11 = vcmp.gt.f32.partialorder %v4017_v12, 0.0 }
 0x2a7   :  { %v777_v61 = vpop.permute.xlu1 %776 }
 0x2a8   :  { %v4020_v19 = vsel %vm769_vm11, %v777_v61, 0.0 }
 0x2a9   :  { %896 = vrot.lane.b32.xlu0 %v4020_v19, %s3602_s6 }
 0x2ad   :  { %191 = vperm.xlu0 %3292, %v171_v23  }
 0x2b1   :  { %255 = vperm.xlu0 %3292, %v244_v56  }
 0x2b7   :  { %v772_v51 = vpop.permute.xlu0 %771 }
 0x2b8   :  { %v4030_v33 = vsel %vm769_vm11, %v772_v51, 0.0  ;;  %vm792_vm11 = vcmask 523520  }
 0x2b9   :  { %3190 = vmatmul.mubr.msk.f32.vlgmr.msra.gmra.mxu1 %vm299_vm9, %v4030_v33 }
 0x2ba   :  { %1106 = vmatpush1.msra.mxu1 %v3842_v17  ;;  %1153 = vmatprep.mubr.f32.mxu1 %v3600_v1 }
 0x2bb   :  { %1107 = vmatprep.subr.mxu1 %v3845_v18 }
 0x2bc   :  { %1108 = vmatpush1.msra.mxu1 %v3849_v20 }
 0x2bd   :  { %1109 = vmatprep.subr.mxu1 %v3857_v22 }
 0x2be   :  { %1110 = vmatpush1.msra.mxu1 %v3862_v24 }
 0x2bf   :  { %1111 = vmatprep.subr.mxu1 %v3870_v25 }
 0x2c0   :  { %1112 = vmatpush1.msra.mxu1 %v3875_v26 }
 0x2c1   :  { %1113 = vmatprep.subr.mxu1 %v3883_v28 }
 0x2c2   :  { %1114 = vmatpush1.msra.mxu1 %v3888_v31 }
 0x2c3   :  { %1115 = vmatprep.subr.mxu1 %v3896_v32 }
 0x2c4   :  { %1116 = vmatpush1.msra.mxu1 %v3901_v34 }
 0x2c5   :  { %1117 = vmatprep.subr.mxu1 %v3909_v35 }
 0x2c6   :  { %1118 = vmatpush1.msra.mxu1 %v3914_v37 }
 0x2c7   :  { %1119 = vmatprep.subr.mxu1 %v3922_v38 }
 0x2c8   :  { %1120 = vmatpush1.msra.mxu1 %v3927_v40 }
 0x2c9   :  { %1379 = vmatprep.subr.mxu1 %v3835_v13 }
 0x379   :  { %v875_v36 = vpop.f32.mrf.mxu1 }
 0x37a   :  { %v880_v44 = vadd.f32 %v875_v36, %v3990_v63  ;;  %v897_v63 = vpop.permute.xlu0 %896 }
 0x37b   :  { %v877_v55 = vpop.f32.mrf.mxu1 }
 0x37c   :  { %v3191_v49 = vmul.f32 -1.442695, %v880_v44  ;;  %v881_v39 = vadd.f32 %v877_v55, %v3994_v5  ;;  %v245_v55 = vld [vmem:[%s4673_s2 + $0x10] sm:$0xff] }
 0x37e   :  { %3306 = vpow2.f32 %v3191_v49  ;;  %v3192_v52 = vmul.f32 -1.442695, %v881_v39  ;;  %v192_v5 = vpop.permute.xlu0 %191  ;;  %v172_v49 = vld [vmem:[%s4672_s1 + $0x10] sm:$0xff] }
 0x37f   :  { %3308 = vtanh.f32 %v881_v39 }
 0x382   :  { %v256_v62 = vpop.permute.xlu0 %255 }
 0x38b   :  { %v3307_v54 = vpop.eup %3306 }
 0x38c   :  { %v885_v45 = vadd.f32 1.0, %v3307_v54  ;;  %v3309_v57 = vpop.eup %3308 }
 0x38e   :  { %3310 = vrcp.f32 %v885_v45 }
 0x38f   :  { %3312 = vpow2.f32 %v3192_v52 }
 0x39b   :  { %v3311_v48 = vpop.eup %3310 }
 0x39c   :  { %v900_v60 = vmul.f32 %v3311_v48, %v3309_v57  ;;  %v3313_v2 = vpop.eup %3312  ;;  %v899_v59 = vmul.f32 %v3311_v48, %v897_v63 }
 0x39d   :  { %v892_v3 = vadd.f32 1.0, %v3313_v2 }
 0x39e   :  { %902 = vrot.lane.b32.xlu1 %v900_v60, %s3602_s6 }
 0x39f   :  { %3314 = vrcp.f32 %v892_v3  ;;  %v181_v3 = vsub.s32 7, %v172_v49 }
 0x3a2   :  { %215 = vperm.xlu1 %3293, %v180_v47  }
 0x3ac   :  { %v3315_v10 = vpop.eup %3314 }
 0x410   :  { %v903_v6 = vpop.permute.xlu1 %902 }
 0x411   :  { %v905_v29 = vadd.f32 %v903_v6, %v899_v59 }
 0x413   :  { %3316 = vtanh.f32 %v905_v29  ;;  %917 = vrot.lane.b32.xlu0 %v905_v29, %s3602_s6 }
 0x41d   :  { %v216_v7 = vpop.permute.xlu1 %215 }
 0x41e   :  { %v236_v8 = vsel %vm178_vm8, %v192_v5, %v216_v7 }
 0x41f   :  { %vm276_vm12 = vcmp.lt.s32.totalorder %v236_v8, %v256_v62 }
 0x420   :  { %v3317_v61 = vpop.eup %3316  ;;  %v3165_v23 = vsel %vm276_vm12, 1.0, %v3600_v1 }
 0x421   :  { %301 = vst.msk [vmem:[#allocation5 + $0x8] sm:$0xff] %vm299_vm9, %v3165_v23  ;;  %v4059_v56 = vmul.f32 %v3317_v61, %v3315_v10 }
 0x423   :  { %912 = vrot.lane.b32.xlu1 %v4059_v56, %s3602_s6 }
 0x428   :  { %v4063_v51 = vld [vmem:[#allocation5 + $0x8] sm:$0xff] }
 0x429   :  { %vm910_vm13 = vcmp.gt.f32.partialorder %v4063_v51, 0.0 }
 0x485   :  { %v918_v36 = vpop.permute.xlu0 %917 }
 0x486   :  { %v4067_v44 = vsel %vm910_vm13, %v918_v36, %v4020_v19 }
 0x487   :  { %1036 = vrot.lane.b32.xlu1 %v4067_v44, %s3602_s6 }
 0x48b   :  { %194 = vperm.xlu1 %3293, %v172_v49  }
 0x48f   :  { %258 = vperm.xlu1 %3293, %v245_v55  }
 0x495   :  { %v913_v39 = vpop.permute.xlu1 %912 }
 0x496   :  { %v4078_v54 = vsel %vm910_vm13, %v913_v39, %v4030_v33 }
 0x497   :  { %3193 = vmatmul.mubr.msk.f32.vlgmr.msra.gmra.mxu0 %vm299_vm9, %v4078_v54 }
 0x498   :  { %1244 = vmatpush1.msra.mxu0 %v3842_v17  ;;  %1291 = vmatprep.mubr.f32.mxu0 %v3600_v1 }
 0x499   :  { %1245 = vmatprep.subr.mxu0 %v3845_v18 }
 0x49a   :  { %1246 = vmatpush1.msra.mxu0 %v3849_v20 }
 0x49b   :  { %1247 = vmatprep.subr.mxu0 %v3857_v22 }
 0x49c   :  { %1248 = vmatpush1.msra.mxu0 %v3862_v24 }
 0x49d   :  { %1249 = vmatprep.subr.mxu0 %v3870_v25 }
 0x49e   :  { %1250 = vmatpush1.msra.mxu0 %v3875_v26 }
 0x49f   :  { %1251 = vmatprep.subr.mxu0 %v3883_v28 }
 0x4a0   :  { %1252 = vmatpush1.msra.mxu0 %v3888_v31 }
 0x4a1   :  { %1253 = vmatprep.subr.mxu0 %v3896_v32 }
 0x4a2   :  { %1254 = vmatpush1.msra.mxu0 %v3901_v34 }
 0x4a3   :  { %1255 = vmatprep.subr.mxu0 %v3909_v35 }
 0x4a4   :  { %1256 = vmatpush1.msra.mxu0 %v3914_v37 }
 0x4a5   :  { %1257 = vmatprep.subr.mxu0 %v3922_v38 }
 0x4a6   :  { %1258 = vmatpush1.msra.mxu0 %v3927_v40 }
 0x4a7   :  { %1515 = vmatprep.subr.mxu0 %v3835_v13 }
 0x557   :  { %v1015_v19 = vpop.f32.mrf.mxu0 }
 0x558   :  { %v1020_v33 = vadd.f32 %v1015_v19, %v3982_v27  ;;  %v1037_v27 = vpop.permute.xlu1 %1036 }
 0x559   :  { %v1017_v57 = vpop.f32.mrf.mxu0 }
 0x55a   :  { %v3194_v45 = vmul.f32 -1.442695, %v1020_v33  ;;  %v1021_v48 = vadd.f32 %v1017_v57, %v3986_v43  ;;  %v246_v57 = vld [vmem:[%s4673_s2 + $0x18] sm:$0xff] }
 0x55c   :  { %3318 = vpow2.f32 %v3194_v45  ;;  %v3195_v59 = vmul.f32 -1.442695, %v1021_v48  ;;  %v195_v43 = vpop.permute.xlu1 %194  ;;  %v173_v45 = vld [vmem:[%s4672_s1 + $0x18] sm:$0xff] }
 0x55d   :  { %3320 = vtanh.f32 %v1021_v48 }
 0x560   :  { %v259_v10 = vpop.permute.xlu1 %258 }
 0x569   :  { %v3319_v60 = vpop.eup %3318 }
 0x56a   :  { %v1025_v47 = vadd.f32 1.0, %v3319_v60  ;;  %v3321_v52 = vpop.eup %3320 }
 0x56c   :  { %3322 = vrcp.f32 %v1025_v47 }
 0x56d   :  { %3324 = vpow2.f32 %v3195_v59 }
 0x579   :  { %v3323_v2 = vpop.eup %3322 }
 0x57a   :  { %v1040_v63 = vmul.f32 %v3323_v2, %v3321_v52  ;;  %v3325_v6 = vpop.eup %3324  ;;  %v1039_v5 = vmul.f32 %v3323_v2, %v1037_v27 }
 0x57b   :  { %v1032_v29 = vadd.f32 1.0, %v3325_v6 }
 0x57c   :  { %1042 = vrot.lane.b32.xlu0 %v1040_v63, %s3602_s6 }
 0x57d   :  { %3326 = vrcp.f32 %v1032_v29  ;;  %v182_v29 = vsub.s32 7, %v173_v45 }
 0x580   :  { %218 = vperm.xlu0 %3292, %v181_v3  }
 0x58a   :  { %v3327_v23 = vpop.eup %3326 }
 0x5ee   :  { %v1043_v7 = vpop.permute.xlu0 %1042 }
 0x5ef   :  { %v1045_v62 = vadd.f32 %v1043_v7, %v1039_v5 }
 0x5f1   :  { %3328 = vtanh.f32 %v1045_v62  ;;  %1057 = vrot.lane.b32.xlu1 %v1045_v62, %s3602_s6 }
 0x5fb   :  { %v219_v8 = vpop.permute.xlu0 %218 }
 0x5fc   :  { %v237_v61 = vsel %vm178_vm8, %v195_v43, %v219_v8 }
 0x5fd   :  { %vm277_vm14 = vcmp.lt.s32.totalorder %v237_v61, %v259_v10 }
 0x5fe   :  { %v3329_v36 = vpop.eup %3328  ;;  %v3166_v49 = vsel %vm277_vm14, 1.0, %v3600_v1 }
 0x5ff   :  { %302 = vst.msk [vmem:[#allocation5 + $0x10] sm:$0xff] %vm299_vm9, %v3166_v49  ;;  %v4107_v55 = vmul.f32 %v3329_v36, %v3327_v23 }
 0x601   :  { %1052 = vrot.lane.b32.xlu0 %v4107_v55, %s3602_s6 }
 0x606   :  { %v4111_v39 = vld [vmem:[#allocation5 + $0x10] sm:$0xff] }
 0x607   :  { %vm1050_vm15 = vcmp.gt.f32.partialorder %v4111_v39, 0.0 }
 0x663   :  { %v1058_v19 = vpop.permute.xlu1 %1057 }
 0x664   :  { %v4115_v33 = vsel %vm1050_vm15, %v1058_v19, %v4067_v44 }
 0x665   :  { %1176 = vrot.lane.b32.xlu0 %v4115_v33, %s3602_s6 }
 0x669   :  { %197 = vperm.xlu0 %3292, %v173_v45  }
 0x66d   :  { %261 = vperm.xlu0 %3292, %v246_v57  }
 0x673   :  { %v1053_v48 = vpop.permute.xlu0 %1052 }
 0x674   :  { %v4126_v60 = vsel %vm1050_vm15, %v1053_v48, %v4078_v54 }
 0x675   :  { %3196 = vmatmul.mubr.msk.f32.vlgmr.msra.gmra.mxu1 %vm299_vm9, %v4126_v60 }
 0x676   :  { %1380 = vmatpush1.msra.mxu1 %v3842_v17  ;;  %1427 = vmatprep.mubr.f32.mxu1 %v3600_v1 }
 0x677   :  { %1381 = vmatprep.subr.mxu1 %v3845_v18 }
 0x678   :  { %1382 = vmatpush1.msra.mxu1 %v3849_v20 }
 0x679   :  { %1383 = vmatprep.subr.mxu1 %v3857_v22 }
 0x67a   :  { %1384 = vmatpush1.msra.mxu1 %v3862_v24 }
 0x67b   :  { %1385 = vmatprep.subr.mxu1 %v3870_v25 }
 0x67c   :  { %1386 = vmatpush1.msra.mxu1 %v3875_v26 }
 0x67d   :  { %1387 = vmatprep.subr.mxu1 %v3883_v28 }
 0x67e   :  { %1388 = vmatpush1.msra.mxu1 %v3888_v31 }
 0x67f   :  { %1389 = vmatprep.subr.mxu1 %v3896_v32 }
 0x680   :  { %1390 = vmatpush1.msra.mxu1 %v3901_v34 }
 0x681   :  { %1391 = vmatprep.subr.mxu1 %v3909_v35 }
 0x682   :  { %1392 = vmatpush1.msra.mxu1 %v3914_v37 }
 0x683   :  { %1393 = vmatprep.subr.mxu1 %v3922_v38 }
 0x684   :  { %1394 = vmatpush1.msra.mxu1 %v3927_v40 }
 0x685   :  { %1651 = vmatprep.subr.mxu1 %v3835_v13 }
 0x735   :  { %v1155_v44 = vpop.f32.mrf.mxu1 }
 0x736   :  { %v1160_v54 = vadd.f32 %v1155_v44, %v3976_v9  ;;  %v1177_v9 = vpop.permute.xlu0 %1176 }
 0x737   :  { %v1157_v52 = vpop.f32.mrf.mxu1 }
 0x738   :  { %v3197_v47 = vmul.f32 -1.442695, %v1160_v54  ;;  %v1161_v2 = vadd.f32 %v1157_v52, %v3978_v14  ;;  %v174_v54 = vld [vmem:[%s4672_s1 + $0x20] sm:$0xff] }
 0x73a   :  { %3330 = vpow2.f32 %v3197_v47  ;;  %v3198_v13 = vmul.f32 -1.442695, %v1161_v2  ;;  %v198_v14 = vpop.permute.xlu0 %197  ;;  %v247_v47 = vld [vmem:[%s4673_s2 + $0x20] sm:$0xff] }
 0x73b   :  { %3332 = vtanh.f32 %v1161_v2 }
 0x73e   :  { %v262_v61 = vpop.permute.xlu0 %261 }
 0x747   :  { %v3331_v63 = vpop.eup %3330 }
 0x748   :  { %v1165_v3 = vadd.f32 1.0, %v3331_v63  ;;  %v3333_v59 = vpop.eup %3332 }
 0x74a   :  { %3334 = vrcp.f32 %v1165_v3 }
 0x74b   :  { %3336 = vpow2.f32 %v3198_v13 }
 0x757   :  { %v3335_v6 = vpop.eup %3334 }
 0x758   :  { %v1180_v27 = vmul.f32 %v3335_v6, %v3333_v59  ;;  %v3337_v5 = vpop.eup %3336  ;;  %v1179_v62 = vmul.f32 %v3335_v6, %v1177_v9  ;;  %v183_v9 = vsub.s32 7, %v174_v54 }
 0x759   :  { %v1172_v7 = vadd.f32 1.0, %v3337_v5 }
 0x75a   :  { %1182 = vrot.lane.b32.xlu1 %v1180_v27, %s3602_s6 }
 0x75b   :  { %3338 = vrcp.f32 %v1172_v7 }
 0x75e   :  { %221 = vperm.xlu1 %3293, %v182_v29  }
 0x768   :  { %v3339_v36 = vpop.eup %3338 }
 0x7cc   :  { %v1183_v43 = vpop.permute.xlu1 %1182 }
 0x7cd   :  { %v1185_v8 = vadd.f32 %v1183_v43, %v1179_v62 }
 0x7cf   :  { %3340 = vtanh.f32 %v1185_v8  ;;  %1197 = vrot.lane.b32.xlu0 %v1185_v8, %s3602_s6 }
 0x7d9   :  { %v222_v10 = vpop.permute.xlu1 %221 }
 0x7da   :  { %v238_v23 = vsel %vm178_vm8, %v198_v14, %v222_v10 }
 0x7db   :  { %vm278_vm0 = vcmp.lt.s32.totalorder %v238_v23, %v262_v61 }
 0x7dc   :  { %v3341_v49 = vpop.eup %3340  ;;  %v3167_v19 = vsel %vm278_vm0, 1.0, %v3600_v1 }
 0x7dd   :  { %303 = vst.msk [vmem:[#allocation5 + $0x18] sm:$0xff] %vm299_vm9, %v3167_v19  ;;  %v4155_v45 = vmul.f32 %v3341_v49, %v3339_v36 }
 0x7df   :  { %1192 = vrot.lane.b32.xlu1 %v4155_v45, %s3602_s6 }
 0x7e4   :  { %v4159_v57 = vld [vmem:[#allocation5 + $0x18] sm:$0xff] }
 0x7e5   :  { %vm1190_vm1 = vcmp.gt.f32.partialorder %v4159_v57, 0.0 }
 0x841   :  { %v1198_v48 = vpop.permute.xlu0 %1197 }
 0x842   :  { %v4163_v44 = vsel %vm1190_vm1, %v1198_v48, %v4115_v33 }
 0x843   :  { %1314 = vrot.lane.b32.xlu1 %v4163_v44, %s3602_s6 }
 0x847   :  { %200 = vperm.xlu1 %3293, %v174_v54  }
 0x84b   :  { %264 = vperm.xlu1 %3293, %v247_v47  }
 0x851   :  { %v1193_v52 = vpop.permute.xlu1 %1192 }
 0x852   :  { %v4174_v2 = vsel %vm1190_vm1, %v1193_v52, %v4126_v60 }
 0x853   :  { %3199 = vmatmul.mubr.msk.f32.vlgmr.msra.gmra.mxu0 %vm299_vm9, %v4174_v2 }
 0x854   :  { %1516 = vmatpush1.msra.mxu0 %v3842_v17  ;;  %1563 = vmatprep.mubr.f32.mxu0 %v3600_v1 }
 0x855   :  { %1517 = vmatprep.subr.mxu0 %v3845_v18 }
 0x856   :  { %1518 = vmatpush1.msra.mxu0 %v3849_v20 }
 0x857   :  { %1519 = vmatprep.subr.mxu0 %v3857_v22 }
 0x858   :  { %1520 = vmatpush1.msra.mxu0 %v3862_v24 }
 0x859   :  { %1521 = vmatprep.subr.mxu0 %v3870_v25 }
 0x85a   :  { %1522 = vmatpush1.msra.mxu0 %v3875_v26 }
 0x85b   :  { %1523 = vmatprep.subr.mxu0 %v3883_v28 }
 0x85c   :  { %1524 = vmatpush1.msra.mxu0 %v3888_v31 }
 0x85d   :  { %1525 = vmatprep.subr.mxu0 %v3896_v32 }
 0x85e   :  { %1526 = vmatpush1.msra.mxu0 %v3901_v34 }
 0x85f   :  { %1527 = vmatprep.subr.mxu0 %v3909_v35 }
 0x860   :  { %1528 = vmatpush1.msra.mxu0 %v3914_v37 }
 0x861   :  { %1529 = vmatprep.subr.mxu0 %v3922_v38 }
 0x862   :  { %1530 = vmatpush1.msra.mxu0 %v3927_v40 }
 0x913   :  { %v1293_v33 = vpop.f32.mrf.mxu0 }
 0x914   :  { %v1298_v60 = vadd.f32 %v1293_v33, %v3980_v16  ;;  %v1315_v16 = vpop.permute.xlu1 %1314 }
 0x915   :  { %v1295_v3 = vpop.f32.mrf.mxu0 }
 0x916   :  { %v3200_v63 = vmul.f32 -1.442695, %v1298_v60  ;;  %v1299_v59 = vadd.f32 %v1295_v3, %v3984_v30  ;;  %v175_v60 = vld [vmem:[%s4672_s1 + $0x28] sm:$0xff] }
 0x918   :  { %3342 = vpow2.f32 %v3200_v63  ;;  %v3201_v7 = vmul.f32 -1.442695, %v1299_v59  ;;  %v201_v30 = vpop.permute.xlu1 %200  ;;  %v248_v63 = vld [vmem:[%s4673_s2 + $0x28] sm:$0xff] }
 0x919   :  { %3344 = vtanh.f32 %v1299_v59 }
 0x91c   :  { %v265_v23 = vpop.permute.xlu1 %264 }
 0x925   :  { %v3343_v6 = vpop.eup %3342 }
 0x926   :  { %v1303_v27 = vadd.f32 1.0, %v3343_v6  ;;  %v3345_v29 = vpop.eup %3344 }
 0x928   :  { %3346 = vrcp.f32 %v1303_v27 }
 0x929   :  { %3348 = vpow2.f32 %v3201_v7 }
 0x935   :  { %v3347_v13 = vpop.eup %3346 }
 0x936   :  { %v1318_v5 = vmul.f32 %v3347_v13, %v3345_v29  ;;  %v3349_v62 = vpop.eup %3348  ;;  %v1317_v8 = vmul.f32 %v3347_v13, %v1315_v16 }
 0x937   :  { %v1310_v43 = vadd.f32 1.0, %v3349_v62 }
 0x938   :  { %1320 = vrot.lane.b32.xlu0 %v1318_v5, %s3602_s6 }
 0x939   :  { %3350 = vrcp.f32 %v1310_v43 }
 0x93c   :  { %224 = vperm.xlu0 %3292, %v183_v9  }
 0x946   :  { %v3351_v49 = vpop.eup %3350 }
 0x9aa   :  { %v1321_v14 = vpop.permute.xlu0 %1320 }
 0x9ab   :  { %v1323_v10 = vadd.f32 %v1321_v14, %v1317_v8  ;;  %v176_v8 = vld [vmem:[%s4672_s1 + $0x30] sm:$0xff] }
 0x9ac   :  { %v249_v14 = vld [vmem:[%s4673_s2 + $0x30] sm:$0xff] }
 0x9ad   :  { %3352 = vtanh.f32 %v1323_v10  ;;  %1335 = vrot.lane.b32.xlu1 %v1323_v10, %s3602_s6 }
 0x9b7   :  { %v225_v61 = vpop.permute.xlu0 %224 }
 0x9b8   :  { %v239_v36 = vsel %vm178_vm8, %v201_v30, %v225_v61 }
 0x9b9   :  { %vm279_vm2 = vcmp.lt.s32.totalorder %v239_v36, %v265_v23 }
 0x9ba   :  { %v3353_v19 = vpop.eup %3352  ;;  %v3168_v48 = vsel %vm279_vm2, 1.0, %v3600_v1 }
 0x9bb   :  { %304 = vst.msk [vmem:[#allocation5 + $0x20] sm:$0xff] %vm299_vm9, %v3168_v48  ;;  %v4202_v54 = vmul.f32 %v3353_v19, %v3351_v49 }
 0x9bd   :  { %1330 = vrot.lane.b32.xlu0 %v4202_v54, %s3602_s6 }
 0x9c2   :  { %v4206_v47 = vld [vmem:[#allocation5 + $0x20] sm:$0xff] }
 0x9c3   :  { %vm1328_vm3 = vcmp.gt.f32.partialorder %v4206_v47, 0.0 }
 0xa1f   :  { %v1336_v52 = vpop.permute.xlu1 %1335 }
 0xa20   :  { %v4210_v33 = vsel %vm1328_vm3, %v1336_v52, %v4163_v44 }
 0xa21   :  { %1450 = vrot.lane.b32.xlu0 %v4210_v33, %s3602_s6 }
 0xa25   :  { %203 = vperm.xlu0 %3292, %v175_v60  }
 0xa29   :  { %267 = vperm.xlu0 %3292, %v248_v63  }
 0xa2f   :  { %v1331_v3 = vpop.permute.xlu0 %1330 }
 0xa30   :  { %v4221_v59 = vsel %vm1328_vm3, %v1331_v3, %v4174_v2  ;;  %v185_v3 = vsub.s32 7, %v176_v8  ;;  %vm3603_vm3 = vmmov 0  }
 0xa31   :  { %3202 = vmatmul.mubr.msk.f32.vlgmr.msra.gmra.mxu1 %vm299_vm9, %v4221_v59 }
 0xa32   :  { %1652 = vmatpush1.msra.mxu1 %v3842_v17  ;;  %1699 = vmatprep.mubr.f32.mxu1 %v3600_v1 }
 0xa33   :  { %1653 = vmatprep.subr.mxu1 %v3845_v18 }
 0xa34   :  { %1654 = vmatpush1.msra.mxu1 %v3849_v20 }
 0xa35   :  { %1655 = vmatprep.subr.mxu1 %v3857_v22 }
 0xa36   :  { %1656 = vmatpush1.msra.mxu1 %v3862_v24 }
 0xa37   :  { %1657 = vmatprep.subr.mxu1 %v3870_v25 }
 0xa38   :  { %1658 = vmatpush1.msra.mxu1 %v3875_v26 }
 0xa39   :  { %1659 = vmatprep.subr.mxu1 %v3883_v28 }
 0xa3a   :  { %1660 = vmatpush1.msra.mxu1 %v3888_v31 }
 0xa3b   :  { %1661 = vmatprep.subr.mxu1 %v3896_v32 }
 0xa3c   :  { %1662 = vmatpush1.msra.mxu1 %v3901_v34  ;;  %v184_v34 = vsub.s32 7, %v175_v60 }
 0xa3d   :  { %1663 = vmatprep.subr.mxu1 %v3909_v35 }
 0xa3e   :  { %1664 = vmatpush1.msra.mxu1 %v3914_v37 }
 0xa3f   :  { %1665 = vmatprep.subr.mxu1 %v3922_v38 }
 0xa40   :  { %1666 = vmatpush1.msra.mxu1 %v3927_v40 }
 0xa93   :  { %v1451_v38 = vpop.permute.xlu0 %1450 }
 0xaf1   :  { %v1429_v17 = vpop.f32.mrf.mxu1 }
 0xaf2   :  { %v1434_v18 = vadd.f32 %v1429_v17, %v3988_v50 }
 0xaf3   :  { %v1431_v22 = vpop.f32.mrf.mxu1 }
 0xaf4   :  { %v3203_v20 = vmul.f32 -1.442695, %v1434_v18  ;;  %v1435_v24 = vadd.f32 %v1431_v22, %v3992_v0  ;;  %v204_v0 = vpop.permute.xlu0 %203 }
 0xaf6   :  { %3354 = vpow2.f32 %v3203_v20  ;;  %v3204_v35 = vmul.f32 -1.442695, %v1435_v24 }
 0xaf7   :  { %3356 = vtanh.f32 %v1435_v24 }
 0xaf8   :  { %v268_v27 = vpop.permute.xlu0 %267 }
 0xb03   :  { %v3355_v25 = vpop.eup %3354 }
 0xb04   :  { %v1439_v26 = vadd.f32 1.0, %v3355_v25  ;;  %v3357_v28 = vpop.eup %3356 }
 0xb06   :  { %3358 = vrcp.f32 %v1439_v26 }
 0xb07   :  { %3360 = vpow2.f32 %v3204_v35 }
 0xb13   :  { %v3359_v31 = vpop.eup %3358 }
 0xb14   :  { %v1454_v32 = vmul.f32 %v3359_v31, %v3357_v28  ;;  %v3361_v37 = vpop.eup %3360  ;;  %v1453_v50 = vmul.f32 %v3359_v31, %v1451_v38 }
 0xb15   :  { %v1446_v40 = vadd.f32 1.0, %v3361_v37 }
 0xb16   :  { %1456 = vrot.lane.b32.xlu1 %v1454_v32, %s3602_s6 }
 0xb17   :  { %3362 = vrcp.f32 %v1446_v40  ;;  %v250_v40 = vld [vmem:[%s4673_s2 + $0x38] sm:$0xff] }
 0xb1a   :  { %227 = vperm.xlu1 %3293, %v184_v34  }
 0xb24   :  { %v3363_v13 = vpop.eup %3362 }
 0xb88   :  { %v1457_v44 = vpop.permute.xlu1 %1456 }
 0xb89   :  { %v1459_v2 = vadd.f32 %v1457_v44, %v1453_v50 }
 0xb8b   :  { %3364 = vtanh.f32 %v1459_v2  ;;  %1471 = vrot.lane.b32.xlu0 %v1459_v2, %s3602_s6 }
 0xb95   :  { %v228_v6 = vpop.permute.xlu1 %227 }
 0xb96   :  { %v240_v29 = vsel %vm178_vm8, %v204_v0, %v228_v6 }
 0xb97   :  { %vm280_vm4 = vcmp.lt.s32.totalorder %v240_v29, %v268_v27 }
 0xb98   :  { %v3365_v5 = vpop.eup %3364  ;;  %v3169_v9 = vsel %vm280_vm4, 1.0, %v3600_v1 }
 0xb99   :  { %305 = vst.msk [vmem:[#allocation5 + $0x28] sm:$0xff] %vm299_vm9, %v3169_v9  ;;  %v4249_v7 = vmul.f32 %v3365_v5, %v3363_v13 }
 0xb9b   :  { %1466 = vrot.lane.b32.xlu1 %v4249_v7, %s3602_s6 }
 0xba0   :  { %v4253_v62 = vld [vmem:[#allocation5 + $0x28] sm:$0xff] }
 0xba1   :  { %vm1464_vm5 = vcmp.gt.f32.partialorder %v4253_v62, 0.0 }
 0xbfd   :  { %v1472_v16 = vpop.permute.xlu0 %1471 }
 0xbfe   :  { %v1474_v43 = vsel %vm1464_vm5, %v1472_v16, %v4210_v33 }
 0xbff   :  { %1586 = vrot.lane.b32.xlu1 %v1474_v43, %s3602_s6 }
 0xc03   :  { %206 = vperm.xlu1 %3293, %v176_v8  }
 0xc07   :  { %270 = vperm.xlu1 %3293, %v249_v14  }
 0xc0d   :  { %v1467_v10 = vpop.permute.xlu1 %1466 }
 0xc0e   :  { %v1469_v30 = vsel %vm1464_vm5, %v1467_v10, %v4221_v59  ;;  %vm3133_vm5 = vcmask 15360  }
 0xc0f   :  { %3205 = vmatmul.mubr.msk.f32.vlgmr.msra.gmra.mxu0 %vm299_vm9, %v1469_v30 }
 0xc10   :  { %1903 = vmatprep.mubr.f32.mxu0 %v3600_v1 }
 0xccf   :  { %v1565_v61 = vpop.f32.mrf.mxu0 }
 0xcd0   :  { %v1570_v23 = vadd.f32 %v1565_v61, %v3996_v4  ;;  %v1587_v4 = vpop.permute.xlu1 %1586 }
 0xcd1   :  { %v1567_v49 = vpop.f32.mrf.mxu0 }
 0xcd2   :  { %v3206_v36 = vmul.f32 -1.442695, %v1570_v23  ;;  %v1571_v19 = vadd.f32 %v1567_v49, %v3998_v58  ;;  %v177_v58 = vld [vmem:[%s4672_s1 + $0x38] sm:$0xff] }
 0xcd3   :  { %v186_v25 = vsub.s32 7, %v177_v58 }
 0xcd4   :  { %3366 = vpow2.f32 %v3206_v36  ;;  %v3207_v59 = vmul.f32 -1.442695, %v1571_v19  ;;  %v207_v26 = vpop.permute.xlu1 %206 }
 0xcd5   :  { %3368 = vtanh.f32 %v1571_v19 }
 0xcd8   :  { %v271_v31 = vpop.permute.xlu1 %270 }
 0xce1   :  { %v3367_v48 = vpop.eup %3366 }
 0xce2   :  { %v1575_v52 = vadd.f32 1.0, %v3367_v48  ;;  %v3369_v33 = vpop.eup %3368 }
 0xce4   :  { %3370 = vrcp.f32 %v1575_v52 }
 0xce5   :  { %3372 = vpow2.f32 %v3207_v59  ;;  %v1785_v59 = vld [vmem:[#allocation11 + $0x70] sm:$0xff] }
 0xcf1   :  { %v3371_v60 = vpop.eup %3370 }
 0xcf2   :  { %v1590_v63 = vmul.f32 %v3371_v60, %v3369_v33  ;;  %v3373_v17 = vpop.eup %3372  ;;  %v1589_v20 = vmul.f32 %v3371_v60, %v1587_v4  ;;  %v1770_v33 = vld [vmem:[#allocation10 + $0x78] sm:$0xff]  ;;  %v1769_v60 = vld [vmem:[#allocation10 + $0x70] sm:$0xff]  ;;  %v1784_v4 = vld [vmem:[#allocation11 + $0x68] sm:$0xff] }
 0xcf3   :  { %v1582_v18 = vadd.f32 1.0, %v3373_v17  ;;  %1855 = vmatprep.subr.mxu0 %v1770_v33  ;;  %v1767_v17 = vld [vmem:[#allocation10 + $0x60] sm:$0xff]  ;;  %v4365_v33 = vld [vmem:[#allocation13 + $0x50] sm:$0xff] }
 0xcf4   :  { %1592 = vrot.lane.b32.xlu0 %v1590_v63, %s3602_s6  ;;  %v1786_v63 = vld [vmem:[#allocation11 + $0x78] sm:$0xff]  ;;  %1856 = vmatpush1.msra.mxu0 %v1769_v60 }
 0xcf5   :  { %3374 = vrcp.f32 %v1582_v18  ;;  %1984 = vmatprep.subr.mxu1 %v1786_v63  ;;  %v1766_v18 = vld [vmem:[#allocation10 + $0x58] sm:$0xff]  ;;  %v4372_v63 = vld [vmem:[#allocation13 + $0x48] sm:$0xff] }
 0xcf8   :  { %230 = vperm.xlu0 %3292, %v185_v3   ;;  %v1768_v3 = vld [vmem:[#allocation10 + $0x68] sm:$0xff] }
 0xcf9   :  { %1857 = vmatprep.subr.mxu0 %v1768_v3  ;;  %v4377_v3 = vld [vmem:[#allocation13 + $0x40] sm:$0xff] }
 0xcfa   :  { %1858 = vmatpush1.msra.mxu0 %v1767_v17  ;;  %v4384_v17 = vld [vmem:[#allocation13 + $0x38] sm:$0xff] }
 0xcfb   :  { %1859 = vmatprep.subr.mxu0 %v1766_v18 }
 0xd02   :  { %v3375_v34 = vpop.eup %3374 }
 0xd66   :  { %v1593_v22 = vpop.permute.xlu0 %1592 }
 0xd67   :  { %v1595_v24 = vadd.f32 %v1593_v22, %v1589_v20  ;;  %v1783_v20 = vld [vmem:[#allocation11 + $0x60] sm:$0xff]  ;;  %v1765_v22 = vld [vmem:[#allocation10 + $0x50] sm:$0xff] }
 0xd68   :  { %1860 = vmatpush1.msra.mxu0 %v1765_v22  ;;  %v4401_v22 = vld [vmem:[#allocation13 + $0x20] sm:$0xff] }
 0xd69   :  { %3376 = vtanh.f32 %v1595_v24  ;;  %1607 = vrot.lane.b32.xlu1 %v1595_v24, %s3602_s6  ;;  %v1780_v24 = vld [vmem:[#allocation11 + $0x48] sm:$0xff] }
 0xd6d   :  { %233 = vperm.xlu1 %3293, %v186_v25   ;;  %v1763_v25 = vld [vmem:[#allocation10 + $0x40] sm:$0xff] }
 0xd73   :  { %v231_v28 = vpop.permute.xlu0 %230 }
 0xd74   :  { %v241_v32 = vsel %vm178_vm8, %v207_v26, %v231_v28  ;;  %v1779_v26 = vld [vmem:[#allocation11 + $0x40] sm:$0xff]  ;;  %v1762_v28 = vld [vmem:[#allocation10 + $0x38] sm:$0xff] }
 0xd75   :  { %vm281_vm6 = vcmp.lt.s32.totalorder %v241_v32, %v271_v31 }
 0xd76   :  { %v3377_v35 = vpop.eup %3376  ;;  %v3170_v37 = vsel %vm281_vm6, 1.0, %v3600_v1 }
 0xd77   :  { %306 = vst.msk [vmem:[#allocation5 + $0x30] sm:$0xff] %vm299_vm9, %v3170_v37  ;;  %v4278_v38 = vmul.f32 %v3377_v35, %v3375_v34 }
 0xd79   :  { %1602 = vrot.lane.b32.xlu0 %v4278_v38, %s3602_s6 }
 0xd7d   :  { %209 = vperm.xlu0 %3292, %v177_v58   ;;  %v1781_v58 = vld [vmem:[#allocation11 + $0x50] sm:$0xff] }
 0xd7e   :  { %v1599_v50 = vld [vmem:[#allocation5 + $0x30] sm:$0xff] }
 0xd7f   :  { %vm1600_vm7 = vcmp.gt.f32.partialorder %v1599_v50, 0.0 }
 0xd81   :  { %273 = vperm.xlu0 %3292, %v250_v40  }
 0xddb   :  { %v1608_v44 = vpop.permute.xlu1 %1607 }
 0xddc   :  { %v1610_v2 = vsel %vm1600_vm7, %v1608_v44, %v1474_v43  ;;  %v1778_v44 = vld [vmem:[#allocation11 + $0x38] sm:$0xff] }
 0xddd   :  { %1722 = vrot.lane.b32.xlu1 %v1610_v2, %s3602_s6  ;;  %v1760_v2 = vld [vmem:[#allocation10 + $0x28] sm:$0xff] }
 0xde1   :  { %781 = vrot.lane.b32.xlu1 %v4017_v12, %s3602_s6 }
 0xde5   :  { %922 = vrot.lane.b32.xlu1 %v4063_v51, %s3602_s6 }
 0xde8   :  { %v234_v29 = vpop.permute.xlu1 %233 }
 0xde9   :  { %1062 = vrot.lane.b32.xlu1 %v4111_v39, %s3602_s6 }
 0xdeb   :  { %v1603_v0 = vpop.permute.xlu0 %1602 }
 0xdec   :  { %v1605_v6 = vsel %vm1600_vm7, %v1603_v0, %v1469_v30  ;;  %v1777_v0 = vld [vmem:[#allocation11 + $0x30] sm:$0xff] }
 0xded   :  { %1202 = vrot.lane.b32.xlu1 %v4159_v57, %s3602_s6  ;;  %3208 = vmatmul.mubr.msk.f32.vlgmr.msra.gmra.mxu1 %vm299_vm9, %v1605_v6  ;;  %v1759_v6 = vld [vmem:[#allocation10 + $0x20] sm:$0xff] }
 0xdee   :  { %2032 = vmatprep.mubr.f32.mxu1 %v3600_v1  ;;  %1985 = vmatpush1.msra.mxu1 %v1785_v59 }
 0xdef   :  { %1986 = vmatprep.subr.mxu1 %v1784_v4  ;;  %v4389_v4 = vld [vmem:[#allocation13 + $0x30] sm:$0xff] }
 0xdf0   :  { %1987 = vmatpush1.msra.mxu1 %v1783_v20  ;;  %v4396_v20 = vld [vmem:[#allocation13 + $0x28] sm:$0xff] }
 0xdf8   :  { %v210_v27 = vpop.permute.xlu0 %209 }
 0xdf9   :  { %v242_v12 = vsel %vm178_vm8, %v210_v27, %v234_v29  ;;  %vm789_vm8 = vcmask 261120   ;;  %v1776_v27 = vld [vmem:[#allocation11 + $0x28] sm:$0xff] }
 0xdfc   :  { %v274_v13 = vpop.permute.xlu0 %273 }
 0xdfd   :  { %vm282_vm10 = vcmp.lt.s32.totalorder %v242_v12, %v274_v13  ;;  %v1758_v12 = vld [vmem:[#allocation10 + $0x18] sm:$0xff]  ;;  %v1775_v13 = vld [vmem:[#allocation11 + $0x20] sm:$0xff] }
 0xdfe   :  { %v3171_v51 = vsel %vm282_vm10, 1.0, %v3600_v1 }
 0xdff   :  { %307 = vst.msk [vmem:[#allocation5 + $0x38] sm:$0xff] %vm299_vm9, %v3171_v51  ;;  %v1757_v51 = vld [vmem:[#allocation10 + $0x10] sm:$0xff] }
 0xe06   :  { %v1735_v52 = vld [vmem:[#allocation5 + $0x38] sm:$0xff] }
 0xe4f   :  { %v4300_v39 = vpop.permute.xlu1 %1722 }
 0xe53   :  { %v782_v5 = vpop.permute.xlu1 %781 }
 0xe54   :  { %v784_v57 = vmul.f32 %v782_v5, %v4013_v11  ;;  %v1756_v5 = vld [vmem:[#allocation10 + $0x8] sm:$0xff] }
 0xe56   :  { %786 = vrot.lane.b32.xlu1 %v784_v57, %s3602_s6  ;;  %v1773_v57 = vld [vmem:[#allocation11 + $0x10] sm:$0xff] }
 0xe57   :  { %v923_v9 = vpop.permute.xlu1 %922 }
 0xe58   :  { %v925_v16 = vmul.f32 %v923_v9, %v4059_v56  ;;  %v1755_v9 = vld [vmem:[#allocation10] sm:$0xff] }
 0xe5a   :  { %927 = vrot.lane.b32.xlu1 %v925_v16, %s3602_s6  ;;  %v1772_v16 = vld [vmem:[#allocation11 + $0x8] sm:$0xff] }
 0xe5b   :  { %v1063_v15 = vpop.permute.xlu1 %1062 }
 0xe5c   :  { %v1065_v43 = vmul.f32 %v1063_v15, %v4107_v55  ;;  %v1771_v15 = vld [vmem:[#allocation11] sm:$0xff] }
 0xe5e   :  { %1067 = vrot.lane.b32.xlu1 %v1065_v43, %s3602_s6  ;;  %v4328_v43 = vld [vmem:[#allocation13 + $0x78] sm:$0xff] }
 0xe5f   :  { %v1203_v8 = vpop.permute.xlu1 %1202 }
 0xe60   :  { %v1205_v14 = vmul.f32 %v1203_v8, %v4155_v45 }
 0xe62   :  { %1207 = vrot.lane.b32.xlu1 %v1205_v14, %s3602_s6 }
 0xead   :  { %v1701_v10 = vpop.f32.mrf.mxu1 }
 0xeae   :  { %v1706_v11 = vadd.f32 %v1701_v10, %v4000_v53 }
 0xeaf   :  { %v1703_v61 = vpop.f32.mrf.mxu1 }
 0xeb0   :  { %v3209_v30 = vmul.f32 -1.442695, %v1706_v11  ;;  %v1707_v56 = vadd.f32 %v1703_v61, %v4002_v21 }
 0xeb2   :  { %3378 = vpow2.f32 %v3209_v30  ;;  %v3210_v31 = vmul.f32 -1.442695, %v1707_v56 }
 0xeb3   :  { %3380 = vtanh.f32 %v1707_v56 }
 0xebf   :  { %v3379_v23 = vpop.eup %3378 }
 0xec0   :  { %v1711_v36 = vadd.f32 1.0, %v3379_v23  ;;  %v3381_v53 = vpop.eup %3380 }
 0xec2   :  { %3382 = vrcp.f32 %v1711_v36 }
 0xec3   :  { %3384 = vpow2.f32 %v3210_v31  ;;  %v1803_v31 = vld [vmem:[%s4681_s10] sm:$0x3] }
 0xec8   :  { %v787_v55 = vpop.permute.xlu1 %786 }
 0xec9   :  { %790 = vst.msk [vmem:[#allocation4] sm:$0xff] %vm789_vm8, %v787_v55 }
 0xeca   :  { %793 = vst.msk [vmem:[#allocation4 + $0x38] sm:$0xff] %vm792_vm11, %v787_v55 }
 0xecc   :  { %v928_v45 = vpop.permute.xlu1 %927 }
 0xecd   :  { %931 = vst.msk [vmem:[#allocation4 + $0x8] sm:$0xff] %vm789_vm8, %v928_v45 }
 0xece   :  { %933 = vst.msk [vmem:[#allocation4 + $0x30] sm:$0xff] %vm792_vm11, %v928_v45 }
 0xecf   :  { %v3383_v49 = vpop.eup %3382 }
 0xed0   :  { %v1068_v19 = vpop.permute.xlu1 %1067  ;;  %v1726_v21 = vmul.f32 %v3383_v49, %v3381_v53  ;;  %v3385_v32 = vpop.eup %3384  ;;  %v1725_v35 = vmul.f32 %v3383_v49, %v4300_v39  ;;  %v1774_v39 = vld [vmem:[#allocation11 + $0x18] sm:$0xff] }
 0xed1   :  { %1071 = vst.msk [vmem:[#allocation4 + $0x10] sm:$0xff] %vm789_vm8, %v1068_v19  ;;  %v1718_v34 = vadd.f32 1.0, %v3385_v32 }
 0xed2   :  { %1073 = vst.msk [vmem:[#allocation4 + $0x28] sm:$0xff] %vm792_vm11, %v1068_v19  ;;  %1728 = vrot.lane.b32.xlu0 %v1726_v21, %s3602_s6  ;;  %v4345_v19 = vld [vmem:[#allocation13 + $0x68] sm:$0xff] }
 0xed3   :  { %3386 = vrcp.f32 %v1718_v34 }
 0xed4   :  { %v1208_v48 = vpop.permute.xlu1 %1207 }
 0xed5   :  { %1211 = vst.msk [vmem:[#allocation4 + $0x18] sm:$0xff] %vm789_vm8, %v1208_v48 }
 0xed6   :  { %1213 = vst.msk [vmem:[#allocation4 + $0x20] sm:$0xff] %vm792_vm11, %v1208_v48  ;;  %1737 = vrot.lane.b32.xlu0 %v1735_v52, %s3602_s6  ;;  %v4358_v52 = vld [vmem:[#allocation13 + $0x58] sm:$0xff] }
 0xeda   :  { %1612 = vrot.lane.b32.xlu0 %v1599_v50, %s3602_s6  ;;  %v1761_v50 = vld [vmem:[#allocation10 + $0x30] sm:$0xff] }
 0xede   :  { %1476 = vrot.lane.b32.xlu0 %v4253_v62, %s3602_s6  ;;  %v1782_v62 = vld [vmem:[#allocation11 + $0x58] sm:$0xff] }
 0xedf   :  { %1988 = vmatprep.subr.mxu1 %v1782_v62 }
 0xee0   :  { %1989 = vmatpush1.msra.mxu1 %v1781_v58  ;;  %v3387_v8 = vpop.eup %3386  ;;  %v4413_v58 = vld [vmem:[#allocation13 + $0x10] sm:$0xff] }
 0xee1   :  { %1990 = vmatprep.subr.mxu1 %v1780_v24 }
 0xee2   :  { %1340 = vrot.lane.b32.xlu0 %v4206_v47, %s3602_s6  ;;  %v1764_v47 = vld [vmem:[#allocation10 + $0x48] sm:$0xff]  ;;  %1991 = vmatpush1.msra.mxu1 %v1779_v26  ;;  %v4425_v26 = vld [vmem:[#allocation13] sm:$0xff] }
 0xee3   :  { %1861 = vmatprep.subr.mxu0 %v1764_v47  ;;  %1992 = vmatprep.subr.mxu1 %v1778_v44  ;;  %v4408_v47 = vld [vmem:[#allocation13 + $0x18] sm:$0xff] }
 0xee4   :  { %1862 = vmatpush1.msra.mxu0 %v1763_v25  ;;  %1993 = vmatpush1.msra.mxu1 %v1777_v0  ;;  %v4420_v25 = vld [vmem:[#allocation13 + $0x8] sm:$0xff] }
 0xee5   :  { %1863 = vmatprep.subr.mxu0 %v1762_v28  ;;  %1994 = vmatprep.subr.mxu1 %v1776_v27 }
 0xee6   :  { %1864 = vmatpush1.msra.mxu0 %v1761_v50  ;;  %1995 = vmatpush1.msra.mxu1 %v1775_v13 }
 0xee7   :  { %1865 = vmatprep.subr.mxu0 %v1760_v2  ;;  %1996 = vmatprep.subr.mxu1 %v1774_v39  ;;  %v1812_v2 = vrot.slane %v1803_v31, %v396_v46 }
 0xee8   :  { %1866 = vmatpush1.msra.mxu0 %v1759_v6  ;;  %1997 = vmatpush1.msra.mxu1 %v1773_v57 }
 0xee9   :  { %1867 = vmatprep.subr.mxu0 %v1758_v12  ;;  %1998 = vmatprep.subr.mxu1 %v1772_v16 }
 0xeea   :  { %1868 = vmatpush1.msra.mxu0 %v1757_v51  ;;  %1999 = vmatpush1.msra.mxu1 %v1771_v15 }
 0xeeb   :  { %1869 = vmatprep.subr.mxu0 %v1756_v5  ;;  %2235 = vmatprep.subr.mxu1 %v4328_v43 }
 0xeec   :  { %1870 = vmatpush1.msra.mxu0 %v1755_v9 }
 0xeed   :  { %2119 = vmatprep.subr.mxu0 %v4328_v43 }
 0xf44   :  { %v1729_v37 = vpop.permute.xlu0 %1728 }
 0xf45   :  { %v1731_v40 = vadd.f32 %v1729_v37, %v1725_v35 }
 0xf47   :  { %3388 = vtanh.f32 %v1731_v40  ;;  %v1808_v40 = vrot.slane %v1803_v31, %v392_v42 }
 0xf48   :  { %v1738_v29 = vpop.permute.xlu0 %1737 }
 0xf4c   :  { %v1613_v10 = vpop.permute.xlu0 %1612 }
 0xf4d   :  { %v1615_v56 = vmul.f32 %v1613_v10, %v4278_v38  ;;  %v4343_v38 = vld [vmem:[#allocation13 + $0x70] sm:$0xff] }
 0xf50   :  { %v1477_v61 = vpop.permute.xlu0 %1476 }
 0xf51   :  { %v1479_v23 = vmul.f32 %v1477_v61, %v4249_v7 }
 0xf54   :  { %v3389_v14 = vpop.eup %3388  ;;  %v1341_v36 = vpop.permute.xlu0 %1340 }
 0xf55   :  { %v1733_v11 = vmul.f32 %v3389_v14, %v3387_v8  ;;  %v1343_v55 = vmul.f32 %v1341_v36, %v4202_v54  ;;  %v4351_v54 = vld [vmem:[#allocation13 + $0x60] sm:$0xff] }
 0xf57   :  { %v1740_v30 = vmul.f32 %v1738_v29, %v1733_v11 }
 0xf59   :  { %1742 = vrot.lane.b32.xlu0 %v1740_v30, %s3602_s6 }
 0xf5d   :  { %1617 = vrot.lane.b32.xlu0 %v1615_v56, %s3602_s6 }
 0xf61   :  { %1481 = vrot.lane.b32.xlu0 %v1479_v23, %s3602_s6 }
 0xf65   :  { %1345 = vrot.lane.b32.xlu0 %v1343_v55, %s3602_s6 }
 0xfcb   :  { %v1743_v45 = vpop.permute.xlu0 %1742 }
 0xfcc   :  { %1745 = vst.msk [vmem:[#allocation4 + $0x38] sm:$0xff] %vm789_vm8, %v1743_v45 }
 0xfcd   :  { %1746 = vst.msk [vmem:[#allocation4] sm:$0xff] %vm792_vm11, %v1743_v45 }
 0xfcf   :  { %v1618_v53 = vpop.permute.xlu0 %1617 }
 0xfd0   :  { %1620 = vst.msk [vmem:[#allocation4 + $0x30] sm:$0xff] %vm789_vm8, %v1618_v53 }
 0xfd1   :  { %1621 = vst.msk [vmem:[#allocation4 + $0x8] sm:$0xff] %vm792_vm11, %v1618_v53 }
 0xfd3   :  { %v1482_v7 = vpop.permute.xlu0 %1481  ;;  %v1754_v28 = vld [vmem:[#allocation4 + $0x38] sm:$0xff] }
 0xfd4   :  { %v1747_v49 = vld [vmem:[#allocation4] sm:$0xff]  ;;  %1484 = vst.msk [vmem:[#allocation4 + $0x28] sm:$0xff] %vm789_vm8, %v1482_v7 }
 0xfd5   :  { %1485 = vst.msk [vmem:[#allocation4 + $0x10] sm:$0xff] %vm792_vm11, %v1482_v7  ;;  %3211 = vmatmul.mubr.msk.f32.vlgmr.msra.gmra.mxu0 %vm299_vm9, %v1747_v49  ;;  %3219 = vmatmul.mubr.msk.f32.vlgmr.msra.gmra.mxu1 %vm299_vm9, %v1747_v49 }
 0xfd6   :  { %2120 = vmatpush1.msra.mxu0 %v4343_v38  ;;  %1909 = vmatprep.mubr.f32.mxu0 %v3600_v1 }
 0xfd7   :  { %2038 = vmatprep.mubr.f32.mxu1 %v3600_v1  ;;  %2121 = vmatprep.subr.mxu0 %v4345_v19  ;;  %v1346_v21 = vpop.permute.xlu0 %1345  ;;  %v1753_v24 = vld [vmem:[#allocation4 + $0x30] sm:$0xff] }
 0xfd8   :  { %v1748_v48 = vld [vmem:[#allocation4 + $0x8] sm:$0xff]  ;;  %2122 = vmatpush1.msra.mxu0 %v4351_v54  ;;  %2236 = vmatpush1.msra.mxu1 %v4343_v38  ;;  %1348 = vst.msk [vmem:[#allocation4 + $0x20] sm:$0xff] %vm789_vm8, %v1346_v21 }
 0xfd9   :  { %1349 = vst.msk [vmem:[#allocation4 + $0x18] sm:$0xff] %vm792_vm11, %v1346_v21  ;;  %3212 = vmatmul.mubr.msk.f32.gmra.mxu0 %vm299_vm9, %v1748_v48  ;;  %3220 = vmatmul.mubr.msk.f32.gmra.mxu1 %vm299_vm9, %v1748_v48 }
 0xfda   :  { %1915 = vmatprep.mubr.f32.mxu0 %v3600_v1  ;;  %2044 = vmatprep.mubr.f32.mxu1 %v3600_v1 }
 0xfdb   :  { %2123 = vmatprep.subr.mxu0 %v4358_v52  ;;  %2237 = vmatprep.subr.mxu1 %v4345_v19  ;;  %v1752_v62 = vld [vmem:[#allocation4 + $0x28] sm:$0xff] }
 0xfdc   :  { %v1749_v60 = vld [vmem:[#allocation4 + $0x10] sm:$0xff]  ;;  %2124 = vmatpush1.msra.mxu0 %v4365_v33  ;;  %2238 = vmatpush1.msra.mxu1 %v4351_v54 }
 0xfdd   :  { %3213 = vmatmul.mubr.msk.f32.gmra.mxu0 %vm299_vm9, %v1749_v60  ;;  %3221 = vmatmul.mubr.msk.f32.gmra.mxu1 %vm299_vm9, %v1749_v60 }
 0xfde   :  { %1921 = vmatprep.mubr.f32.mxu0 %v3600_v1  ;;  %2050 = vmatprep.mubr.f32.mxu1 %v3600_v1 }
 0xfdf   :  { %2125 = vmatprep.subr.mxu0 %v4372_v63  ;;  %2239 = vmatprep.subr.mxu1 %v4358_v52  ;;  %v1751_v18 = vld [vmem:[#allocation4 + $0x20] sm:$0xff] }
 0xfe0   :  { %v1750_v59 = vld [vmem:[#allocation4 + $0x18] sm:$0xff]  ;;  %2126 = vmatpush1.msra.mxu0 %v4377_v3  ;;  %2240 = vmatpush1.msra.mxu1 %v4365_v33 }
 0xfe1   :  { %3214 = vmatmul.mubr.msk.f32.gmra.mxu0 %vm299_vm9, %v1750_v59  ;;  %3222 = vmatmul.mubr.msk.f32.gmra.mxu1 %vm299_vm9, %v1750_v59 }
 0xfe2   :  { %1927 = vmatprep.mubr.f32.mxu0 %v3600_v1  ;;  %2056 = vmatprep.mubr.f32.mxu1 %v3600_v1 }
 0xfe3   :  { %2127 = vmatprep.subr.mxu0 %v4384_v17  ;;  %2241 = vmatprep.subr.mxu1 %v4372_v63 }
 0xfe4   :  { %2128 = vmatpush1.msra.mxu0 %v4389_v4  ;;  %2242 = vmatpush1.msra.mxu1 %v4377_v3 }
 0xfe5   :  { %3215 = vmatmul.mubr.msk.f32.gmra.mxu0 %vm299_vm9, %v1751_v18  ;;  %3223 = vmatmul.mubr.msk.f32.gmra.mxu1 %vm299_vm9, %v1751_v18 }
 0xfe6   :  { %1933 = vmatprep.mubr.f32.mxu0 %v3600_v1  ;;  %2062 = vmatprep.mubr.f32.mxu1 %v3600_v1 }
 0xfe7   :  { %2129 = vmatprep.subr.mxu0 %v4396_v20  ;;  %2243 = vmatprep.subr.mxu1 %v4384_v17 }
 0xfe8   :  { %2130 = vmatpush1.msra.mxu0 %v4401_v22  ;;  %2244 = vmatpush1.msra.mxu1 %v4389_v4 }
 0xfe9   :  { %3216 = vmatmul.mubr.msk.f32.gmra.mxu0 %vm299_vm9, %v1752_v62  ;;  %3224 = vmatmul.mubr.msk.f32.gmra.mxu1 %vm299_vm9, %v1752_v62 }
 0xfea   :  { %1939 = vmatprep.mubr.f32.mxu0 %v3600_v1  ;;  %2068 = vmatprep.mubr.f32.mxu1 %v3600_v1 }
 0xfeb   :  { %2131 = vmatprep.subr.mxu0 %v4408_v47  ;;  %2245 = vmatprep.subr.mxu1 %v4396_v20 }
 0xfec   :  { %2132 = vmatpush1.msra.mxu0 %v4413_v58  ;;  %2246 = vmatpush1.msra.mxu1 %v4401_v22 }
 0xfed   :  { %3217 = vmatmul.mubr.msk.f32.gmra.mxu0 %vm299_vm9, %v1753_v24  ;;  %3225 = vmatmul.mubr.msk.f32.gmra.mxu1 %vm299_vm9, %v1753_v24 }
 0xfee   :  { %1945 = vmatprep.mubr.f32.mxu0 %v3600_v1  ;;  %2074 = vmatprep.mubr.f32.mxu1 %v3600_v1 }
 0xfef   :  { %2133 = vmatprep.subr.mxu0 %v4420_v25  ;;  %2247 = vmatprep.subr.mxu1 %v4408_v47 }
 0xff0   :  { %2134 = vmatpush1.msra.mxu0 %v4425_v26  ;;  %2248 = vmatpush1.msra.mxu1 %v4413_v58 }
 0xff1   :  { %3218 = vmatmul.mubr.msk.f32.gmra.mxu0 %vm299_vm9, %v1754_v28  ;;  %3226 = vmatmul.mubr.msk.f32.gmra.mxu1 %vm299_vm9, %v1754_v28 }
 0xff2   :  { %2167 = vmatprep.mubr.f32.mxu0 %v3600_v1  ;;  %2249 = vmatprep.subr.mxu1 %v4420_v25 }
 0xff3   :  { %2250 = vmatpush1.msra.mxu1 %v4425_v26  ;;  %2283 = vmatprep.mubr.f32.mxu1 %v3600_v1 }
 0xff4   :  { %2355 = vmatprep.subr.mxu0 %v4328_v43  ;;  %2475 = vmatprep.subr.mxu1 %v4328_v43 }
 0xff5   :  { %2168 = vmatmul.mubr.f32.vlgmr.msra.gmra.mxu0 %v3600_v1 }
 0xff6   :  { %2356 = vmatpush1.msra.mxu0 %v4343_v38  ;;  %2403 = vmatprep.mubr.f32.mxu0 %v3600_v1 }
 0xff7   :  { %2357 = vmatprep.subr.mxu0 %v4345_v19 }
 0xff8   :  { %2358 = vmatpush1.msra.mxu0 %v4351_v54 }
 0xff9   :  { %2359 = vmatprep.subr.mxu0 %v4358_v52 }
 0xffa   :  { %2360 = vmatpush1.msra.mxu0 %v4365_v33 }
 0xffb   :  { %2361 = vmatprep.subr.mxu0 %v4372_v63 }
 0xffc   :  { %2362 = vmatpush1.msra.mxu0 %v4377_v3 }
 0xffd   :  { %2363 = vmatprep.subr.mxu0 %v4384_v17 }
 0xffe   :  { %2364 = vmatpush1.msra.mxu0 %v4389_v4 }
 0xfff   :  { %2365 = vmatprep.subr.mxu0 %v4396_v20 }
0x1000   :  { %2366 = vmatpush1.msra.mxu0 %v4401_v22 }
0x1001   :  { %2367 = vmatprep.subr.mxu0 %v4408_v47 }
0x1002   :  { %2368 = vmatpush1.msra.mxu0 %v4413_v58 }
0x1003   :  { %2369 = vmatprep.subr.mxu0 %v4420_v25 }
0x1004   :  { %2370 = vmatpush1.msra.mxu0 %v4425_v26 }
0x1005   :  { %2595 = vmatprep.subr.mxu0 %v4328_v43 }
0x1095   :  { %v1905_v32 = vpop.f32.mrf.mxu0  ;;  %v2034_v34 = vpop.f32.mrf.mxu1 }
0x1097   :  { %v4462_v35 = vpop.f32.mrf.mxu0  ;;  %v2036_v37 = vpop.f32.mrf.mxu1 }
0x1099   :  { %v1911_v50 = vpop.f32.mrf.mxu0  ;;  %v2040_v44 = vpop.f32.mrf.mxu1 }
0x109a   :  { %v1912_v0 = vadd.f32 %v1911_v50, %v1808_v40 }
0x109b   :  { %v1913_v6 = vpop.f32.mrf.mxu0  ;;  %v2042_v27 = vpop.f32.mrf.mxu1 }
0x109c   :  { %v1914_v29 = vadd.f32 %v1913_v6, %v1812_v2 }
0x109d   :  { %v1917_v12 = vpop.f32.mrf.mxu0  ;;  %v2046_v13 = vpop.f32.mrf.mxu1 }
0x109e   :  { %v1918_v51 = vadd.f32 %v1917_v12, %v1808_v40 }
0x109f   :  { %v1919_v39 = vpop.f32.mrf.mxu0  ;;  %v2048_v5 = vpop.f32.mrf.mxu1 }
0x10a0   :  { %v1920_v57 = vadd.f32 %v1919_v39, %v1812_v2 }
0x10a1   :  { %v1923_v9 = vpop.f32.mrf.mxu0  ;;  %v2052_v16 = vpop.f32.mrf.mxu1 }
0x10a2   :  { %v1924_v15 = vadd.f32 %v1923_v9, %v1808_v40 }
0x10a3   :  { %v1925_v8 = vpop.f32.mrf.mxu0  ;;  %v2054_v42 = vpop.f32.mrf.mxu1 }
0x10a4   :  { %v1926_v14 = vadd.f32 %v1925_v8, %v1812_v2 }
0x10a5   :  { %v1929_v10 = vpop.f32.mrf.mxu0  ;;  %v2058_v11 = vpop.f32.mrf.mxu1 }
0x10a6   :  { %v1930_v41 = vadd.f32 %v1929_v10, %v1808_v40  ;;  %v4468_v46 = vadd.f32 %v2058_v11, %v1924_v15 }
0x10a7   :  { %v1931_v30 = vpop.f32.mrf.mxu0  ;;  %v2060_v61 = vpop.f32.mrf.mxu1 }
0x10a8   :  { %v1932_v56 = vadd.f32 %v1931_v30, %v1812_v2  ;;  %v4470_v23 = vadd.f32 %v2060_v61, %v1926_v14  ;;  %v4472_v36 = vadd.f32 %v2052_v16, %v1930_v41 }
0x10a9   :  { %v1935_v55 = vpop.f32.mrf.mxu0  ;;  %v2064_v45 = vpop.f32.mrf.mxu1 }
0x10aa   :  { %v1936_v53 = vadd.f32 %v1935_v55, %v1808_v40  ;;  %v4474_v7 = vadd.f32 %v2064_v45, %v1918_v51  ;;  %v4476_v49 = vadd.f32 %v2054_v42, %v1932_v56 }
0x10ab   :  { %v1937_v21 = vpop.f32.mrf.mxu0  ;;  %v2066_v48 = vpop.f32.mrf.mxu1 }
0x10ac   :  { %v1938_v60 = vadd.f32 %v1937_v21, %v1812_v2  ;;  %v4478_v59 = vadd.f32 %v2066_v48, %v1920_v57  ;;  %v4480_v18 = vadd.f32 %v2046_v13, %v1936_v53  ;;  %v1906_v57 = vadd.f32 %v1905_v32, %v1808_v40 }
0x10ad   :  { %v1941_v62 = vpop.f32.mrf.mxu0  ;;  %v2070_v24 = vpop.f32.mrf.mxu1 }
0x10ae   :  { %v1942_v28 = vadd.f32 %v1941_v62, %v1808_v40  ;;  %v4482_v31 = vadd.f32 %v2070_v24, %v1912_v0  ;;  %v4484_v50 = vadd.f32 %v2048_v5, %v1938_v60 }
0x10af   :  { %v1943_v6 = vpop.f32.mrf.mxu0  ;;  %v2072_v12 = vpop.f32.mrf.mxu1 }
0x10b0   :  { %v1944_v51 = vadd.f32 %v1943_v6, %v1812_v2  ;;  %v4486_v39 = vadd.f32 %v2072_v12, %v1914_v29  ;;  %v4488_v9 = vadd.f32 %v2040_v44, %v1942_v28  ;;  %v1908_v44 = vadd.f32 %v4462_v35, %v1812_v2  ;;  %v2198_v28 = vld [vmem:[#allocation5] sm:$0xff] }
0x10b1   :  { %v1947_v16 = vpop.f32.mrf.mxu0  ;;  %v2076_v15 = vpop.f32.mrf.mxu1  ;;  %vm2199_vm12 = vcmp.gt.f32.partialorder %v2198_v28, 0.0 }
0x10b2   :  { %v1948_v8 = vadd.f32 %v1947_v16, %v1808_v40  ;;  %v4490_v13 = vadd.f32 %v2042_v27, %v1944_v51  ;;  %v2101_v14 = vadd.f32 %v2076_v15, %v1906_v57 }
0x10b3   :  { %v1949_v42 = vpop.f32.mrf.mxu0  ;;  %v2078_v29 = vpop.f32.mrf.mxu1 }
0x10b4   :  { %v1950_v10 = vadd.f32 %v1949_v42, %v1812_v2  ;;  %v4492_v0 = vadd.f32 %v2034_v34, %v1948_v8  ;;  %v2102_v56 = vadd.f32 %v2078_v29, %v1908_v44 }
0x10b5   :  { %v2169_v5 = vpop.f32.mrf.mxu0 }
0x10b6   :  { %v2174_v11 = vadd.f32 %v2169_v5, %v2101_v14  ;;  %v4494_v41 = vadd.f32 %v2036_v37, %v1950_v10 }
0x10b7   :  { %v2171_v61 = vpop.f32.mrf.mxu0 }
0x10b8   :  { %v3227_v30 = vmul.f32 -1.442695, %v2174_v11  ;;  %v2175_v32 = vadd.f32 %v2171_v61, %v2102_v56 }
0x10ba   :  { %3390 = vpow2.f32 %v3227_v30  ;;  %v3228_v53 = vmul.f32 -1.442695, %v2175_v32 }
0x10bb   :  { %3392 = vtanh.f32 %v2175_v32 }
0x10c7   :  { %v3391_v40 = vpop.eup %3390 }
0x10c8   :  { %v2179_v27 = vadd.f32 1.0, %v3391_v40  ;;  %v3393_v55 = vpop.eup %3392 }
0x10ca   :  { %3394 = vrcp.f32 %v2179_v27 }
0x10cb   :  { %3396 = vpow2.f32 %v3228_v53 }
0x10d7   :  { %v3395_v45 = vpop.eup %3394 }
0x10d8   :  { %v2190_v34 = vmul.f32 %v3395_v45, %v3393_v55  ;;  %v3397_v37 = vpop.eup %3396  ;;  %v2189_v48 = vmul.f32 0.0, %v3395_v45 }
0x10d9   :  { %v2186_v21 = vadd.f32 1.0, %v3397_v37 }
0x10da   :  { %2192 = vrot.lane.b32.xlu1 %v2190_v34, %s3602_s6  ;;  %v2318_v34 = vld [vmem:[#allocation5 + $0x8] sm:$0xff] }
0x10db   :  { %3398 = vrcp.f32 %v2186_v21  ;;  %vm2319_vm13 = vcmp.gt.f32.partialorder %v2318_v34, 0.0 }
0x10e8   :  { %v3399_v35 = vpop.eup %3398 }
0x114c   :  { %v2193_v60 = vpop.permute.xlu1 %2192 }
0x114d   :  { %v2195_v62 = vadd.f32 %v2193_v60, %v2189_v48 }
0x114f   :  { %3400 = vtanh.f32 %v2195_v62  ;;  %2206 = vrot.lane.b32.xlu1 %v2195_v62, %s3602_s6 }
0x115c   :  { %v3401_v2 = vpop.eup %3400 }
0x115d   :  { %v2197_v24 = vmul.f32 %v3401_v2, %v3399_v35 }
0x115f   :  { %2201 = vrot.lane.b32.xlu0 %v2197_v24, %s3602_s6 }
0x11c1   :  { %v2207_v6 = vpop.permute.xlu1 %2206 }
0x11c2   :  { %v2209_v12 = vsel %vm2199_vm12, %v2207_v6, 0.0 }
0x11c3   :  { %2306 = vrot.lane.b32.xlu0 %v2209_v12, %s3602_s6 }
0x11d1   :  { %v2202_v51 = vpop.permute.xlu0 %2201 }
0x11d2   :  { %v2204_v16 = vsel %vm2199_vm12, %v2202_v51, 0.0 }
0x11d3   :  { %3229 = vmatmul.mubr.msk.f32.vlgmr.msra.gmra.mxu1 %vm299_vm9, %v2204_v16 }
0x11d4   :  { %2476 = vmatpush1.msra.mxu1 %v4343_v38  ;;  %2523 = vmatprep.mubr.f32.mxu1 %v3600_v1 }
0x11d5   :  { %2477 = vmatprep.subr.mxu1 %v4345_v19 }
0x11d6   :  { %2478 = vmatpush1.msra.mxu1 %v4351_v54 }
0x11d7   :  { %2479 = vmatprep.subr.mxu1 %v4358_v52 }
0x11d8   :  { %2480 = vmatpush1.msra.mxu1 %v4365_v33 }
0x11d9   :  { %2481 = vmatprep.subr.mxu1 %v4372_v63 }
0x11da   :  { %2482 = vmatpush1.msra.mxu1 %v4377_v3 }
0x11db   :  { %2483 = vmatprep.subr.mxu1 %v4384_v17 }
0x11dc   :  { %2484 = vmatpush1.msra.mxu1 %v4389_v4 }
0x11dd   :  { %2485 = vmatprep.subr.mxu1 %v4396_v20 }
0x11de   :  { %2486 = vmatpush1.msra.mxu1 %v4401_v22 }
0x11df   :  { %2487 = vmatprep.subr.mxu1 %v4408_v47 }
0x11e0   :  { %2488 = vmatpush1.msra.mxu1 %v4413_v58 }
0x11e1   :  { %2489 = vmatprep.subr.mxu1 %v4420_v25 }
0x11e2   :  { %2490 = vmatpush1.msra.mxu1 %v4425_v26 }
0x11e3   :  { %2715 = vmatprep.subr.mxu1 %v4328_v43 }
0x1235   :  { %v2307_v56 = vpop.permute.xlu0 %2306 }
0x1293   :  { %v2285_v15 = vpop.f32.mrf.mxu1 }
0x1294   :  { %v2290_v57 = vadd.f32 %v2285_v15, %v4482_v31 }
0x1295   :  { %v2287_v42 = vpop.f32.mrf.mxu1 }
0x1296   :  { %v3230_v8 = vmul.f32 -1.442695, %v2290_v57  ;;  %v2291_v14 = vadd.f32 %v2287_v42, %v4486_v39 }
0x1298   :  { %3402 = vpow2.f32 %v3230_v8  ;;  %v3231_v44 = vmul.f32 -1.442695, %v2291_v14 }
0x1299   :  { %3404 = vtanh.f32 %v2291_v14 }
0x12a5   :  { %v3403_v10 = vpop.eup %3402 }
0x12a6   :  { %v2295_v5 = vadd.f32 1.0, %v3403_v10  ;;  %v3405_v11 = vpop.eup %3404 }
0x12a8   :  { %3406 = vrcp.f32 %v2295_v5 }
0x12a9   :  { %3408 = vpow2.f32 %v3231_v44 }
0x12b5   :  { %v3407_v30 = vpop.eup %3406 }
0x12b6   :  { %v2310_v29 = vmul.f32 %v3407_v30, %v3405_v11  ;;  %v3409_v61 = vpop.eup %3408  ;;  %v2309_v31 = vmul.f32 %v3407_v30, %v2307_v56  ;;  %v2438_v30 = vld [vmem:[#allocation5 + $0x10] sm:$0xff] }
0x12b7   :  { %v2302_v32 = vadd.f32 1.0, %v3409_v61  ;;  %vm2439_vm14 = vcmp.gt.f32.partialorder %v2438_v30, 0.0 }
0x12b8   :  { %2312 = vrot.lane.b32.xlu1 %v2310_v29, %s3602_s6 }
0x12b9   :  { %3410 = vrcp.f32 %v2302_v32 }
0x12c6   :  { %v3411_v39 = vpop.eup %3410 }
0x132a   :  { %v2313_v40 = vpop.permute.xlu1 %2312 }
0x132b   :  { %v2315_v27 = vadd.f32 %v2313_v40, %v2309_v31 }
0x132d   :  { %3412 = vtanh.f32 %v2315_v27  ;;  %2326 = vrot.lane.b32.xlu1 %v2315_v27, %s3602_s6 }
0x133a   :  { %v3413_v55 = vpop.eup %3412 }
0x133b   :  { %v2317_v45 = vmul.f32 %v3413_v55, %v3411_v39 }
0x133d   :  { %2321 = vrot.lane.b32.xlu0 %v2317_v45, %s3602_s6 }
0x139f   :  { %v2327_v53 = vpop.permute.xlu1 %2326 }
0x13a0   :  { %v2329_v37 = vsel %vm2319_vm13, %v2327_v53, %v2209_v12 }
0x13a1   :  { %2426 = vrot.lane.b32.xlu0 %v2329_v37, %s3602_s6 }
0x13af   :  { %v2322_v21 = vpop.permute.xlu0 %2321 }
0x13b0   :  { %v2324_v48 = vsel %vm2319_vm13, %v2322_v21, %v2204_v16 }
0x13b1   :  { %3232 = vmatmul.mubr.msk.f32.vlgmr.msra.gmra.mxu0 %vm299_vm9, %v2324_v48 }
0x13b2   :  { %2596 = vmatpush1.msra.mxu0 %v4343_v38  ;;  %2643 = vmatprep.mubr.f32.mxu0 %v3600_v1 }
0x13b3   :  { %2597 = vmatprep.subr.mxu0 %v4345_v19 }
0x13b4   :  { %2598 = vmatpush1.msra.mxu0 %v4351_v54 }
0x13b5   :  { %2599 = vmatprep.subr.mxu0 %v4358_v52 }
0x13b6   :  { %2600 = vmatpush1.msra.mxu0 %v4365_v33 }
0x13b7   :  { %2601 = vmatprep.subr.mxu0 %v4372_v63 }
0x13b8   :  { %2602 = vmatpush1.msra.mxu0 %v4377_v3 }
0x13b9   :  { %2603 = vmatprep.subr.mxu0 %v4384_v17 }
0x13ba   :  { %2604 = vmatpush1.msra.mxu0 %v4389_v4 }
0x13bb   :  { %2605 = vmatprep.subr.mxu0 %v4396_v20 }
0x13bc   :  { %2606 = vmatpush1.msra.mxu0 %v4401_v22 }
0x13bd   :  { %2607 = vmatprep.subr.mxu0 %v4408_v47 }
0x13be   :  { %2608 = vmatpush1.msra.mxu0 %v4413_v58 }
0x13bf   :  { %2609 = vmatprep.subr.mxu0 %v4420_v25 }
0x13c0   :  { %2610 = vmatpush1.msra.mxu0 %v4425_v26 }
0x13c1   :  { %2835 = vmatprep.subr.mxu0 %v4328_v43 }
0x1413   :  { %v2427_v8 = vpop.permute.xlu0 %2426 }
0x1471   :  { %v2405_v60 = vpop.f32.mrf.mxu0 }
0x1472   :  { %v2410_v62 = vadd.f32 %v2405_v60, %v4474_v7 }
0x1473   :  { %v2407_v2 = vpop.f32.mrf.mxu0 }
0x1474   :  { %v3233_v35 = vmul.f32 -1.442695, %v2410_v62  ;;  %v2411_v24 = vadd.f32 %v2407_v2, %v4478_v59 }
0x1476   :  { %3414 = vpow2.f32 %v3233_v35  ;;  %v3234_v15 = vmul.f32 -1.442695, %v2411_v24 }
0x1477   :  { %3416 = vtanh.f32 %v2411_v24 }
0x1483   :  { %v3415_v28 = vpop.eup %3414 }
0x1484   :  { %v2415_v6 = vadd.f32 1.0, %v3415_v28  ;;  %v3417_v12 = vpop.eup %3416  ;;  %v2558_v28 = vld [vmem:[#allocation5 + $0x18] sm:$0xff] }
0x1485   :  { %vm2559_vm15 = vcmp.gt.f32.partialorder %v2558_v28, 0.0 }
0x1486   :  { %3418 = vrcp.f32 %v2415_v6 }
0x1487   :  { %3420 = vpow2.f32 %v3234_v15 }
0x1493   :  { %v3419_v51 = vpop.eup %3418 }
0x1494   :  { %v2430_v16 = vmul.f32 %v3419_v51, %v3417_v12  ;;  %v3421_v57 = vpop.eup %3420  ;;  %v2429_v7 = vmul.f32 %v3419_v51, %v2427_v8 }
0x1495   :  { %v2422_v42 = vadd.f32 1.0, %v3421_v57 }
0x1496   :  { %2432 = vrot.lane.b32.xlu1 %v2430_v16, %s3602_s6 }
0x1497   :  { %3422 = vrcp.f32 %v2422_v42 }
0x14a4   :  { %v3423_v59 = vpop.eup %3422 }
0x1508   :  { %v2433_v14 = vpop.permute.xlu1 %2432 }
0x1509   :  { %v2435_v10 = vadd.f32 %v2433_v14, %v2429_v7 }
0x150b   :  { %3424 = vtanh.f32 %v2435_v10  ;;  %2446 = vrot.lane.b32.xlu1 %v2435_v10, %s3602_s6 }
0x1518   :  { %v3425_v5 = vpop.eup %3424 }
0x1519   :  { %v2437_v11 = vmul.f32 %v3425_v5, %v3423_v59 }
0x151b   :  { %2441 = vrot.lane.b32.xlu0 %v2437_v11, %s3602_s6 }
0x157d   :  { %v2447_v29 = vpop.permute.xlu1 %2446 }
0x157e   :  { %v2449_v44 = vsel %vm2439_vm14, %v2447_v29, %v2329_v37 }
0x157f   :  { %2546 = vrot.lane.b32.xlu0 %v2449_v44, %s3602_s6 }
0x158d   :  { %v2442_v61 = vpop.permute.xlu0 %2441 }
0x158e   :  { %v2444_v56 = vsel %vm2439_vm14, %v2442_v61, %v2324_v48 }
0x158f   :  { %3235 = vmatmul.mubr.msk.f32.vlgmr.msra.gmra.mxu1 %vm299_vm9, %v2444_v56 }
0x1590   :  { %2716 = vmatpush1.msra.mxu1 %v4343_v38  ;;  %2763 = vmatprep.mubr.f32.mxu1 %v3600_v1 }
0x1591   :  { %2717 = vmatprep.subr.mxu1 %v4345_v19 }
0x1592   :  { %2718 = vmatpush1.msra.mxu1 %v4351_v54 }
0x1593   :  { %2719 = vmatprep.subr.mxu1 %v4358_v52 }
0x1594   :  { %2720 = vmatpush1.msra.mxu1 %v4365_v33 }
0x1595   :  { %2721 = vmatprep.subr.mxu1 %v4372_v63 }
0x1596   :  { %2722 = vmatpush1.msra.mxu1 %v4377_v3 }
0x1597   :  { %2723 = vmatprep.subr.mxu1 %v4384_v17 }
0x1598   :  { %2724 = vmatpush1.msra.mxu1 %v4389_v4 }
0x1599   :  { %2725 = vmatprep.subr.mxu1 %v4396_v20 }
0x159a   :  { %2726 = vmatpush1.msra.mxu1 %v4401_v22 }
0x159b   :  { %2727 = vmatprep.subr.mxu1 %v4408_v47 }
0x159c   :  { %2728 = vmatpush1.msra.mxu1 %v4413_v58 }
0x159d   :  { %2729 = vmatprep.subr.mxu1 %v4420_v25 }
0x159e   :  { %2730 = vmatpush1.msra.mxu1 %v4425_v26 }
0x159f   :  { %2955 = vmatprep.subr.mxu1 %v4328_v43 }
0x15f1   :  { %v2547_v48 = vpop.permute.xlu0 %2546 }
0x164f   :  { %v2525_v32 = vpop.f32.mrf.mxu1 }
0x1650   :  { %v2530_v31 = vadd.f32 %v2525_v32, %v4468_v46 }
0x1651   :  { %v2527_v27 = vpop.f32.mrf.mxu1 }
0x1652   :  { %v3236_v40 = vmul.f32 -1.442695, %v2530_v31  ;;  %v2531_v39 = vadd.f32 %v2527_v27, %v4470_v23  ;;  %v2678_v27 = vld [vmem:[#allocation5 + $0x20] sm:$0xff] }
0x1653   :  { %vm2679_vm0 = vcmp.gt.f32.partialorder %v2678_v27, 0.0 }
0x1654   :  { %3426 = vpow2.f32 %v3236_v40  ;;  %v3237_v21 = vmul.f32 -1.442695, %v2531_v39 }
0x1655   :  { %3428 = vtanh.f32 %v2531_v39 }
0x1661   :  { %v3427_v55 = vpop.eup %3426 }
0x1662   :  { %v2535_v45 = vadd.f32 1.0, %v3427_v55  ;;  %v3429_v34 = vpop.eup %3428 }
0x1664   :  { %3430 = vrcp.f32 %v2535_v45 }
0x1665   :  { %3432 = vpow2.f32 %v3237_v21 }
0x1671   :  { %v3431_v53 = vpop.eup %3430 }
0x1672   :  { %v2550_v37 = vmul.f32 %v3431_v53, %v3429_v34  ;;  %v3433_v43 = vpop.eup %3432  ;;  %v2549_v46 = vmul.f32 %v3431_v53, %v2547_v48 }
0x1673   :  { %v2542_v60 = vadd.f32 1.0, %v3433_v43  ;;  %v2798_v43 = vld [vmem:[#allocation5 + $0x28] sm:$0xff] }
0x1674   :  { %2552 = vrot.lane.b32.xlu1 %v2550_v37, %s3602_s6  ;;  %vm2799_vm1 = vcmp.gt.f32.partialorder %v2798_v43, 0.0 }
0x1675   :  { %3434 = vrcp.f32 %v2542_v60 }
0x1682   :  { %v3435_v23 = vpop.eup %3434 }
0x16e6   :  { %v2553_v62 = vpop.permute.xlu1 %2552 }
0x16e7   :  { %v2555_v35 = vadd.f32 %v2553_v62, %v2549_v46 }
0x16e9   :  { %3436 = vtanh.f32 %v2555_v35  ;;  %2566 = vrot.lane.b32.xlu1 %v2555_v35, %s3602_s6 }
0x16f6   :  { %v3437_v2 = vpop.eup %3436 }
0x16f7   :  { %v2557_v24 = vmul.f32 %v3437_v2, %v3435_v23 }
0x16f9   :  { %2561 = vrot.lane.b32.xlu0 %v2557_v24, %s3602_s6 }
0x175b   :  { %v2567_v6 = vpop.permute.xlu1 %2566 }
0x175c   :  { %v2569_v12 = vsel %vm2559_vm15, %v2567_v6, %v2449_v44 }
0x175d   :  { %2666 = vrot.lane.b32.xlu0 %v2569_v12, %s3602_s6 }
0x176b   :  { %v2562_v51 = vpop.permute.xlu0 %2561 }
0x176c   :  { %v2564_v16 = vsel %vm2559_vm15, %v2562_v51, %v2444_v56 }
0x176d   :  { %3238 = vmatmul.mubr.msk.f32.vlgmr.msra.gmra.mxu0 %vm299_vm9, %v2564_v16 }
0x176e   :  { %2836 = vmatpush1.msra.mxu0 %v4343_v38  ;;  %2883 = vmatprep.mubr.f32.mxu0 %v3600_v1 }
0x176f   :  { %2837 = vmatprep.subr.mxu0 %v4345_v19 }
0x1770   :  { %2838 = vmatpush1.msra.mxu0 %v4351_v54 }
0x1771   :  { %2839 = vmatprep.subr.mxu0 %v4358_v52 }
0x1772   :  { %2840 = vmatpush1.msra.mxu0 %v4365_v33 }
0x1773   :  { %2841 = vmatprep.subr.mxu0 %v4372_v63 }
0x1774   :  { %2842 = vmatpush1.msra.mxu0 %v4377_v3 }
0x1775   :  { %2843 = vmatprep.subr.mxu0 %v4384_v17 }
0x1776   :  { %2844 = vmatpush1.msra.mxu0 %v4389_v4 }
0x1777   :  { %2845 = vmatprep.subr.mxu0 %v4396_v20 }
0x1778   :  { %2846 = vmatpush1.msra.mxu0 %v4401_v22 }
0x1779   :  { %2847 = vmatprep.subr.mxu0 %v4408_v47 }
0x177a   :  { %2848 = vmatpush1.msra.mxu0 %v4413_v58 }
0x177b   :  { %2849 = vmatprep.subr.mxu0 %v4420_v25 }
0x177c   :  { %2850 = vmatpush1.msra.mxu0 %v4425_v26 }
0x177d   :  { %3261 = vmatprep.subr.mxu0 %v3600_v1 }
0x17cf   :  { %v2667_v44 = vpop.permute.xlu0 %2666 }
0x182d   :  { %v2645_v15 = vpop.f32.mrf.mxu0 }
0x182e   :  { %v2650_v57 = vadd.f32 %v2645_v15, %v4472_v36 }
0x182f   :  { %v2647_v42 = vpop.f32.mrf.mxu0 }
0x1830   :  { %v3239_v8 = vmul.f32 -1.442695, %v2650_v57  ;;  %v2651_v7 = vadd.f32 %v2647_v42, %v4476_v49 }
0x1832   :  { %3438 = vpow2.f32 %v3239_v8  ;;  %v3240_v30 = vmul.f32 -1.442695, %v2651_v7 }
0x1833   :  { %3440 = vtanh.f32 %v2651_v7 }
0x183f   :  { %v3439_v14 = vpop.eup %3438 }
0x1840   :  { %v2655_v10 = vadd.f32 1.0, %v3439_v14  ;;  %v3441_v59 = vpop.eup %3440 }
0x1842   :  { %3442 = vrcp.f32 %v2655_v10 }
0x1843   :  { %3444 = vpow2.f32 %v3240_v30 }
0x184f   :  { %v3443_v5 = vpop.eup %3442 }
0x1850   :  { %v2670_v11 = vmul.f32 %v3443_v5, %v3441_v59  ;;  %v3445_v29 = vpop.eup %3444  ;;  %v2669_v36 = vmul.f32 %v3443_v5, %v2667_v44 }
0x1851   :  { %v2662_v61 = vadd.f32 1.0, %v3445_v29 }
0x1852   :  { %2672 = vrot.lane.b32.xlu1 %v2670_v11, %s3602_s6  ;;  %v2918_v11 = vld [vmem:[#allocation5 + $0x30] sm:$0xff] }
0x1853   :  { %3446 = vrcp.f32 %v2662_v61  ;;  %vm2919_vm2 = vcmp.gt.f32.partialorder %v2918_v11, 0.0 }
0x1860   :  { %v3447_v49 = vpop.eup %3446 }
0x18c4   :  { %v2673_v56 = vpop.permute.xlu1 %2672 }
0x18c5   :  { %v2675_v32 = vadd.f32 %v2673_v56, %v2669_v36 }
0x18c7   :  { %3448 = vtanh.f32 %v2675_v32  ;;  %2686 = vrot.lane.b32.xlu1 %v2675_v32, %s3602_s6 }
0x18d4   :  { %v3449_v31 = vpop.eup %3448 }
0x18d5   :  { %v2677_v40 = vmul.f32 %v3449_v31, %v3447_v49 }
0x18d7   :  { %2681 = vrot.lane.b32.xlu0 %v2677_v40, %s3602_s6 }
0x1939   :  { %v2687_v39 = vpop.permute.xlu1 %2686 }
0x193a   :  { %v2689_v55 = vsel %vm2679_vm0, %v2687_v39, %v2569_v12 }
0x193b   :  { %2786 = vrot.lane.b32.xlu0 %v2689_v55, %s3602_s6 }
0x1949   :  { %v2682_v45 = vpop.permute.xlu0 %2681 }
0x194a   :  { %v2684_v34 = vsel %vm2679_vm0, %v2682_v45, %v2564_v16 }
0x194b   :  { %3241 = vmatmul.mubr.msk.f32.vlgmr.msra.gmra.mxu1 %vm299_vm9, %v2684_v34 }
0x194c   :  { %2956 = vmatpush1.msra.mxu1 %v4343_v38  ;;  %3003 = vmatprep.mubr.f32.mxu1 %v3600_v1 }
0x194d   :  { %2957 = vmatprep.subr.mxu1 %v4345_v19 }
0x194e   :  { %2958 = vmatpush1.msra.mxu1 %v4351_v54 }
0x194f   :  { %2959 = vmatprep.subr.mxu1 %v4358_v52 }
0x1950   :  { %2960 = vmatpush1.msra.mxu1 %v4365_v33 }
0x1951   :  { %2961 = vmatprep.subr.mxu1 %v4372_v63 }
0x1952   :  { %2962 = vmatpush1.msra.mxu1 %v4377_v3 }
0x1953   :  { %2963 = vmatprep.subr.mxu1 %v4384_v17 }
0x1954   :  { %2964 = vmatpush1.msra.mxu1 %v4389_v4 }
0x1955   :  { %2965 = vmatprep.subr.mxu1 %v4396_v20 }
0x1956   :  { %2966 = vmatpush1.msra.mxu1 %v4401_v22 }
0x1957   :  { %2967 = vmatprep.subr.mxu1 %v4408_v47 }
0x1958   :  { %2968 = vmatpush1.msra.mxu1 %v4413_v58 }
0x1959   :  { %2969 = vmatprep.subr.mxu1 %v4420_v25 }
0x195a   :  { %2970 = vmatpush1.msra.mxu1 %v4425_v26 }
0x19ad   :  { %v2787_v58 = vpop.permute.xlu0 %2786 }
0x1a0b   :  { %v2765_v38 = vpop.f32.mrf.mxu1 }
0x1a0c   :  { %v2770_v19 = vadd.f32 %v2765_v38, %v4480_v18  ;;  %v3049_v38 = vld [vmem:[%s4682_s11 + $0x20] sm:$0xff] }
0x1a0d   :  { %v2767_v52 = vpop.f32.mrf.mxu1 }
0x1a0e   :  { %v3242_v54 = vmul.f32 -1.442695, %v2770_v19  ;;  %v2771_v33 = vadd.f32 %v2767_v52, %v4484_v50  ;;  %v3048_v19 = vld [vmem:[%s4682_s11 + $0x18] sm:$0xff]  ;;  %v3046_v52 = vld [vmem:[%s4682_s11 + $0x8] sm:$0xff] }
0x1a10   :  { %3450 = vpow2.f32 %v3242_v54  ;;  %v3243_v22 = vmul.f32 -1.442695, %v2771_v33  ;;  %v3047_v54 = vld [vmem:[%s4682_s11 + $0x10] sm:$0xff] }
0x1a11   :  { %3452 = vtanh.f32 %v2771_v33 }
0x1a1d   :  { %v3451_v63 = vpop.eup %3450 }
0x1a1e   :  { %v2775_v3 = vadd.f32 1.0, %v3451_v63  ;;  %v3453_v17 = vpop.eup %3452 }
0x1a20   :  { %3454 = vrcp.f32 %v2775_v3 }
0x1a21   :  { %3456 = vpow2.f32 %v3243_v22 }
0x1a2d   :  { %v3455_v4 = vpop.eup %3454 }
0x1a2e   :  { %v2790_v20 = vmul.f32 %v3455_v4, %v3453_v17  ;;  %v3457_v47 = vpop.eup %3456  ;;  %v2789_v26 = vmul.f32 %v3455_v4, %v2787_v58 }
0x1a2f   :  { %v2782_v25 = vadd.f32 1.0, %v3457_v47  ;;  %v3045_v47 = vld [vmem:[%s4682_s11] sm:$0xff] }
0x1a30   :  { %2792 = vrot.lane.b32.xlu1 %v2790_v20, %s3602_s6 }
0x1a31   :  { %3458 = vrcp.f32 %v2782_v25 }
0x1a3e   :  { %v3459_v50 = vpop.eup %3458 }
0x1aa2   :  { %v2793_v18 = vpop.permute.xlu1 %2792 }
0x1aa3   :  { %v2795_v53 = vadd.f32 %v2793_v18, %v2789_v26  ;;  %v3038_v18 = vld [vmem:[#allocation5 + $0x38] sm:$0xff] }
0x1aa4   :  { %vm3039_vm4 = vcmp.gt.f32.partialorder %v3038_v18, 0.0 }
0x1aa5   :  { %3460 = vtanh.f32 %v2795_v53  ;;  %2806 = vrot.lane.b32.xlu1 %v2795_v53, %s3602_s6 }
0x1ab2   :  { %v3461_v37 = vpop.eup %3460 }
0x1ab3   :  { %v2797_v21 = vmul.f32 %v3461_v37, %v3459_v50  ;;  %v3250_v37 = vld [vmem:[%s4683_s12] ss:$0 sm:$0xff] }
0x1ab5   :  { %2801 = vrot.lane.b32.xlu0 %v2797_v21, %s3602_s6 }
0x1b17   :  { %v2807_v48 = vpop.permute.xlu1 %2806 }
0x1b18   :  { %v2809_v60 = vsel %vm2799_vm1, %v2807_v48, %v2689_v55 }
0x1b19   :  { %2906 = vrot.lane.b32.xlu0 %v2809_v60, %s3602_s6 }
0x1b27   :  { %v2802_v46 = vpop.permute.xlu0 %2801 }
0x1b28   :  { %v2804_v62 = vsel %vm2799_vm1, %v2802_v46, %v2684_v34  ;;  %v3052_v34 = vld [vmem:[%s4682_s11 + $0x38] sm:$0xff] }
0x1b29   :  { %3244 = vmatmul.mubr.msk.f32.vlgmr.msra.gmra.mxu0 %vm299_vm9, %v2804_v62 }
0x1b2a   :  { %3262 = vmatpush3.msra.mxu0 %v3052_v34  ;;  %3277 = vmatprep.mubr.msk.f32.mxu0 %vm3603_vm3, %v3600_v1 }
0x1b2b   :  { %3263 = vmatprep.subr.mxu0 %v3600_v1 }
0x1b8b   :  { %v2907_v42 = vpop.permute.xlu0 %2906 }
0x1be9   :  { %v2885_v35 = vpop.f32.mrf.mxu0 }
0x1bea   :  { %v2890_v23 = vadd.f32 %v2885_v35, %v4488_v9 }
0x1beb   :  { %v2887_v24 = vpop.f32.mrf.mxu0 }
0x1bec   :  { %v3245_v2 = vmul.f32 -1.442695, %v2890_v23  ;;  %v2891_v28 = vadd.f32 %v2887_v24, %v4490_v13 }
0x1bee   :  { %3462 = vpow2.f32 %v3245_v2  ;;  %v3246_v57 = vmul.f32 -1.442695, %v2891_v28 }
0x1bef   :  { %3464 = vtanh.f32 %v2891_v28 }
0x1bfb   :  { %v3463_v6 = vpop.eup %3462 }
0x1bfc   :  { %v2895_v12 = vadd.f32 1.0, %v3463_v6  ;;  %v3465_v51 = vpop.eup %3464 }
0x1bfe   :  { %3466 = vrcp.f32 %v2895_v12 }
0x1bff   :  { %3468 = vpow2.f32 %v3246_v57 }
0x1c0b   :  { %v3467_v16 = vpop.eup %3466 }
0x1c0c   :  { %v2910_v15 = vmul.f32 %v3467_v16, %v3465_v51  ;;  %v3469_v8 = vpop.eup %3468  ;;  %v2909_v9 = vmul.f32 %v3467_v16, %v2907_v42 }
0x1c0d   :  { %v2902_v7 = vadd.f32 1.0, %v3469_v8 }
0x1c0e   :  { %2912 = vrot.lane.b32.xlu1 %v2910_v15, %s3602_s6 }
0x1c0f   :  { %3470 = vrcp.f32 %v2902_v7 }
0x1c1c   :  { %v3471_v13 = vpop.eup %3470 }
0x1c80   :  { %v2913_v14 = vpop.permute.xlu1 %2912 }
0x1c81   :  { %v2915_v10 = vadd.f32 %v2913_v14, %v2909_v9 }
0x1c83   :  { %3472 = vtanh.f32 %v2915_v10  ;;  %2926 = vrot.lane.b32.xlu1 %v2915_v10, %s3602_s6 }
0x1c90   :  { %v3473_v59 = vpop.eup %3472 }
0x1c91   :  { %v2917_v5 = vmul.f32 %v3473_v59, %v3471_v13 }
0x1c93   :  { %2921 = vrot.lane.b32.xlu0 %v2917_v5, %s3602_s6 }
0x1cf5   :  { %v2927_v30 = vpop.permute.xlu1 %2926 }
0x1cf6   :  { %v2929_v29 = vsel %vm2919_vm2, %v2927_v30, %v2809_v60 }
0x1cf7   :  { %3026 = vrot.lane.b32.xlu0 %v2929_v29, %s3602_s6 }
0x1d05   :  { %v2922_v44 = vpop.permute.xlu0 %2921 }
0x1d06   :  { %v2924_v61 = vsel %vm2919_vm2, %v2922_v44, %v2804_v62 }
0x1d07   :  { %3247 = vmatmul.mubr.msk.f32.vlgmr.msra.gmra.mxu1 %vm299_vm9, %v2924_v61 }
0x1d69   :  { %v3027_v3 = vpop.permute.xlu0 %3026 }
0x1dc7   :  { %v3005_v36 = vpop.f32.mrf.mxu1 }
0x1dc8   :  { %v3010_v56 = vadd.f32 %v3005_v36, %v4492_v0  ;;  %v3051_v0 = vld [vmem:[%s4682_s11 + $0x30] sm:$0xff] }
0x1dc9   :  { %v3007_v49 = vpop.f32.mrf.mxu1  ;;  %3264 = vmatpush3.msra.mxu0 %v3051_v0 }
0x1dca   :  { %v3248_v32 = vmul.f32 -1.442695, %v3010_v56  ;;  %v3011_v31 = vadd.f32 %v3007_v49, %v4494_v41  ;;  %v3050_v41 = vld [vmem:[%s4682_s11 + $0x28] sm:$0xff]  ;;  %3265 = vmatprep.subr.mxu0 %v3600_v1 }
0x1dcb   :  { %3266 = vmatpush3.msra.mxu0 %v3050_v41 }
0x1dcc   :  { %3474 = vpow2.f32 %v3248_v32  ;;  %3267 = vmatprep.subr.mxu0 %v3600_v1  ;;  %v3249_v33 = vmul.f32 -1.442695, %v3011_v31 }
0x1dcd   :  { %3476 = vtanh.f32 %v3011_v31  ;;  %3268 = vmatpush3.msra.mxu0 %v3049_v38 }
0x1dce   :  { %3269 = vmatprep.subr.mxu0 %v3600_v1 }
0x1dcf   :  { %3270 = vmatpush3.msra.mxu0 %v3048_v19 }
0x1dd0   :  { %3271 = vmatprep.subr.mxu0 %v3600_v1 }
0x1dd1   :  { %3272 = vmatpush3.msra.mxu0 %v3047_v54 }
0x1dd2   :  { %3273 = vmatprep.subr.mxu0 %v3600_v1 }
0x1dd3   :  { %3274 = vmatpush3.msra.mxu0 %v3046_v52 }
0x1dd4   :  { %3275 = vmatprep.subr.mxu0 %v3600_v1 }
0x1dd5   :  { %3276 = vmatpush3.msra.mxu0 %v3045_v47 }
0x1dd9   :  { %v3475_v40 = vpop.eup %3474 }
0x1dda   :  { %v3015_v27 = vadd.f32 1.0, %v3475_v40  ;;  %v3477_v39 = vpop.eup %3476 }
0x1ddc   :  { %3478 = vrcp.f32 %v3015_v27 }
0x1ddd   :  { %3480 = vpow2.f32 %v3249_v33 }
0x1de9   :  { %v3479_v55 = vpop.eup %3478 }
0x1dea   :  { %v3030_v45 = vmul.f32 %v3479_v55, %v3477_v39  ;;  %v3481_v63 = vpop.eup %3480  ;;  %v3029_v4 = vmul.f32 %v3479_v55, %v3027_v3 }
0x1deb   :  { %v3022_v17 = vadd.f32 1.0, %v3481_v63 }
0x1dec   :  { %3032 = vrot.lane.b32.xlu1 %v3030_v45, %s3602_s6 }
0x1ded   :  { %3482 = vrcp.f32 %v3022_v17 }
0x1dfa   :  { %v3483_v58 = vpop.eup %3482 }
0x1e5e   :  { %v3033_v20 = vpop.permute.xlu1 %3032 }
0x1e5f   :  { %v3035_v22 = vadd.f32 %v3033_v20, %v3029_v4 }
0x1e61   :  { %3484 = vtanh.f32 %v3035_v22 }
0x1e6e   :  { %v3485_v25 = vpop.eup %3484 }
0x1e6f   :  { %v3037_v26 = vmul.f32 %v3485_v25, %v3483_v58 }
0x1e71   :  { %3041 = vrot.lane.b32.xlu0 %v3037_v26, %s3602_s6 }
0x1ee3   :  { %v3042_v53 = vpop.permute.xlu0 %3041 }
0x1ee4   :  { %v3044_v50 = vsel %vm3039_vm4, %v3042_v53, %v2924_v61 }
0x1ee5   :  { %3278 = vmatmul.mubr.msk.f32.vlgmr.msra.gmra.mxu0 %vm299_vm9, %v3044_v50 }
0x1fa5   :  { %v3129_v21 = vpop.f32.mrf.mxu0 }
0x1fa6   :  { %v3130_v43 = vadd.f32 %v3250_v37, %v3129_v21 }
0x1fa7   :  { %v3279_v48 = vpop.f32.mrf.mxu0 }
0x1fa8   :  { %3134 = vst.msk [vmem:[%s4684_s13] sm:$0xff] %vm3133_vm5, %v3130_v43 }
0x1fa9   :  { %3139 = vsyncpa [#allocation7], 1 }
0x1faa   :  { %3140 = vsyncpa [#allocation9], 1 }
0x1fab   :  { %3141 = vsyncpa [#allocation12], 1 }

</bundles_post_ra>
